<compile_context>
chip_gen: v6e
topology: v6e:2x2x1
jax: 0.10.0
libtpu: 0.0.40
codegen_flags: <defaults>
</compile_context>

<pallas_src>
import jax
import jax.numpy as jnp
from jax.experimental import pallas as pl
from jax.experimental.pallas import tpu as pltpu


def _pick_tile(n, target):
    """Largest divisor of n that is <= target (n itself if n <= target)."""
    if n <= target:
        return n
    best = 1
    for d in range(1, target + 1):
        if n % d == 0:
            best = d
    return best


# Keep the decoder weights resident (fused path) only if they are small enough.
_FUSED_DECODER_MAX_BYTES = 2 * 1024 * 1024  # 2 MiB of f32 decoder weight


# ----------------------------------------------------------------------------
# Fused multi-layer RNN (+ optional decoder) kernel.
#   layer l:  h_t = tanh(x_t @ W_ih^T + (b_ih + b_hh) + h_{t-1} @ W_hh^T)
# Grid iterates sequentially over time chunks.  The hT output (constant index
# map -> VMEM-resident) is the per-layer recurrent-state accumulator.
# ----------------------------------------------------------------------------
def _run_rnn_layers(x_ref, h0_ref, w_refs, h_ref, num_layers, tc, batch):
    @pl.when(pl.program_id(0) == 0)
    def _():
        h_ref[...] = h0_ref[...]

    cur = x_ref[...]                                  # (tc*B, D_in) for layer 0
    for l in range(num_layers):
        wih = w_refs[3 * l][...]                      # (D_in, H)
        whh = w_refs[3 * l + 1][...]                  # (H, H)
        b = w_refs[3 * l + 2][...]                    # (1, H)

        # Hoisted input projection for the whole chunk: one big MXU matmul.
        xp = jnp.dot(cur, wih, preferred_element_type=jnp.float32) + b

        h = h_ref[l]                                  # (B, H) carried across chunks
        outs = []
        for t in range(tc):                           # fully unrolled serial recurrence
            h = jnp.tanh(
                xp[t * batch:(t + 1) * batch, :]
                + jnp.dot(h, whh, preferred_element_type=jnp.float32))
            outs.append(h)
        h_ref[l] = h
        cur = jnp.concatenate(outs, axis=0)           # (tc*B, H) -> next layer's input
    return cur


def _make_rnn_kernel(num_layers, tc, batch):
    """RNN only: writes the (tc*B, H) chunk of RNN outputs (non-fused path)."""
    def kernel(x_ref, h0_ref, *rest):
        w_refs = rest[:3 * num_layers]
        y_ref = rest[3 * num_layers]
        h_ref = rest[3 * num_layers + 1]
        cur = _run_rnn_layers(x_ref, h0_ref, w_refs, h_ref, num_layers, tc, batch)
        y_ref[...] = cur.astype(y_ref.dtype)
    return kernel


def _make_rnn_decode_kernel(num_layers, tc, batch):
    """RNN + fused decoder: writes the (tc*B, V) logits chunk; RNN activations never
    leave VMEM."""
    def kernel(x_ref, h0_ref, *rest):
        w_refs = rest[:3 * num_layers]
        dec_w_ref = rest[3 * num_layers]              # (H, V)
        dec_b_ref = rest[3 * num_layers + 1]          # (1, V)
        out_ref = rest[3 * num_layers + 2]            # (tc*B, V)
        h_ref = rest[3 * num_layers + 3]              # (L, B, H) accumulator
        cur = _run_rnn_layers(x_ref, h0_ref, w_refs, h_ref, num_layers, tc, batch)
        out_ref[...] = (jnp.dot(cur, dec_w_ref[...],
                                preferred_element_type=jnp.float32)
                        + dec_b_ref[...]).astype(out_ref.dtype)
    return kernel


def _rnn_common_specs(layer_params, L, B, H, D, rows):
    """Shared in_specs / flattened weight list for both RNN kernels."""
    flat_ws = []
    in_specs = [
        pl.BlockSpec((rows, D), lambda c: (c, 0)),        # x chunk
        pl.BlockSpec((L, B, H), lambda c: (0, 0, 0)),     # h0 (read once)
    ]
    for (w_ih, w_hh, b_ih, b_hh) in layer_params:
        d_in = w_ih.shape[1]
        flat_ws += [w_ih.T, w_hh.T, (b_ih + b_hh).reshape(1, H)]   # folded bias
        in_specs += [
            pl.BlockSpec((d_in, H), lambda c: (0, 0)),    # W_ih^T (VMEM resident)
            pl.BlockSpec((H, H), lambda c: (0, 0)),       # W_hh^T (VMEM resident)
            pl.BlockSpec((1, H), lambda c: (0, 0)),       # folded bias
        ]
    return flat_ws, in_specs


def rnn_decode_forward(x, h0, layer_params, dec_w, dec_b, T, B, chunk_target=32):
    """Fused path: returns (decoded (T*B, V), hT (L, B, H))."""
    L = len(layer_params)
    D = x.shape[1]
    H = h0.shape[2]
    V = dec_w.shape[0]
    tc = _pick_tile(T, chunk_target)
    rows = tc * B

    flat_ws, in_specs = _rnn_common_specs(layer_params, L, B, H, D, rows)
    in_specs += [
        pl.BlockSpec((H, V), lambda c: (0, 0)),           # decoder W^T (VMEM resident)
        pl.BlockSpec((1, V), lambda c: (0, 0)),           # decoder bias
    ]

    kernel = _make_rnn_decode_kernel(L, tc, B)
    decoded, hT = pl.pallas_call(
        kernel,
        out_shape=(jax.ShapeDtypeStruct((T * B, V), jnp.float32),
                   jax.ShapeDtypeStruct((L, B, H), jnp.float32)),
        grid_spec=pltpu.PrefetchScalarGridSpec(
            num_scalar_prefetch=0,
            grid=(T // tc,),
            in_specs=in_specs,
            out_specs=[
                pl.BlockSpec((rows, V), lambda c: (c, 0)),       # logits chunk
                pl.BlockSpec((L, B, H), lambda c: (0, 0, 0)),    # hT = accumulator
            ],
        ),
        compiler_params=pltpu.CompilerParams(
            dimension_semantics=("arbitrary",)),
    )(x, h0, *flat_ws, dec_w.T, dec_b.reshape(1, V))
    return decoded, hT


def rnn_forward(x, h0, layer_params, T, B, chunk_target=32):
    """Non-fused path: returns (y (T*B, H), hT (L, B, H))."""
    L = len(layer_params)
    D = x.shape[1]
    H = h0.shape[2]
    tc = _pick_tile(T, chunk_target)
    rows = tc * B

    flat_ws, in_specs = _rnn_common_specs(layer_params, L, B, H, D, rows)
    kernel = _make_rnn_kernel(L, tc, B)
    y, hT = pl.pallas_call(
        kernel,
        out_shape=(jax.ShapeDtypeStruct((T * B, H), jnp.float32),
                   jax.ShapeDtypeStruct((L, B, H), jnp.float32)),
        grid_spec=pltpu.PrefetchScalarGridSpec(
            num_scalar_prefetch=0,
            grid=(T // tc,),
            in_specs=in_specs,
            out_specs=[
                pl.BlockSpec((rows, H), lambda c: (c, 0)),       # y chunk
                pl.BlockSpec((L, B, H), lambda c: (0, 0, 0)),    # hT = accumulator
            ],
        ),
        compiler_params=pltpu.CompilerParams(
            dimension_semantics=("arbitrary",)),
    )(x, h0, *flat_ws)
    return y, hT


# ----------------------------------------------------------------------------
# Tiled decoder linear (fallback for large vocab):  out = x @ W^T + b.
# Grid over (rows, vocab), both "parallel" (megacore / v7x can split work).
# ----------------------------------------------------------------------------
def _linear_kernel(x_ref, w_ref, b_ref, o_ref):
    o_ref[...] = (jnp.dot(x_ref[...], w_ref[...],
                          preferred_element_type=jnp.float32)
                  + b_ref[...]).astype(o_ref.dtype)


def linear(x, w, b, tn_target=256, tv_target=1024):
    """x: (N, H), w: (V, H), b: (V,) -> (N, V)"""
    N, H = x.shape
    V = w.shape[0]
    tn = _pick_tile(N, tn_target)
    tv = _pick_tile(V, tv_target)
    return pl.pallas_call(
        _linear_kernel,
        out_shape=jax.ShapeDtypeStruct((N, V), jnp.float32),
        grid_spec=pltpu.PrefetchScalarGridSpec(
            num_scalar_prefetch=0,
            grid=(N // tn, V // tv),
            in_specs=[pl.BlockSpec((tn, H), lambda i, j: (i, 0)),
                      pl.BlockSpec((H, tv), lambda i, j: (0, j)),
                      pl.BlockSpec((1, tv), lambda i, j: (0, j))],
            out_specs=pl.BlockSpec((tn, tv), lambda i, j: (i, j)),
        ),
        compiler_params=pltpu.CompilerParams(
            dimension_semantics=("parallel", "parallel")),
    )(x, w.T, b.reshape(1, V))


# ----------------------------------------------------------------------------
# Model glue (parameter init + forward)
# ----------------------------------------------------------------------------
def init_params(key, nvoc, dim, hidden, num_layers):
    ks = jax.random.split(key, 3 + 4 * num_layers)
    init_u = 0.1
    stdv = 1.0 / jnp.sqrt(hidden)
    params = {
        "emb": jax.random.uniform(ks[0], (nvoc, dim), jnp.float32, -init_u, init_u),
        "dec_w": jax.random.uniform(ks[1], (nvoc, hidden), jnp.float32, -init_u, init_u),
        "dec_b": jnp.zeros((nvoc,), jnp.float32),
        "rnn": [],
    }
    for l in range(num_layers):
        in_dim = dim if l == 0 else hidden
        k0, k1, k2, k3 = ks[3 + 4 * l: 3 + 4 * (l + 1)]
        params["rnn"].append({
            "w_ih": jax.random.uniform(k0, (hidden, in_dim), jnp.float32, -stdv, stdv),
            "w_hh": jax.random.uniform(k1, (hidden, hidden), jnp.float32, -stdv, stdv),
            "b_ih": jax.random.uniform(k2, (hidden,), jnp.float32, -stdv, stdv),
            "b_hh": jax.random.uniform(k3, (hidden,), jnp.float32, -stdv, stdv),
        })
    return params


@jax.jit
def lm_model_rnn_forward(params, tokens, h0):
    """tokens: (T, B) int32;  h0: (num_layers, B, H).
    Returns (decoded (T, B, nvoc), hidden (num_layers, B, H))."""
    T, B = tokens.shape
    # Embedding gather (plain JAX glue); dropout == identity (eval mode).
    x = jnp.take(params["emb"], tokens.reshape(-1), axis=0)      # (T*B, D), time-major

    layer_params = [(lp["w_ih"], lp["w_hh"], lp["b_ih"], lp["b_hh"])
                    for lp in params["rnn"]]

    V, H = params["dec_w"].shape
    if V * H * 4 <= _FUSED_DECODER_MAX_BYTES:
        # Decoder fused into the RNN kernel: RNN activations never hit HBM.
        decoded, hidden = rnn_decode_forward(
            x, h0, layer_params, params["dec_w"], params["dec_b"], T, B)
    else:
        # Large vocab: RNN kernel + separately tiled decoder kernel.
        y, hidden = rnn_forward(x, h0, layer_params, T, B)       # y: (T*B, H)
        decoded = linear(y, params["dec_w"], params["dec_b"])    # (T*B, V)
    return decoded.reshape(T, B, V), hidden


# ----------------------------------------------------------------------------
# Pure-JAX reference for correctness sanity check.
# ----------------------------------------------------------------------------
def reference_forward(params, tokens, h0):
    x = jnp.take(params["emb"], tokens, axis=0)                  # (T, B, D)
    hiddens = []
    for l, lp in enumerate(params["rnn"]):
        h = h0[l]
        outs = []
        for t in range(x.shape[0]):
            h = jnp.tanh(x[t] @ lp["w_ih"].T + lp["b_ih"]
                         + h @ lp["w_hh"].T + lp["b_hh"])
            outs.append(h)
        x = jnp.stack(outs, axis=0)
        hiddens.append(h)
    hidden = jnp.stack(hiddens, axis=0)
    T, B, H = x.shape
    dec = x.reshape(T * B, H) @ params["dec_w"].T + params["dec_b"]
    return dec.reshape(T, B, -1), hidden


if __name__ == "__main__":
    # Small shapes consistent with the module; D = H = 128 keeps everything lane-dense.
    NVOC, DIM, HIDDEN, NUM_LAYERS = 256, 128, 128, 2
    T, B = 16, 8

    key = jax.random.PRNGKey(0)
    kp, kt = jax.random.split(key)
    params = init_params(kp, NVOC, DIM, HIDDEN, NUM_LAYERS)
    tokens = jax.random.randint(kt, (T, B), 0, NVOC, dtype=jnp.int32)
    h0 = jnp.zeros((NUM_LAYERS, B, HIDDEN), jnp.float32)  # hidden=None in PyTorch

    decoded, hidden = lm_model_rnn_forward(params, tokens, h0)
    jax.block_until_ready((decoded, hidden))

    ref_dec, ref_hid = reference_forward(params, tokens, h0)
    assert decoded.shape == (T, B, NVOC) and hidden.shape == (NUM_LAYERS, B, HIDDEN)
    assert jnp.allclose(decoded, ref_dec, atol=1e-3, rtol=1e-3)
    assert jnp.allclose(hidden, ref_hid, atol=1e-3, rtol=1e-3)

    print("KERNEL_OK")
</pallas_src>

<mosaic_0001>
module attributes {stable_mosaic.version = 11 : i64} {
  func.func @kernel(%arg0: i32, %arg1: memref<128x128xf32, #tpu.memory_space<vmem>>, %arg2: memref<2x8x128xf32, #tpu.memory_space<vmem>>, %arg3: memref<128x128xf32, #tpu.memory_space<vmem>>, %arg4: memref<128x128xf32, #tpu.memory_space<vmem>>, %arg5: memref<1x128xf32, #tpu.memory_space<vmem>>, %arg6: memref<128x128xf32, #tpu.memory_space<vmem>>, %arg7: memref<128x128xf32, #tpu.memory_space<vmem>>, %arg8: memref<1x128xf32, #tpu.memory_space<vmem>>, %arg9: memref<128x256xf32, #tpu.memory_space<vmem>>, %arg10: memref<1x256xf32, #tpu.memory_space<vmem>>, %arg11: memref<128x256xf32, #tpu.memory_space<vmem>>, %arg12: memref<2x8x128xf32, #tpu.memory_space<vmem>>) attributes {dimension_semantics = [#tpu.dimension_semantics<arbitrary>], iteration_bounds = array<i64: 1>, scalar_prefetch = 0 : i64, scratch_operands = 0 : i64, tpu.core_type = #tpu.core_type<tc>, window_params = [{transform_indices = @transform_0, window_bounds = array<i64: 128, 128>}, {pipeline_mode = #tpu.pipeline_mode<synchronous>, transform_indices = @transform_1, window_bounds = array<i64: 2, 8, 128>}, {pipeline_mode = #tpu.pipeline_mode<synchronous>, transform_indices = @transform_2, window_bounds = array<i64: 128, 128>}, {pipeline_mode = #tpu.pipeline_mode<synchronous>, transform_indices = @transform_3, window_bounds = array<i64: 128, 128>}, {pipeline_mode = #tpu.pipeline_mode<synchronous>, transform_indices = @transform_4, window_bounds = array<i64: 1, 128>}, {pipeline_mode = #tpu.pipeline_mode<synchronous>, transform_indices = @transform_5, window_bounds = array<i64: 128, 128>}, {pipeline_mode = #tpu.pipeline_mode<synchronous>, transform_indices = @transform_6, window_bounds = array<i64: 128, 128>}, {pipeline_mode = #tpu.pipeline_mode<synchronous>, transform_indices = @transform_7, window_bounds = array<i64: 1, 128>}, {pipeline_mode = #tpu.pipeline_mode<synchronous>, transform_indices = @transform_8, window_bounds = array<i64: 128, 256>}, {pipeline_mode = #tpu.pipeline_mode<synchronous>, transform_indices = @transform_9, window_bounds = array<i64: 1, 256>}, {transform_indices = @transform_10, window_bounds = array<i64: 128, 256>}, {pipeline_mode = #tpu.pipeline_mode<synchronous>, transform_indices = @transform_11, window_bounds = array<i64: 2, 8, 128>}]} {
    %c0_i32 = arith.constant 0 : i32
    %0 = arith.cmpi eq, %arg0, %c0_i32 : i32
    %1 = arith.extui %0 : i1 to i32
    %c0_i32_0 = arith.constant 0 : i32
    %2 = arith.cmpi ne, %1, %c0_i32_0 : i32
    scf.if %2 {
      %c0_65 = arith.constant 0 : index
      %c0_66 = arith.constant 0 : index
      %c0_67 = arith.constant 0 : index
      %162 = vector.load %arg2[%c0_65, %c0_66, %c0_67] : memref<2x8x128xf32, #tpu.memory_space<vmem>>, vector<2x8x128xf32>
      %c0_68 = arith.constant 0 : index
      %c0_69 = arith.constant 0 : index
      %c0_70 = arith.constant 0 : index
      %163 = vector.load %arg12[%c0_68, %c0_69, %c0_70] : memref<2x8x128xf32, #tpu.memory_space<vmem>>, vector<2x8x128xf32>
      tpu.vector_store %arg12[%c0_68, %c0_69, %c0_70], %162 {strides = array<i32>} : memref<2x8x128xf32, #tpu.memory_space<vmem>>, vector<2x8x128xf32>,
    } else {
    }
    %c0 = arith.constant 0 : index
    %c0_1 = arith.constant 0 : index
    %3 = vector.load %arg1[%c0, %c0_1] : memref<128x128xf32, #tpu.memory_space<vmem>>, vector<128x128xf32>
    %c0_2 = arith.constant 0 : index
    %c0_3 = arith.constant 0 : index
    %4 = vector.load %arg3[%c0_2, %c0_3] : memref<128x128xf32, #tpu.memory_space<vmem>>, vector<128x128xf32>
    %c0_4 = arith.constant 0 : index
    %c0_5 = arith.constant 0 : index
    %5 = vector.load %arg4[%c0_4, %c0_5] : memref<128x128xf32, #tpu.memory_space<vmem>>, vector<128x128xf32>
    %c0_6 = arith.constant 0 : index
    %c0_7 = arith.constant 0 : index
    %6 = vector.load %arg5[%c0_6, %c0_7] : memref<1x128xf32, #tpu.memory_space<vmem>>, vector<1x128xf32>
    %cst = arith.constant dense<0.000000e+00> : vector<128x128xf32>
    %7 = tpu.matmul %3, %4, %cst {dimension_numbers = #tpu.dot_dimension_numbers<[1], [0], [0], [1], [0, 0, 1, 1], [], []>} : vector<128x128xf32>, vector<128x128xf32>, vector<128x128xf32> -> vector<128x128xf32>
    %8 = vector.broadcast %6 : vector<1x128xf32> to vector<128x128xf32>
    %9 = arith.addf %7, %8 : vector<128x128xf32>
    %c0_8 = arith.constant 0 : index
    %c0_9 = arith.constant 0 : index
    %c0_10 = arith.constant 0 : index
    %10 = vector.load %arg12[%c0_8, %c0_9, %c0_10] : memref<2x8x128xf32, #tpu.memory_space<vmem>>, vector<1x8x128xf32>
    %11 = vector.shape_cast %10 : vector<1x8x128xf32> to vector<8x128xf32>
    %12 = vector.extract_strided_slice %9 {offsets = [0, 0], sizes = [8, 128], strides = [1, 1]} : vector<128x128xf32> to vector<8x128xf32>
    %cst_11 = arith.constant dense<0.000000e+00> : vector<8x128xf32>
    %13 = tpu.matmul %11, %5, %cst_11 {dimension_numbers = #tpu.dot_dimension_numbers<[1], [0], [0], [1], [0, 0, 1, 1], [], []>} : vector<8x128xf32>, vector<128x128xf32>, vector<8x128xf32> -> vector<8x128xf32>
    %14 = arith.addf %12, %13 : vector<8x128xf32>
    %15 = math.tanh %14 : vector<8x128xf32>
    %16 = vector.extract_strided_slice %9 {offsets = [8, 0], sizes = [8, 128], strides = [1, 1]} : vector<128x128xf32> to vector<8x128xf32>
    %cst_12 = arith.constant dense<0.000000e+00> : vector<8x128xf32>
    %17 = tpu.matmul %15, %5, %cst_12 {dimension_numbers = #tpu.dot_dimension_numbers<[1], [0], [0], [1], [0, 0, 1, 1], [], []>} : vector<8x128xf32>, vector<128x128xf32>, vector<8x128xf32> -> vector<8x128xf32>
    %18 = arith.addf %16, %17 : vector<8x128xf32>
    %19 = math.tanh %18 : vector<8x128xf32>
    %20 = vector.extract_strided_slice %9 {offsets = [16, 0], sizes = [8, 128], strides = [1, 1]} : vector<128x128xf32> to vector<8x128xf32>
    %cst_13 = arith.constant dense<0.000000e+00> : vector<8x128xf32>
    %21 = tpu.matmul %19, %5, %cst_13 {dimension_numbers = #tpu.dot_dimension_numbers<[1], [0], [0], [1], [0, 0, 1, 1], [], []>} : vector<8x128xf32>, vector<128x128xf32>, vector<8x128xf32> -> vector<8x128xf32>
    %22 = arith.addf %20, %21 : vector<8x128xf32>
    %23 = math.tanh %22 : vector<8x128xf32>
    %24 = vector.extract_strided_slice %9 {offsets = [24, 0], sizes = [8, 128], strides = [1, 1]} : vector<128x128xf32> to vector<8x128xf32>
    %cst_14 = arith.constant dense<0.000000e+00> : vector<8x128xf32>
    %25 = tpu.matmul %23, %5, %cst_14 {dimension_numbers = #tpu.dot_dimension_numbers<[1], [0], [0], [1], [0, 0, 1, 1], [], []>} : vector<8x128xf32>, vector<128x128xf32>, vector<8x128xf32> -> vector<8x128xf32>
    %26 = arith.addf %24, %25 : vector<8x128xf32>
    %27 = math.tanh %26 : vector<8x128xf32>
    %28 = vector.extract_strided_slice %9 {offsets = [32, 0], sizes = [8, 128], strides = [1, 1]} : vector<128x128xf32> to vector<8x128xf32>
    %cst_15 = arith.constant dense<0.000000e+00> : vector<8x128xf32>
    %29 = tpu.matmul %27, %5, %cst_15 {dimension_numbers = #tpu.dot_dimension_numbers<[1], [0], [0], [1], [0, 0, 1, 1], [], []>} : vector<8x128xf32>, vector<128x128xf32>, vector<8x128xf32> -> vector<8x128xf32>
    %30 = arith.addf %28, %29 : vector<8x128xf32>
    %31 = math.tanh %30 : vector<8x128xf32>
    %32 = vector.extract_strided_slice %9 {offsets = [40, 0], sizes = [8, 128], strides = [1, 1]} : vector<128x128xf32> to vector<8x128xf32>
    %cst_16 = arith.constant dense<0.000000e+00> : vector<8x128xf32>
    %33 = tpu.matmul %31, %5, %cst_16 {dimension_numbers = #tpu.dot_dimension_numbers<[1], [0], [0], [1], [0, 0, 1, 1], [], []>} : vector<8x128xf32>, vector<128x128xf32>, vector<8x128xf32> -> vector<8x128xf32>
    %34 = arith.addf %32, %33 : vector<8x128xf32>
    %35 = math.tanh %34 : vector<8x128xf32>
    %36 = vector.extract_strided_slice %9 {offsets = [48, 0], sizes = [8, 128], strides = [1, 1]} : vector<128x128xf32> to vector<8x128xf32>
    %cst_17 = arith.constant dense<0.000000e+00> : vector<8x128xf32>
    %37 = tpu.matmul %35, %5, %cst_17 {dimension_numbers = #tpu.dot_dimension_numbers<[1], [0], [0], [1], [0, 0, 1, 1], [], []>} : vector<8x128xf32>, vector<128x128xf32>, vector<8x128xf32> -> vector<8x128xf32>
    %38 = arith.addf %36, %37 : vector<8x128xf32>
    %39 = math.tanh %38 : vector<8x128xf32>
    %40 = vector.extract_strided_slice %9 {offsets = [56, 0], sizes = [8, 128], strides = [1, 1]} : vector<128x128xf32> to vector<8x128xf32>
    %cst_18 = arith.constant dense<0.000000e+00> : vector<8x128xf32>
    %41 = tpu.matmul %39, %5, %cst_18 {dimension_numbers = #tpu.dot_dimension_numbers<[1], [0], [0], [1], [0, 0, 1, 1], [], []>} : vector<8x128xf32>, vector<128x128xf32>, vector<8x128xf32> -> vector<8x128xf32>
    %42 = arith.addf %40, %41 : vector<8x128xf32>
    %43 = math.tanh %42 : vector<8x128xf32>
    %44 = vector.extract_strided_slice %9 {offsets = [64, 0], sizes = [8, 128], strides = [1, 1]} : vector<128x128xf32> to vector<8x128xf32>
    %cst_19 = arith.constant dense<0.000000e+00> : vector<8x128xf32>
    %45 = tpu.matmul %43, %5, %cst_19 {dimension_numbers = #tpu.dot_dimension_numbers<[1], [0], [0], [1], [0, 0, 1, 1], [], []>} : vector<8x128xf32>, vector<128x128xf32>, vector<8x128xf32> -> vector<8x128xf32>
    %46 = arith.addf %44, %45 : vector<8x128xf32>
    %47 = math.tanh %46 : vector<8x128xf32>
    %48 = vector.extract_strided_slice %9 {offsets = [72, 0], sizes = [8, 128], strides = [1, 1]} : vector<128x128xf32> to vector<8x128xf32>
    %cst_20 = arith.constant dense<0.000000e+00> : vector<8x128xf32>
    %49 = tpu.matmul %47, %5, %cst_20 {dimension_numbers = #tpu.dot_dimension_numbers<[1], [0], [0], [1], [0, 0, 1, 1], [], []>} : vector<8x128xf32>, vector<128x128xf32>, vector<8x128xf32> -> vector<8x128xf32>
    %50 = arith.addf %48, %49 : vector<8x128xf32>
    %51 = math.tanh %50 : vector<8x128xf32>
    %52 = vector.extract_strided_slice %9 {offsets = [80, 0], sizes = [8, 128], strides = [1, 1]} : vector<128x128xf32> to vector<8x128xf32>
    %cst_21 = arith.constant dense<0.000000e+00> : vector<8x128xf32>
    %53 = tpu.matmul %51, %5, %cst_21 {dimension_numbers = #tpu.dot_dimension_numbers<[1], [0], [0], [1], [0, 0, 1, 1], [], []>} : vector<8x128xf32>, vector<128x128xf32>, vector<8x128xf32> -> vector<8x128xf32>
    %54 = arith.addf %52, %53 : vector<8x128xf32>
    %55 = math.tanh %54 : vector<8x128xf32>
    %56 = vector.extract_strided_slice %9 {offsets = [88, 0], sizes = [8, 128], strides = [1, 1]} : vector<128x128xf32> to vector<8x128xf32>
    %cst_22 = arith.constant dense<0.000000e+00> : vector<8x128xf32>
    %57 = tpu.matmul %55, %5, %cst_22 {dimension_numbers = #tpu.dot_dimension_numbers<[1], [0], [0], [1], [0, 0, 1, 1], [], []>} : vector<8x128xf32>, vector<128x128xf32>, vector<8x128xf32> -> vector<8x128xf32>
    %58 = arith.addf %56, %57 : vector<8x128xf32>
    %59 = math.tanh %58 : vector<8x128xf32>
    %60 = vector.extract_strided_slice %9 {offsets = [96, 0], sizes = [8, 128], strides = [1, 1]} : vector<128x128xf32> to vector<8x128xf32>
    %cst_23 = arith.constant dense<0.000000e+00> : vector<8x128xf32>
    %61 = tpu.matmul %59, %5, %cst_23 {dimension_numbers = #tpu.dot_dimension_numbers<[1], [0], [0], [1], [0, 0, 1, 1], [], []>} : vector<8x128xf32>, vector<128x128xf32>, vector<8x128xf32> -> vector<8x128xf32>
    %62 = arith.addf %60, %61 : vector<8x128xf32>
    %63 = math.tanh %62 : vector<8x128xf32>
    %64 = vector.extract_strided_slice %9 {offsets = [104, 0], sizes = [8, 128], strides = [1, 1]} : vector<128x128xf32> to vector<8x128xf32>
    %cst_24 = arith.constant dense<0.000000e+00> : vector<8x128xf32>
    %65 = tpu.matmul %63, %5, %cst_24 {dimension_numbers = #tpu.dot_dimension_numbers<[1], [0], [0], [1], [0, 0, 1, 1], [], []>} : vector<8x128xf32>, vector<128x128xf32>, vector<8x128xf32> -> vector<8x128xf32>
    %66 = arith.addf %64, %65 : vector<8x128xf32>
    %67 = math.tanh %66 : vector<8x128xf32>
    %68 = vector.extract_strided_slice %9 {offsets = [112, 0], sizes = [8, 128], strides = [1, 1]} : vector<128x128xf32> to vector<8x128xf32>
    %cst_25 = arith.constant dense<0.000000e+00> : vector<8x128xf32>
    %69 = tpu.matmul %67, %5, %cst_25 {dimension_numbers = #tpu.dot_dimension_numbers<[1], [0], [0], [1], [0, 0, 1, 1], [], []>} : vector<8x128xf32>, vector<128x128xf32>, vector<8x128xf32> -> vector<8x128xf32>
    %70 = arith.addf %68, %69 : vector<8x128xf32>
    %71 = math.tanh %70 : vector<8x128xf32>
    %72 = vector.extract_strided_slice %9 {offsets = [120, 0], sizes = [8, 128], strides = [1, 1]} : vector<128x128xf32> to vector<8x128xf32>
    %cst_26 = arith.constant dense<0.000000e+00> : vector<8x128xf32>
    %73 = tpu.matmul %71, %5, %cst_26 {dimension_numbers = #tpu.dot_dimension_numbers<[1], [0], [0], [1], [0, 0, 1, 1], [], []>} : vector<8x128xf32>, vector<128x128xf32>, vector<8x128xf32> -> vector<8x128xf32>
    %74 = arith.addf %72, %73 : vector<8x128xf32>
    %75 = math.tanh %74 : vector<8x128xf32>
    %c0_27 = arith.constant 0 : index
    %c0_28 = arith.constant 0 : index
    %c0_29 = arith.constant 0 : index
    %76 = vector.load %arg12[%c0_27, %c0_28, %c0_29] : memref<2x8x128xf32, #tpu.memory_space<vmem>>, vector<1x8x128xf32>
    %77 = vector.shape_cast %76 : vector<1x8x128xf32> to vector<8x128xf32>
    %78 = vector.shape_cast %75 : vector<8x128xf32> to vector<1x8x128xf32>
    tpu.vector_store %arg12[%c0_27, %c0_28, %c0_29], %78 {strides = array<i32>} : memref<2x8x128xf32, #tpu.memory_space<vmem>>, vector<1x8x128xf32>,
    %79 = tpu.concatenate %15, %19, %23, %27, %31, %35, %39, %43, %47, %51, %55, %59, %63, %67, %71, %75 in 0 : vector<8x128xf32>, vector<8x128xf32>, vector<8x128xf32>, vector<8x128xf32>, vector<8x128xf32>, vector<8x128xf32>, vector<8x128xf32>, vector<8x128xf32>, vector<8x128xf32>, vector<8x128xf32>, vector<8x128xf32>, vector<8x128xf32>, vector<8x128xf32>, vector<8x128xf32>, vector<8x128xf32>, vector<8x128xf32> -> vector<128x128xf32>
    %c0_30 = arith.constant 0 : index
    %c0_31 = arith.constant 0 : index
    %80 = vector.load %arg6[%c0_30, %c0_31] : memref<128x128xf32, #tpu.memory_space<vmem>>, vector<128x128xf32>
    %c0_32 = arith.constant 0 : index
    %c0_33 = arith.constant 0 : index
    %81 = vector.load %arg7[%c0_32, %c0_33] : memref<128x128xf32, #tpu.memory_space<vmem>>, vector<128x128xf32>
    %c0_34 = arith.constant 0 : index
    %c0_35 = arith.constant 0 : index
    %82 = vector.load %arg8[%c0_34, %c0_35] : memref<1x128xf32, #tpu.memory_space<vmem>>, vector<1x128xf32>
    %cst_36 = arith.constant dense<0.000000e+00> : vector<128x128xf32>
    %83 = tpu.matmul %79, %80, %cst_36 {dimension_numbers = #tpu.dot_dimension_numbers<[1], [0], [0], [1], [0, 0, 1, 1], [], []>} : vector<128x128xf32>, vector<128x128xf32>, vector<128x128xf32> -> vector<128x128xf32>
    %84 = vector.broadcast %82 : vector<1x128xf32> to vector<128x128xf32>
    %85 = arith.addf %83, %84 : vector<128x128xf32>
    %c1 = arith.constant 1 : index
    %c0_37 = arith.constant 0 : index
    %c0_38 = arith.constant 0 : index
    %86 = vector.load %arg12[%c1, %c0_37, %c0_38] : memref<2x8x128xf32, #tpu.memory_space<vmem>>, vector<1x8x128xf32>
    %87 = vector.shape_cast %86 : vector<1x8x128xf32> to vector<8x128xf32>
    %88 = vector.extract_strided_slice %85 {offsets = [0, 0], sizes = [8, 128], strides = [1, 1]} : vector<128x128xf32> to vector<8x128xf32>
    %cst_39 = arith.constant dense<0.000000e+00> : vector<8x128xf32>
    %89 = tpu.matmul %87, %81, %cst_39 {dimension_numbers = #tpu.dot_dimension_numbers<[1], [0], [0], [1], [0, 0, 1, 1], [], []>} : vector<8x128xf32>, vector<128x128xf32>, vector<8x128xf32> -> vector<8x128xf32>
    %90 = arith.addf %88, %89 : vector<8x128xf32>
    %91 = math.tanh %90 : vector<8x128xf32>
    %92 = vector.extract_strided_slice %85 {offsets = [8, 0], sizes = [8, 128], strides = [1, 1]} : vector<128x128xf32> to vector<8x128xf32>
    %cst_40 = arith.constant dense<0.000000e+00> : vector<8x128xf32>
    %93 = tpu.matmul %91, %81, %cst_40 {dimension_numbers = #tpu.dot_dimension_numbers<[1], [0], [0], [1], [0, 0, 1, 1], [], []>} : vector<8x128xf32>, vector<128x128xf32>, vector<8x128xf32> -> vector<8x128xf32>
    %94 = arith.addf %92, %93 : vector<8x128xf32>
    %95 = math.tanh %94 : vector<8x128xf32>
    %96 = vector.extract_strided_slice %85 {offsets = [16, 0], sizes = [8, 128], strides = [1, 1]} : vector<128x128xf32> to vector<8x128xf32>
    %cst_41 = arith.constant dense<0.000000e+00> : vector<8x128xf32>
    %97 = tpu.matmul %95, %81, %cst_41 {dimension_numbers = #tpu.dot_dimension_numbers<[1], [0], [0], [1], [0, 0, 1, 1], [], []>} : vector<8x128xf32>, vector<128x128xf32>, vector<8x128xf32> -> vector<8x128xf32>
    %98 = arith.addf %96, %97 : vector<8x128xf32>
    %99 = math.tanh %98 : vector<8x128xf32>
    %100 = vector.extract_strided_slice %85 {offsets = [24, 0], sizes = [8, 128], strides = [1, 1]} : vector<128x128xf32> to vector<8x128xf32>
    %cst_42 = arith.constant dense<0.000000e+00> : vector<8x128xf32>
    %101 = tpu.matmul %99, %81, %cst_42 {dimension_numbers = #tpu.dot_dimension_numbers<[1], [0], [0], [1], [0, 0, 1, 1], [], []>} : vector<8x128xf32>, vector<128x128xf32>, vector<8x128xf32> -> vector<8x128xf32>
    %102 = arith.addf %100, %101 : vector<8x128xf32>
    %103 = math.tanh %102 : vector<8x128xf32>
    %104 = vector.extract_strided_slice %85 {offsets = [32, 0], sizes = [8, 128], strides = [1, 1]} : vector<128x128xf32> to vector<8x128xf32>
    %cst_43 = arith.constant dense<0.000000e+00> : vector<8x128xf32>
    %105 = tpu.matmul %103, %81, %cst_43 {dimension_numbers = #tpu.dot_dimension_numbers<[1], [0], [0], [1], [0, 0, 1, 1], [], []>} : vector<8x128xf32>, vector<128x128xf32>, vector<8x128xf32> -> vector<8x128xf32>
    %106 = arith.addf %104, %105 : vector<8x128xf32>
    %107 = math.tanh %106 : vector<8x128xf32>
    %108 = vector.extract_strided_slice %85 {offsets = [40, 0], sizes = [8, 128], strides = [1, 1]} : vector<128x128xf32> to vector<8x128xf32>
    %cst_44 = arith.constant dense<0.000000e+00> : vector<8x128xf32>
    %109 = tpu.matmul %107, %81, %cst_44 {dimension_numbers = #tpu.dot_dimension_numbers<[1], [0], [0], [1], [0, 0, 1, 1], [], []>} : vector<8x128xf32>, vector<128x128xf32>, vector<8x128xf32> -> vector<8x128xf32>
    %110 = arith.addf %108, %109 : vector<8x128xf32>
    %111 = math.tanh %110 : vector<8x128xf32>
    %112 = vector.extract_strided_slice %85 {offsets = [48, 0], sizes = [8, 128], strides = [1, 1]} : vector<128x128xf32> to vector<8x128xf32>
    %cst_45 = arith.constant dense<0.000000e+00> : vector<8x128xf32>
    %113 = tpu.matmul %111, %81, %cst_45 {dimension_numbers = #tpu.dot_dimension_numbers<[1], [0], [0], [1], [0, 0, 1, 1], [], []>} : vector<8x128xf32>, vector<128x128xf32>, vector<8x128xf32> -> vector<8x128xf32>
    %114 = arith.addf %112, %113 : vector<8x128xf32>
    %115 = math.tanh %114 : vector<8x128xf32>
    %116 = vector.extract_strided_slice %85 {offsets = [56, 0], sizes = [8, 128], strides = [1, 1]} : vector<128x128xf32> to vector<8x128xf32>
    %cst_46 = arith.constant dense<0.000000e+00> : vector<8x128xf32>
    %117 = tpu.matmul %115, %81, %cst_46 {dimension_numbers = #tpu.dot_dimension_numbers<[1], [0], [0], [1], [0, 0, 1, 1], [], []>} : vector<8x128xf32>, vector<128x128xf32>, vector<8x128xf32> -> vector<8x128xf32>
    %118 = arith.addf %116, %117 : vector<8x128xf32>
    %119 = math.tanh %118 : vector<8x128xf32>
    %120 = vector.extract_strided_slice %85 {offsets = [64, 0], sizes = [8, 128], strides = [1, 1]} : vector<128x128xf32> to vector<8x128xf32>
    %cst_47 = arith.constant dense<0.000000e+00> : vector<8x128xf32>
    %121 = tpu.matmul %119, %81, %cst_47 {dimension_numbers = #tpu.dot_dimension_numbers<[1], [0], [0], [1], [0, 0, 1, 1], [], []>} : vector<8x128xf32>, vector<128x128xf32>, vector<8x128xf32> -> vector<8x128xf32>
    %122 = arith.addf %120, %121 : vector<8x128xf32>
    %123 = math.tanh %122 : vector<8x128xf32>
    %124 = vector.extract_strided_slice %85 {offsets = [72, 0], sizes = [8, 128], strides = [1, 1]} : vector<128x128xf32> to vector<8x128xf32>
    %cst_48 = arith.constant dense<0.000000e+00> : vector<8x128xf32>
    %125 = tpu.matmul %123, %81, %cst_48 {dimension_numbers = #tpu.dot_dimension_numbers<[1], [0], [0], [1], [0, 0, 1, 1], [], []>} : vector<8x128xf32>, vector<128x128xf32>, vector<8x128xf32> -> vector<8x128xf32>
    %126 = arith.addf %124, %125 : vector<8x128xf32>
    %127 = math.tanh %126 : vector<8x128xf32>
    %128 = vector.extract_strided_slice %85 {offsets = [80, 0], sizes = [8, 128], strides = [1, 1]} : vector<128x128xf32> to vector<8x128xf32>
    %cst_49 = arith.constant dense<0.000000e+00> : vector<8x128xf32>
    %129 = tpu.matmul %127, %81, %cst_49 {dimension_numbers = #tpu.dot_dimension_numbers<[1], [0], [0], [1], [0, 0, 1, 1], [], []>} : vector<8x128xf32>, vector<128x128xf32>, vector<8x128xf32> -> vector<8x128xf32>
    %130 = arith.addf %128, %129 : vector<8x128xf32>
    %131 = math.tanh %130 : vector<8x128xf32>
    %132 = vector.extract_strided_slice %85 {offsets = [88, 0], sizes = [8, 128], strides = [1, 1]} : vector<128x128xf32> to vector<8x128xf32>
    %cst_50 = arith.constant dense<0.000000e+00> : vector<8x128xf32>
    %133 = tpu.matmul %131, %81, %cst_50 {dimension_numbers = #tpu.dot_dimension_numbers<[1], [0], [0], [1], [0, 0, 1, 1], [], []>} : vector<8x128xf32>, vector<128x128xf32>, vector<8x128xf32> -> vector<8x128xf32>
    %134 = arith.addf %132, %133 : vector<8x128xf32>
    %135 = math.tanh %134 : vector<8x128xf32>
    %136 = vector.extract_strided_slice %85 {offsets = [96, 0], sizes = [8, 128], strides = [1, 1]} : vector<128x128xf32> to vector<8x128xf32>
    %cst_51 = arith.constant dense<0.000000e+00> : vector<8x128xf32>
    %137 = tpu.matmul %135, %81, %cst_51 {dimension_numbers = #tpu.dot_dimension_numbers<[1], [0], [0], [1], [0, 0, 1, 1], [], []>} : vector<8x128xf32>, vector<128x128xf32>, vector<8x128xf32> -> vector<8x128xf32>
    %138 = arith.addf %136, %137 : vector<8x128xf32>
    %139 = math.tanh %138 : vector<8x128xf32>
    %140 = vector.extract_strided_slice %85 {offsets = [104, 0], sizes = [8, 128], strides = [1, 1]} : vector<128x128xf32> to vector<8x128xf32>
    %cst_52 = arith.constant dense<0.000000e+00> : vector<8x128xf32>
    %141 = tpu.matmul %139, %81, %cst_52 {dimension_numbers = #tpu.dot_dimension_numbers<[1], [0], [0], [1], [0, 0, 1, 1], [], []>} : vector<8x128xf32>, vector<128x128xf32>, vector<8x128xf32> -> vector<8x128xf32>
    %142 = arith.addf %140, %141 : vector<8x128xf32>
    %143 = math.tanh %142 : vector<8x128xf32>
    %144 = vector.extract_strided_slice %85 {offsets = [112, 0], sizes = [8, 128], strides = [1, 1]} : vector<128x128xf32> to vector<8x128xf32>
    %cst_53 = arith.constant dense<0.000000e+00> : vector<8x128xf32>
    %145 = tpu.matmul %143, %81, %cst_53 {dimension_numbers = #tpu.dot_dimension_numbers<[1], [0], [0], [1], [0, 0, 1, 1], [], []>} : vector<8x128xf32>, vector<128x128xf32>, vector<8x128xf32> -> vector<8x128xf32>
    %146 = arith.addf %144, %145 : vector<8x128xf32>
    %147 = math.tanh %146 : vector<8x128xf32>
    %148 = vector.extract_strided_slice %85 {offsets = [120, 0], sizes = [8, 128], strides = [1, 1]} : vector<128x128xf32> to vector<8x128xf32>
    %cst_54 = arith.constant dense<0.000000e+00> : vector<8x128xf32>
    %149 = tpu.matmul %147, %81, %cst_54 {dimension_numbers = #tpu.dot_dimension_numbers<[1], [0], [0], [1], [0, 0, 1, 1], [], []>} : vector<8x128xf32>, vector<128x128xf32>, vector<8x128xf32> -> vector<8x128xf32>
    %150 = arith.addf %148, %149 : vector<8x128xf32>
    %151 = math.tanh %150 : vector<8x128xf32>
    %c1_55 = arith.constant 1 : index
    %c0_56 = arith.constant 0 : index
    %c0_57 = arith.constant 0 : index
    %152 = vector.load %arg12[%c1_55, %c0_56, %c0_57] : memref<2x8x128xf32, #tpu.memory_space<vmem>>, vector<1x8x128xf32>
    %153 = vector.shape_cast %152 : vector<1x8x128xf32> to vector<8x128xf32>
    %154 = vector.shape_cast %151 : vector<8x128xf32> to vector<1x8x128xf32>
    tpu.vector_store %arg12[%c1_55, %c0_56, %c0_57], %154 {strides = array<i32>} : memref<2x8x128xf32, #tpu.memory_space<vmem>>, vector<1x8x128xf32>,
    %155 = tpu.concatenate %91, %95, %99, %103, %107, %111, %115, %119, %123, %127, %131, %135, %139, %143, %147, %151 in 0 : vector<8x128xf32>, vector<8x128xf32>, vector<8x128xf32>, vector<8x128xf32>, vector<8x128xf32>, vector<8x128xf32>, vector<8x128xf32>, vector<8x128xf32>, vector<8x128xf32>, vector<8x128xf32>, vector<8x128xf32>, vector<8x128xf32>, vector<8x128xf32>, vector<8x128xf32>, vector<8x128xf32>, vector<8x128xf32> -> vector<128x128xf32>
    %c0_58 = arith.constant 0 : index
    %c0_59 = arith.constant 0 : index
    %156 = vector.load %arg9[%c0_58, %c0_59] : memref<128x256xf32, #tpu.memory_space<vmem>>, vector<128x256xf32>
    %cst_60 = arith.constant dense<0.000000e+00> : vector<128x256xf32>
    %157 = tpu.matmul %155, %156, %cst_60 {dimension_numbers = #tpu.dot_dimension_numbers<[1], [0], [0], [1], [0, 0, 1, 1], [], []>} : vector<128x128xf32>, vector<128x256xf32>, vector<128x256xf32> -> vector<128x256xf32>
    %c0_61 = arith.constant 0 : index
    %c0_62 = arith.constant 0 : index
    %158 = vector.load %arg10[%c0_61, %c0_62] : memref<1x256xf32, #tpu.memory_space<vmem>>, vector<1x256xf32>
    %159 = vector.broadcast %158 : vector<1x256xf32> to vector<128x256xf32>
    %160 = arith.addf %157, %159 : vector<128x256xf32>
    %c0_63 = arith.constant 0 : index
    %c0_64 = arith.constant 0 : index
    %161 = vector.load %arg11[%c0_63, %c0_64] : memref<128x256xf32, #tpu.memory_space<vmem>>, vector<128x256xf32>
    tpu.vector_store %arg11[%c0_63, %c0_64], %160 {strides = array<i32>} : memref<128x256xf32, #tpu.memory_space<vmem>>, vector<128x256xf32>,
    return
  }
  func.func @transform_0(%arg0: i32) -> (i32, i32) {
    %c0_i32 = arith.constant 0 : i32
    %c0_i32_0 = arith.constant 0 : i32
    return %arg0, %c0_i32 : i32, i32
  }
  func.func @transform_1(%arg0: i32) -> (i32, i32, i32) {
    %c0_i32 = arith.constant 0 : i32
    %c0_i32_0 = arith.constant 0 : i32
    %c0_i32_1 = arith.constant 0 : i32
    %c0_i32_2 = arith.constant 0 : i32
    return %c0_i32, %c0_i32_0, %c0_i32_1 : i32, i32, i32
  }
  func.func @transform_2(%arg0: i32) -> (i32, i32) {
    %c0_i32 = arith.constant 0 : i32
    %c0_i32_0 = arith.constant 0 : i32
    %c0_i32_1 = arith.constant 0 : i32
    return %c0_i32, %c0_i32_0 : i32, i32
  }
  func.func @transform_3(%arg0: i32) -> (i32, i32) {
    %c0_i32 = arith.constant 0 : i32
    %c0_i32_0 = arith.constant 0 : i32
    %c0_i32_1 = arith.constant 0 : i32
    return %c0_i32, %c0_i32_0 : i32, i32
  }
  func.func @transform_4(%arg0: i32) -> (i32, i32) {
    %c0_i32 = arith.constant 0 : i32
    %c0_i32_0 = arith.constant 0 : i32
    %c0_i32_1 = arith.constant 0 : i32
    return %c0_i32, %c0_i32_0 : i32, i32
  }
  func.func @transform_5(%arg0: i32) -> (i32, i32) {
    %c0_i32 = arith.constant 0 : i32
    %c0_i32_0 = arith.constant 0 : i32
    %c0_i32_1 = arith.constant 0 : i32
    return %c0_i32, %c0_i32_0 : i32, i32
  }
  func.func @transform_6(%arg0: i32) -> (i32, i32) {
    %c0_i32 = arith.constant 0 : i32
    %c0_i32_0 = arith.constant 0 : i32
    %c0_i32_1 = arith.constant 0 : i32
    return %c0_i32, %c0_i32_0 : i32, i32
  }
  func.func @transform_7(%arg0: i32) -> (i32, i32) {
    %c0_i32 = arith.constant 0 : i32
    %c0_i32_0 = arith.constant 0 : i32
    %c0_i32_1 = arith.constant 0 : i32
    return %c0_i32, %c0_i32_0 : i32, i32
  }
  func.func @transform_8(%arg0: i32) -> (i32, i32) {
    %c0_i32 = arith.constant 0 : i32
    %c0_i32_0 = arith.constant 0 : i32
    %c0_i32_1 = arith.constant 0 : i32
    return %c0_i32, %c0_i32_0 : i32, i32
  }
  func.func @transform_9(%arg0: i32) -> (i32, i32) {
    %c0_i32 = arith.constant 0 : i32
    %c0_i32_0 = arith.constant 0 : i32
    %c0_i32_1 = arith.constant 0 : i32
    return %c0_i32, %c0_i32_0 : i32, i32
  }
  func.func @transform_10(%arg0: i32) -> (i32, i32) {
    %c0_i32 = arith.constant 0 : i32
    %c0_i32_0 = arith.constant 0 : i32
    return %arg0, %c0_i32 : i32, i32
  }
  func.func @transform_11(%arg0: i32) -> (i32, i32, i32) {
    %c0_i32 = arith.constant 0 : i32
    %c0_i32_0 = arith.constant 0 : i32
    %c0_i32_1 = arith.constant 0 : i32
    %c0_i32_2 = arith.constant 0 : i32
    return %c0_i32, %c0_i32_0, %c0_i32_1 : i32, i32, i32
  }
}

</mosaic_0001>

<bundles_post_ra>
// kernel: lm_model_rnn_forward.1
= control target key start
LH: loop header
LB: loop body
LE: loop exit
PB: predicated region body
PF: predicated region fallthrough
CT: control target
= control target key end

     0   :  { %17 = vsyncpa [#allocation3], 0  ;;  %v5000_v2 = vmov 0.0   ;;  %vm5001_vm0 = vmmov 0   ;;  %s7004_s0 = inlined_call_operand.vmem [shape: f32[128,128], index: 0, kind: input, shape index: {}]   ;;  %s7005_s1 = inlined_call_operand.vmem [shape: f32[2,8,128], index: 1, kind: input, shape index: {}]   ;;  %s7006_s2 = inlined_call_operand.vmem [shape: f32[128,128], index: 2, kind: input, shape index: {}]   ;;  %s7007_s3 = inlined_call_operand.vmem [shape: f32[128,128], index: 3, kind: input, shape index: {}]   ;;  %s7008_s4 = inlined_call_operand.vmem [shape: f32[1,128], index: 4, kind: input, shape index: {}]   ;;  %s7009_s5 = inlined_call_operand.vmem [shape: f32[128,128], index: 5, kind: input, shape index: {}]   ;;  %s7010_s6 = inlined_call_operand.vmem [shape: f32[128,128], index: 6, kind: input, shape index: {}]   ;;  %s7011_s7 = inlined_call_operand.vmem [shape: f32[1,128], index: 7, kind: input, shape index: {}]   ;;  %s7012_s8 = inlined_call_operand.vmem [shape: f32[128,256], index: 8, kind: input, shape index: {}]   ;;  %s7013_s9 = inlined_call_operand.vmem [shape: f32[1,256], index: 9, kind: input, shape index: {}]   ;;  %s7014_s10 = inlined_call_operand.hbm [shape: f32[128,256], index: 10, kind: output, shape index: {0}]   ;;  %s7015_s11 = inlined_call_operand.hbm [shape: f32[2,8,128], index: 11, kind: output, shape index: {1}]  }
   0x1   :  { %v78_v0 = vld [vmem:[%s7006_s2 + $0x78] sm:$0xff]  ;;  %v77_v1 = vld [vmem:[%s7006_s2 + $0x70] sm:$0xff]  ;;  %3710 = vmatprep.subr.mxu0 %v5000_v2  ;;  %v76_v3 = vld [vmem:[%s7006_s2 + $0x68] sm:$0xff]  ;;  %3742 = vmatprep.mubr.msk.f32.mxu0 %vm5001_vm0, %v5000_v2 }
   0x2   :  { %3619 = vmatprep.subr.mxu1 %v78_v0  ;;  %v75_v4 = vld [vmem:[%s7006_s2 + $0x60] sm:$0xff]  ;;  %v74_v6 = vld [vmem:[%s7006_s2 + $0x58] sm:$0xff]  ;;  %v73_v8 = vld [vmem:[%s7006_s2 + $0x50] sm:$0xff] }
   0x3   :  { %3620 = vmatpush3.msra.mxu1 %v78_v0  ;;  %v47_v5 = vld [vmem:[%s7004_s0] sm:$0xff]  ;;  %v5092_v7 = vld [vmem:[%s7007_s3 + $0x78] sm:$0xff]  ;;  %v5101_v9 = vld [vmem:[%s7007_s3 + $0x70] sm:$0xff] }
   0x4   :  { %3621 = vmatprep.subr.mxu1 %v77_v1  ;;  %3651 = vmatprep.mubr.f32.mxu1 %v47_v5  ;;  %v72_v10 = vld [vmem:[%s7006_s2 + $0x48] sm:$0xff]  ;;  %v71_v12 = vld [vmem:[%s7006_s2 + $0x40] sm:$0xff]  ;;  %v70_v14 = vld [vmem:[%s7006_s2 + $0x38] sm:$0xff] }
   0x5   :  { %3622 = vmatpush3.msra.mxu1 %v77_v1  ;;  %3711 = vmatpush3.msra.mxu0 %v5092_v7  ;;  %v5111_v11 = vld [vmem:[%s7007_s3 + $0x68] sm:$0xff]  ;;  %v5121_v13 = vld [vmem:[%s7007_s3 + $0x60] sm:$0xff]  ;;  %v5131_v15 = vld [vmem:[%s7007_s3 + $0x58] sm:$0xff] }
   0x6   :  { %3623 = vmatprep.subr.mxu1 %v76_v3  ;;  %3712 = vmatprep.subr.mxu0 %v5000_v2  ;;  %v69_v16 = vld [vmem:[%s7006_s2 + $0x30] sm:$0xff] }
   0x7   :  { %3624 = vmatpush3.msra.mxu1 %v76_v3  ;;  %3713 = vmatpush3.msra.mxu0 %v5101_v9  ;;  %v5141_v17 = vld [vmem:[%s7007_s3 + $0x50] sm:$0xff] }
   0x8   :  { %3625 = vmatprep.subr.mxu1 %v75_v4  ;;  %3714 = vmatprep.subr.mxu0 %v5000_v2 }
   0x9   :  { %3626 = vmatpush3.msra.mxu1 %v75_v4  ;;  %3715 = vmatpush3.msra.mxu0 %v5111_v11 }
   0xa   :  { %3627 = vmatprep.subr.mxu1 %v74_v6  ;;  %3716 = vmatprep.subr.mxu0 %v5000_v2 }
   0xb   :  { %3628 = vmatpush3.msra.mxu1 %v74_v6  ;;  %3717 = vmatpush3.msra.mxu0 %v5121_v13 }
   0xc   :  { %3629 = vmatprep.subr.mxu1 %v73_v8  ;;  %3718 = vmatprep.subr.mxu0 %v5000_v2 }
   0xd   :  { %3630 = vmatpush3.msra.mxu1 %v73_v8  ;;  %3719 = vmatpush3.msra.mxu0 %v5131_v15 }
   0xe   :  { %3631 = vmatprep.subr.mxu1 %v72_v10  ;;  %3720 = vmatprep.subr.mxu0 %v5000_v2 }
   0xf   :  { %3632 = vmatpush3.msra.mxu1 %v72_v10 }
  0x10   :  { %3633 = vmatprep.subr.mxu1 %v71_v12 }
  0x11   :  { %3634 = vmatpush3.msra.mxu1 %v71_v12 }
  0x12   :  { %18 = vsyncpa [#allocation5], 0  ;;  %3635 = vmatprep.subr.mxu1 %v70_v14  ;;  %3721 = vmatpush3.msra.mxu0 %v5141_v17  ;;  %v68_v18 = vld [vmem:[%s7006_s2 + $0x28] sm:$0xff]  ;;  %v67_v20 = vld [vmem:[%s7006_s2 + $0x20] sm:$0xff] }
  0x13   :  { %3636 = vmatpush3.msra.mxu1 %v70_v14  ;;  %v5151_v19 = vld [vmem:[%s7007_s3 + $0x48] sm:$0xff]  ;;  %3722 = vmatprep.subr.mxu0 %v5000_v2  ;;  %v5161_v21 = vld [vmem:[%s7007_s3 + $0x40] sm:$0xff]  ;;  %v66_v22 = vld [vmem:[%s7006_s2 + $0x18] sm:$0xff] }
  0x14   :  { %3637 = vmatprep.subr.mxu1 %v69_v16  ;;  %3723 = vmatpush3.msra.mxu0 %v5151_v19  ;;  %v5171_v23 = vld [vmem:[%s7007_s3 + $0x38] sm:$0xff]  ;;  %v65_v24 = vld [vmem:[%s7006_s2 + $0x10] sm:$0xff]  ;;  %v64_v26 = vld [vmem:[%s7006_s2 + $0x8] sm:$0xff] }
  0x15   :  { %3638 = vmatpush3.msra.mxu1 %v69_v16  ;;  %3724 = vmatprep.subr.mxu0 %v5000_v2  ;;  %v5181_v25 = vld [vmem:[%s7007_s3 + $0x30] sm:$0xff]  ;;  %v5191_v27 = vld [vmem:[%s7007_s3 + $0x28] sm:$0xff]  ;;  %v63_v28 = vld [vmem:[%s7006_s2] sm:$0xff] }
  0x16   :  { %3639 = vmatprep.subr.mxu1 %v68_v18  ;;  %3725 = vmatpush3.msra.mxu0 %v5161_v21  ;;  %v5201_v29 = vld [vmem:[%s7007_s3 + $0x20] sm:$0xff]  ;;  %v48_v30 = vld [vmem:[%s7004_s0 + $0x8] sm:$0xff]  ;;  %v5211_v31 = vld [vmem:[%s7007_s3 + $0x18] sm:$0xff] }
  0x17   :  { %3640 = vmatpush3.msra.mxu1 %v68_v18  ;;  %3726 = vmatprep.subr.mxu0 %v5000_v2  ;;  %v49_v32 = vld [vmem:[%s7004_s0 + $0x10] sm:$0xff]  ;;  %v50_v33 = vld [vmem:[%s7004_s0 + $0x18] sm:$0xff]  ;;  %v51_v35 = vld [vmem:[%s7004_s0 + $0x20] sm:$0xff] }
  0x18   :  { %3641 = vmatprep.subr.mxu1 %v67_v20  ;;  %3727 = vmatpush3.msra.mxu0 %v5171_v23  ;;  %v5227_v34 = vld [vmem:[%s7007_s3 + $0x10] sm:$0xff]  ;;  %v52_v36 = vld [vmem:[%s7004_s0 + $0x28] sm:$0xff]  ;;  %v54_v39 = vld [vmem:[%s7004_s0 + $0x38] sm:$0xff] }
  0x19   :  { %3642 = vmatpush3.msra.mxu1 %v67_v20  ;;  %3728 = vmatprep.subr.mxu0 %v5000_v2  ;;  %v5244_v37 = vld [vmem:[%s7007_s3 + $0x8] sm:$0xff]  ;;  %v53_v38 = vld [vmem:[%s7004_s0 + $0x30] sm:$0xff]  ;;  %v5261_v40 = vld [vmem:[%s7007_s3] sm:$0xff] }
  0x1a   :  { %3643 = vmatprep.subr.mxu1 %v66_v22  ;;  %3729 = vmatpush3.msra.mxu0 %v5181_v25  ;;  %v55_v41 = vld [vmem:[%s7004_s0 + $0x40] sm:$0xff]  ;;  %v56_v42 = vld [vmem:[%s7004_s0 + $0x48] sm:$0xff]  ;;  %v57_v43 = vld [vmem:[%s7004_s0 + $0x50] sm:$0xff] }
  0x1b   :  { %3644 = vmatpush3.msra.mxu1 %v66_v22  ;;  %3730 = vmatprep.subr.mxu0 %v5000_v2  ;;  %v58_v44 = vld [vmem:[%s7004_s0 + $0x58] sm:$0xff]  ;;  %v59_v45 = vld [vmem:[%s7004_s0 + $0x60] sm:$0xff]  ;;  %v60_v46 = vld [vmem:[%s7004_s0 + $0x68] sm:$0xff] }
  0x1c   :  { %3645 = vmatprep.subr.mxu1 %v65_v24  ;;  %3731 = vmatpush3.msra.mxu0 %v5191_v27  ;;  %v61_v47 = vld [vmem:[%s7004_s0 + $0x70] sm:$0xff]  ;;  %v62_v48 = vld [vmem:[%s7004_s0 + $0x78] sm:$0xff]  ;;  %v43_v49 = vld [vmem:[%s7005_s1] sm:$0xff] }
  0x1d   :  { %3646 = vmatpush3.msra.mxu1 %v65_v24  ;;  %3732 = vmatprep.subr.mxu0 %v5000_v2  ;;  %v3009_v50 = vld [vmem:[%s7008_s4] ss:$0 sm:$0xff] }
  0x1e   :  { %3647 = vmatprep.subr.mxu1 %v64_v26  ;;  %3733 = vmatpush3.msra.mxu0 %v5201_v29 }
  0x1f   :  { %3648 = vmatpush3.msra.mxu1 %v64_v26  ;;  %3734 = vmatprep.subr.mxu0 %v5000_v2 }
  0x20   :  { %3649 = vmatprep.subr.mxu1 %v63_v28  ;;  %3735 = vmatpush3.msra.mxu0 %v5211_v31 }
  0x21   :  { %3650 = vmatpush3.msra.mxu1 %v63_v28  ;;  %3736 = vmatprep.subr.mxu0 %v5000_v2 }
  0x22   :  { %3652 = vmatmul.mubr.f32.vlgmr.msra.gmra.mxu1 %v48_v30  ;;  %3675 = vmatprep.subr.mxu1 %v5000_v2 }
  0x23   :  { %3676 = vmatpush3.msra.mxu1 %v5092_v7  ;;  %3654 = vmatprep.mubr.f32.mxu1 %v49_v32 }
  0x24   :  { %3677 = vmatprep.subr.mxu1 %v5000_v2  ;;  %3737 = vmatpush3.msra.mxu0 %v5227_v34 }
  0x25   :  { %3678 = vmatpush3.msra.mxu1 %v5101_v9  ;;  %3738 = vmatprep.subr.mxu0 %v5000_v2 }
  0x26   :  { %3655 = vmatmul.mubr.f32.gmra.mxu1 %v50_v33  ;;  %3679 = vmatprep.subr.mxu1 %v5000_v2 }
  0x27   :  { %3680 = vmatpush3.msra.mxu1 %v5111_v11  ;;  %3657 = vmatprep.mubr.f32.mxu1 %v51_v35 }
  0x28   :  { %3681 = vmatprep.subr.mxu1 %v5000_v2  ;;  %3739 = vmatpush3.msra.mxu0 %v5244_v37 }
  0x29   :  { %3682 = vmatpush3.msra.mxu1 %v5121_v13  ;;  %3740 = vmatprep.subr.mxu0 %v5000_v2 }
  0x2a   :  { %3658 = vmatmul.mubr.f32.gmra.mxu1 %v52_v36  ;;  %3683 = vmatprep.subr.mxu1 %v5000_v2 }
  0x2b   :  { %3684 = vmatpush3.msra.mxu1 %v5131_v15  ;;  %3660 = vmatprep.mubr.f32.mxu1 %v53_v38 }
  0x2c   :  { %3685 = vmatprep.subr.mxu1 %v5000_v2  ;;  %3741 = vmatpush3.msra.mxu0 %v5261_v40 }
  0x2d   :  { %3686 = vmatpush3.msra.mxu1 %v5141_v17  ;;  %3780 = vmatprep.subr.mxu0 %v5000_v2 }
  0x2e   :  { %3661 = vmatmul.mubr.f32.gmra.mxu1 %v54_v39  ;;  %3687 = vmatprep.subr.mxu1 %v5000_v2 }
  0x2f   :  { %3688 = vmatpush3.msra.mxu1 %v5151_v19  ;;  %3663 = vmatprep.mubr.f32.mxu1 %v55_v41 }
  0x30   :  { %3689 = vmatprep.subr.mxu1 %v5000_v2 }
  0x31   :  { %3690 = vmatpush3.msra.mxu1 %v5161_v21 }
  0x32   :  { %3664 = vmatmul.mubr.f32.gmra.mxu1 %v56_v42  ;;  %3691 = vmatprep.subr.mxu1 %v5000_v2 }
  0x33   :  { %3692 = vmatpush3.msra.mxu1 %v5171_v23  ;;  %3666 = vmatprep.mubr.f32.mxu1 %v57_v43 }
  0x34   :  { %3693 = vmatprep.subr.mxu1 %v5000_v2 }
  0x35   :  { %3694 = vmatpush3.msra.mxu1 %v5181_v25 }
  0x36   :  { %3667 = vmatmul.mubr.f32.gmra.mxu1 %v58_v44  ;;  %3695 = vmatprep.subr.mxu1 %v5000_v2 }
  0x37   :  { %3696 = vmatpush3.msra.mxu1 %v5191_v27  ;;  %3669 = vmatprep.mubr.f32.mxu1 %v59_v45 }
  0x38   :  { %3697 = vmatprep.subr.mxu1 %v5000_v2 }
  0x39   :  { %3698 = vmatpush3.msra.mxu1 %v5201_v29 }
  0x3a   :  { %3670 = vmatmul.mubr.f32.gmra.mxu1 %v60_v46  ;;  %3699 = vmatprep.subr.mxu1 %v5000_v2 }
  0x3b   :  { %3700 = vmatpush3.msra.mxu1 %v5211_v31  ;;  %3672 = vmatprep.mubr.f32.mxu1 %v61_v47 }
  0x3c   :  { %3701 = vmatprep.subr.mxu1 %v5000_v2 }
  0x3d   :  { %3702 = vmatpush3.msra.mxu1 %v5227_v34 }
  0x3e   :  { %3673 = vmatmul.mubr.f32.gmra.mxu1 %v62_v48  ;;  %3703 = vmatprep.subr.mxu1 %v5000_v2 }
  0x3f   :  { %3704 = vmatpush3.msra.mxu1 %v5244_v37  ;;  %3707 = vmatprep.mubr.msk.f32.mxu1 %vm5001_vm0, %v5000_v2 }
  0x40   :  { %3705 = vmatprep.subr.mxu1 %v5000_v2 }
  0x41   :  { %3706 = vmatpush3.msra.mxu1 %v5261_v40 }
  0x42   :  { %3708 = vmatmul.mubr.f32.vlgmr.msra.gmra.mxu1 %v43_v49  ;;  %3745 = vmatprep.subr.mxu1 %v5000_v2 }
  0x43   :  { %3746 = vmatpush3.msra.mxu1 %v5092_v7  ;;  %3777 = vmatprep.mubr.msk.f32.mxu1 %vm5001_vm0, %v5000_v2 }
  0x44   :  { %3747 = vmatprep.subr.mxu1 %v5000_v2 }
  0x45   :  { %3748 = vmatpush3.msra.mxu1 %v5101_v9 }
  0x46   :  { %3749 = vmatprep.subr.mxu1 %v5000_v2 }
  0x47   :  { %3750 = vmatpush3.msra.mxu1 %v5111_v11 }
  0x48   :  { %3751 = vmatprep.subr.mxu1 %v5000_v2 }
  0x49   :  { %3752 = vmatpush3.msra.mxu1 %v5121_v13 }
  0x4a   :  { %3753 = vmatprep.subr.mxu1 %v5000_v2 }
  0x4b   :  { %3754 = vmatpush3.msra.mxu1 %v5131_v15 }
  0x4c   :  { %3755 = vmatprep.subr.mxu1 %v5000_v2 }
  0x4d   :  { %3756 = vmatpush3.msra.mxu1 %v5141_v17 }
  0x4e   :  { %3757 = vmatprep.subr.mxu1 %v5000_v2 }
  0x4f   :  { %3758 = vmatpush3.msra.mxu1 %v5151_v19 }
  0x50   :  { %3759 = vmatprep.subr.mxu1 %v5000_v2 }
  0x51   :  { %3760 = vmatpush3.msra.mxu1 %v5161_v21 }
  0x52   :  { %3761 = vmatprep.subr.mxu1 %v5000_v2 }
  0x53   :  { %3762 = vmatpush3.msra.mxu1 %v5171_v23 }
  0x54   :  { %3763 = vmatprep.subr.mxu1 %v5000_v2 }
  0x55   :  { %3764 = vmatpush3.msra.mxu1 %v5181_v25 }
  0x56   :  { %3765 = vmatprep.subr.mxu1 %v5000_v2 }
  0x57   :  { %3766 = vmatpush3.msra.mxu1 %v5191_v27 }
  0x58   :  { %3767 = vmatprep.subr.mxu1 %v5000_v2 }
  0x59   :  { %3768 = vmatpush3.msra.mxu1 %v5201_v29 }
  0x5a   :  { %3769 = vmatprep.subr.mxu1 %v5000_v2 }
  0x5b   :  { %3770 = vmatpush3.msra.mxu1 %v5211_v31 }
  0x5c   :  { %3771 = vmatprep.subr.mxu1 %v5000_v2 }
  0x5d   :  { %3772 = vmatpush3.msra.mxu1 %v5227_v34 }
  0x5e   :  { %3773 = vmatprep.subr.mxu1 %v5000_v2 }
  0x5f   :  { %3774 = vmatpush3.msra.mxu1 %v5244_v37 }
  0x60   :  { %3775 = vmatprep.subr.mxu1 %v5000_v2 }
  0x61   :  { %3776 = vmatpush3.msra.mxu1 %v5261_v40 }
  0x62   :  { %3815 = vmatprep.subr.mxu1 %v5000_v2 }
  0xe2   :  { %v3653_v51 = vpop.f32.mrf.mxu1 }
  0xe3   :  { %v5354_v52 = vadd.f32 %v3653_v51, %v3009_v50 }
  0xe4   :  { %v168_v53 = vpop.f32.mrf.mxu1 }
  0xe5   :  { %v169_v30 = vadd.f32 %v3009_v50, %v168_v53 }
  0xe6   :  { %v3656_v54 = vpop.f32.mrf.mxu1 }
  0xe7   :  { %v5356_v55 = vadd.f32 %v3656_v54, %v3009_v50 }
  0xe8   :  { %v178_v56 = vpop.f32.mrf.mxu1 }
  0xe9   :  { %v5358_v57 = vadd.f32 %v3009_v50, %v178_v56 }
  0xea   :  { %v3659_v58 = vpop.f32.mrf.mxu1 }
  0xeb   :  { %v5360_v59 = vadd.f32 %v3659_v58, %v3009_v50 }
  0xec   :  { %v188_v60 = vpop.f32.mrf.mxu1 }
  0xed   :  { %v5362_v61 = vadd.f32 %v3009_v50, %v188_v60 }
  0xee   :  { %v3662_v62 = vpop.f32.mrf.mxu1 }
  0xef   :  { %v5364_v63 = vadd.f32 %v3662_v62, %v3009_v50 }
  0xf0   :  { %v198_v0 = vpop.f32.mrf.mxu1 }
  0xf1   :  { %v5366_v1 = vadd.f32 %v3009_v50, %v198_v0 }
  0xf2   :  { %v3665_v3 = vpop.f32.mrf.mxu1 }
  0xf3   :  { %v5368_v4 = vadd.f32 %v3665_v3, %v3009_v50 }
  0xf4   :  { %v208_v5 = vpop.f32.mrf.mxu1 }
  0xf5   :  { %v5370_v6 = vadd.f32 %v3009_v50, %v208_v5 }
  0xf6   :  { %v3668_v8 = vpop.f32.mrf.mxu1 }
  0xf7   :  { %v5372_v10 = vadd.f32 %v3668_v8, %v3009_v50 }
  0xf8   :  { %v218_v12 = vpop.f32.mrf.mxu1 }
  0xf9   :  { %v5374_v14 = vadd.f32 %v3009_v50, %v218_v12  ;;  %v5731_v12 = vld [vmem:[%s7007_s3 + $0x50] sm:$0xff] }
  0xfa   :  { %v3671_v16 = vpop.f32.mrf.mxu1 }
  0xfb   :  { %v5376_v18 = vadd.f32 %v3671_v16, %v3009_v50  ;;  %v5738_v16 = vld [vmem:[%s7007_s3 + $0x48] sm:$0xff] }
  0xfc   :  { %v228_v20 = vpop.f32.mrf.mxu1 }
  0xfd   :  { %v5378_v22 = vadd.f32 %v3009_v50, %v228_v20  ;;  %v5811_v20 = vld [vmem:[%s7007_s3 + $0x20] sm:$0xff] }
  0xfe   :  { %v3674_v24 = vpop.f32.mrf.mxu1 }
  0xff   :  { %v5380_v26 = vadd.f32 %v3674_v24, %v3009_v50  ;;  %v5818_v24 = vld [vmem:[%s7007_s3 + $0x18] sm:$0xff] }
 0x100   :  { %v238_v28 = vpop.f32.mrf.mxu1 }
 0x101   :  { %v5382_v32 = vadd.f32 %v3009_v50, %v238_v28  ;;  %v5825_v28 = vld [vmem:[%s7007_s3 + $0x10] sm:$0xff] }
 0x102   :  { %v314_v33 = vpop.f32.mrf.mxu1 }
 0x103   :  { %v318_v35 = vadd.f32 %v314_v33, %v169_v30 }
 0x104   :  { %v3709_v36 = vpop.f32.mrf.mxu1 }
 0x105   :  { %4859 = vtanh.f32 %v318_v35 }
 0x112   :  { %v5384_v38 = vpop.eup %4859 }
 0x113   :  { %3743 = vmatmul.mubr.f32.vlgmr.msra.gmra.mxu0 %v5384_v38 }
 0x114   :  { %3781 = vmatpush3.msra.mxu0 %v5092_v7  ;;  %3812 = vmatprep.mubr.msk.f32.mxu0 %vm5001_vm0, %v5000_v2 }
 0x115   :  { %3782 = vmatprep.subr.mxu0 %v5000_v2 }
 0x116   :  { %3783 = vmatpush3.msra.mxu0 %v5101_v9 }
 0x117   :  { %3784 = vmatprep.subr.mxu0 %v5000_v2 }
 0x118   :  { %3785 = vmatpush3.msra.mxu0 %v5111_v11 }
 0x119   :  { %3786 = vmatprep.subr.mxu0 %v5000_v2 }
 0x11a   :  { %3787 = vmatpush3.msra.mxu0 %v5121_v13 }
 0x11b   :  { %3788 = vmatprep.subr.mxu0 %v5000_v2 }
 0x11c   :  { %3789 = vmatpush3.msra.mxu0 %v5131_v15 }
 0x11d   :  { %3790 = vmatprep.subr.mxu0 %v5000_v2 }
 0x11e   :  { %3791 = vmatpush3.msra.mxu0 %v5141_v17 }
 0x11f   :  { %3792 = vmatprep.subr.mxu0 %v5000_v2 }
 0x120   :  { %3793 = vmatpush3.msra.mxu0 %v5151_v19 }
 0x121   :  { %3794 = vmatprep.subr.mxu0 %v5000_v2 }
 0x122   :  { %3795 = vmatpush3.msra.mxu0 %v5161_v21 }
 0x123   :  { %3796 = vmatprep.subr.mxu0 %v5000_v2 }
 0x124   :  { %3797 = vmatpush3.msra.mxu0 %v5171_v23 }
 0x125   :  { %3798 = vmatprep.subr.mxu0 %v5000_v2 }
 0x126   :  { %3799 = vmatpush3.msra.mxu0 %v5181_v25 }
 0x127   :  { %3800 = vmatprep.subr.mxu0 %v5000_v2 }
 0x128   :  { %3801 = vmatpush3.msra.mxu0 %v5191_v27 }
 0x129   :  { %3802 = vmatprep.subr.mxu0 %v5000_v2 }
 0x12a   :  { %3803 = vmatpush3.msra.mxu0 %v5201_v29 }
 0x12b   :  { %3804 = vmatprep.subr.mxu0 %v5000_v2 }
 0x12c   :  { %3805 = vmatpush3.msra.mxu0 %v5211_v31 }
 0x12d   :  { %3806 = vmatprep.subr.mxu0 %v5000_v2 }
 0x12e   :  { %3807 = vmatpush3.msra.mxu0 %v5227_v34 }
 0x12f   :  { %3808 = vmatprep.subr.mxu0 %v5000_v2 }
 0x130   :  { %3809 = vmatpush3.msra.mxu0 %v5244_v37 }
 0x131   :  { %3810 = vmatprep.subr.mxu0 %v5000_v2 }
 0x132   :  { %3811 = vmatpush3.msra.mxu0 %v5261_v40 }
 0x133   :  { %3850 = vmatprep.subr.mxu0 %v5000_v2 }
 0x1d3   :  { %v386_v39 = vpop.f32.mrf.mxu0 }
 0x1d4   :  { %v390_v41 = vadd.f32 %v386_v39, %v5354_v52 }
 0x1d5   :  { %v3744_v42 = vpop.f32.mrf.mxu0 }
 0x1d6   :  { %4861 = vtanh.f32 %v390_v41 }
 0x1e3   :  { %v5422_v43 = vpop.eup %4861 }
 0x1e4   :  { %3778 = vmatmul.mubr.f32.vlgmr.msra.gmra.mxu1 %v5422_v43 }
 0x1e5   :  { %3816 = vmatpush3.msra.mxu1 %v5092_v7  ;;  %3847 = vmatprep.mubr.msk.f32.mxu1 %vm5001_vm0, %v5000_v2 }
 0x1e6   :  { %3817 = vmatprep.subr.mxu1 %v5000_v2 }
 0x1e7   :  { %3818 = vmatpush3.msra.mxu1 %v5101_v9 }
 0x1e8   :  { %3819 = vmatprep.subr.mxu1 %v5000_v2 }
 0x1e9   :  { %3820 = vmatpush3.msra.mxu1 %v5111_v11 }
 0x1ea   :  { %3821 = vmatprep.subr.mxu1 %v5000_v2 }
 0x1eb   :  { %3822 = vmatpush3.msra.mxu1 %v5121_v13 }
 0x1ec   :  { %3823 = vmatprep.subr.mxu1 %v5000_v2 }
 0x1ed   :  { %3824 = vmatpush3.msra.mxu1 %v5131_v15 }
 0x1ee   :  { %3825 = vmatprep.subr.mxu1 %v5000_v2 }
 0x1ef   :  { %3826 = vmatpush3.msra.mxu1 %v5141_v17 }
 0x1f0   :  { %3827 = vmatprep.subr.mxu1 %v5000_v2 }
 0x1f1   :  { %3828 = vmatpush3.msra.mxu1 %v5151_v19 }
 0x1f2   :  { %3829 = vmatprep.subr.mxu1 %v5000_v2 }
 0x1f3   :  { %3830 = vmatpush3.msra.mxu1 %v5161_v21 }
 0x1f4   :  { %3831 = vmatprep.subr.mxu1 %v5000_v2 }
 0x1f5   :  { %3832 = vmatpush3.msra.mxu1 %v5171_v23 }
 0x1f6   :  { %3833 = vmatprep.subr.mxu1 %v5000_v2 }
 0x1f7   :  { %3834 = vmatpush3.msra.mxu1 %v5181_v25 }
 0x1f8   :  { %3835 = vmatprep.subr.mxu1 %v5000_v2 }
 0x1f9   :  { %3836 = vmatpush3.msra.mxu1 %v5191_v27 }
 0x1fa   :  { %3837 = vmatprep.subr.mxu1 %v5000_v2 }
 0x1fb   :  { %3838 = vmatpush3.msra.mxu1 %v5201_v29 }
 0x1fc   :  { %3839 = vmatprep.subr.mxu1 %v5000_v2 }
 0x1fd   :  { %3840 = vmatpush3.msra.mxu1 %v5211_v31 }
 0x1fe   :  { %3841 = vmatprep.subr.mxu1 %v5000_v2 }
 0x1ff   :  { %3842 = vmatpush3.msra.mxu1 %v5227_v34 }
 0x200   :  { %3843 = vmatprep.subr.mxu1 %v5000_v2 }
 0x201   :  { %3844 = vmatpush3.msra.mxu1 %v5244_v37 }
 0x202   :  { %3845 = vmatprep.subr.mxu1 %v5000_v2 }
 0x203   :  { %3846 = vmatpush3.msra.mxu1 %v5261_v40 }
 0x204   :  { %3885 = vmatprep.subr.mxu1 %v5000_v2 }
 0x2a4   :  { %v458_v44 = vpop.f32.mrf.mxu1 }
 0x2a5   :  { %v462_v45 = vadd.f32 %v458_v44, %v5358_v57 }
 0x2a6   :  { %v3779_v46 = vpop.f32.mrf.mxu1 }
 0x2a7   :  { %4863 = vtanh.f32 %v462_v45 }
 0x2b4   :  { %v5460_v47 = vpop.eup %4863 }
 0x2b5   :  { %3813 = vmatmul.mubr.f32.vlgmr.msra.gmra.mxu0 %v5460_v47 }
 0x2b6   :  { %3851 = vmatpush3.msra.mxu0 %v5092_v7  ;;  %3882 = vmatprep.mubr.msk.f32.mxu0 %vm5001_vm0, %v5000_v2 }
 0x2b7   :  { %3852 = vmatprep.subr.mxu0 %v5000_v2 }
 0x2b8   :  { %3853 = vmatpush3.msra.mxu0 %v5101_v9 }
 0x2b9   :  { %3854 = vmatprep.subr.mxu0 %v5000_v2 }
 0x2ba   :  { %3855 = vmatpush3.msra.mxu0 %v5111_v11 }
 0x2bb   :  { %3856 = vmatprep.subr.mxu0 %v5000_v2 }
 0x2bc   :  { %3857 = vmatpush3.msra.mxu0 %v5121_v13 }
 0x2bd   :  { %3858 = vmatprep.subr.mxu0 %v5000_v2 }
 0x2be   :  { %3859 = vmatpush3.msra.mxu0 %v5131_v15 }
 0x2bf   :  { %3860 = vmatprep.subr.mxu0 %v5000_v2 }
 0x2c0   :  { %3861 = vmatpush3.msra.mxu0 %v5141_v17 }
 0x2c1   :  { %3862 = vmatprep.subr.mxu0 %v5000_v2 }
 0x2c2   :  { %3863 = vmatpush3.msra.mxu0 %v5151_v19 }
 0x2c3   :  { %3864 = vmatprep.subr.mxu0 %v5000_v2 }
 0x2c4   :  { %3865 = vmatpush3.msra.mxu0 %v5161_v21 }
 0x2c5   :  { %3866 = vmatprep.subr.mxu0 %v5000_v2 }
 0x2c6   :  { %3867 = vmatpush3.msra.mxu0 %v5171_v23 }
 0x2c7   :  { %3868 = vmatprep.subr.mxu0 %v5000_v2 }
 0x2c8   :  { %3869 = vmatpush3.msra.mxu0 %v5181_v25 }
 0x2c9   :  { %3870 = vmatprep.subr.mxu0 %v5000_v2 }
 0x2ca   :  { %3871 = vmatpush3.msra.mxu0 %v5191_v27 }
 0x2cb   :  { %3872 = vmatprep.subr.mxu0 %v5000_v2 }
 0x2cc   :  { %3873 = vmatpush3.msra.mxu0 %v5201_v29 }
 0x2cd   :  { %3874 = vmatprep.subr.mxu0 %v5000_v2 }
 0x2ce   :  { %3875 = vmatpush3.msra.mxu0 %v5211_v31 }
 0x2cf   :  { %3876 = vmatprep.subr.mxu0 %v5000_v2 }
 0x2d0   :  { %3877 = vmatpush3.msra.mxu0 %v5227_v34 }
 0x2d1   :  { %3878 = vmatprep.subr.mxu0 %v5000_v2 }
 0x2d2   :  { %3879 = vmatpush3.msra.mxu0 %v5244_v37 }
 0x2d3   :  { %3880 = vmatprep.subr.mxu0 %v5000_v2 }
 0x2d4   :  { %3881 = vmatpush3.msra.mxu0 %v5261_v40 }
 0x2d5   :  { %3920 = vmatprep.subr.mxu0 %v5000_v2 }
 0x375   :  { %v530_v48 = vpop.f32.mrf.mxu0 }
 0x376   :  { %v534_v49 = vadd.f32 %v530_v48, %v5356_v55 }
 0x377   :  { %v3814_v50 = vpop.f32.mrf.mxu0 }
 0x378   :  { %4865 = vtanh.f32 %v534_v49 }
 0x385   :  { %v5498_v51 = vpop.eup %4865 }
 0x386   :  { %3848 = vmatmul.mubr.f32.vlgmr.msra.gmra.mxu1 %v5498_v51 }
 0x387   :  { %3886 = vmatpush3.msra.mxu1 %v5092_v7  ;;  %3917 = vmatprep.mubr.msk.f32.mxu1 %vm5001_vm0, %v5000_v2 }
 0x388   :  { %3887 = vmatprep.subr.mxu1 %v5000_v2 }
 0x389   :  { %3888 = vmatpush3.msra.mxu1 %v5101_v9 }
 0x38a   :  { %3889 = vmatprep.subr.mxu1 %v5000_v2 }
 0x38b   :  { %3890 = vmatpush3.msra.mxu1 %v5111_v11 }
 0x38c   :  { %3891 = vmatprep.subr.mxu1 %v5000_v2 }
 0x38d   :  { %3892 = vmatpush3.msra.mxu1 %v5121_v13 }
 0x38e   :  { %3893 = vmatprep.subr.mxu1 %v5000_v2 }
 0x38f   :  { %3894 = vmatpush3.msra.mxu1 %v5131_v15 }
 0x390   :  { %3895 = vmatprep.subr.mxu1 %v5000_v2 }
 0x391   :  { %3896 = vmatpush3.msra.mxu1 %v5141_v17 }
 0x392   :  { %3897 = vmatprep.subr.mxu1 %v5000_v2 }
 0x393   :  { %3898 = vmatpush3.msra.mxu1 %v5151_v19 }
 0x394   :  { %3899 = vmatprep.subr.mxu1 %v5000_v2 }
 0x395   :  { %3900 = vmatpush3.msra.mxu1 %v5161_v21 }
 0x396   :  { %3901 = vmatprep.subr.mxu1 %v5000_v2 }
 0x397   :  { %3902 = vmatpush3.msra.mxu1 %v5171_v23 }
 0x398   :  { %3903 = vmatprep.subr.mxu1 %v5000_v2 }
 0x399   :  { %3904 = vmatpush3.msra.mxu1 %v5181_v25 }
 0x39a   :  { %3905 = vmatprep.subr.mxu1 %v5000_v2 }
 0x39b   :  { %3906 = vmatpush3.msra.mxu1 %v5191_v27 }
 0x39c   :  { %3907 = vmatprep.subr.mxu1 %v5000_v2 }
 0x39d   :  { %3908 = vmatpush3.msra.mxu1 %v5201_v29 }
 0x39e   :  { %3909 = vmatprep.subr.mxu1 %v5000_v2 }
 0x39f   :  { %3910 = vmatpush3.msra.mxu1 %v5211_v31 }
 0x3a0   :  { %3911 = vmatprep.subr.mxu1 %v5000_v2 }
 0x3a1   :  { %3912 = vmatpush3.msra.mxu1 %v5227_v34 }
 0x3a2   :  { %3913 = vmatprep.subr.mxu1 %v5000_v2 }
 0x3a3   :  { %3914 = vmatpush3.msra.mxu1 %v5244_v37 }
 0x3a4   :  { %3915 = vmatprep.subr.mxu1 %v5000_v2 }
 0x3a5   :  { %3916 = vmatpush3.msra.mxu1 %v5261_v40 }
 0x3a6   :  { %3955 = vmatprep.subr.mxu1 %v5000_v2 }
 0x446   :  { %v602_v52 = vpop.f32.mrf.mxu1 }
 0x447   :  { %v606_v53 = vadd.f32 %v602_v52, %v5362_v61 }
 0x448   :  { %v3849_v54 = vpop.f32.mrf.mxu1 }
 0x449   :  { %4867 = vtanh.f32 %v606_v53  ;;  %v1415_v53 = vld [vmem:[%s7009_s5 + $0x70] sm:$0xff]  ;;  %v1414_v54 = vld [vmem:[%s7009_s5 + $0x68] sm:$0xff] }
 0x456   :  { %v5536_v55 = vpop.eup %4867 }
 0x457   :  { %3883 = vmatmul.mubr.f32.vlgmr.msra.gmra.mxu0 %v5536_v55 }
 0x458   :  { %3921 = vmatpush3.msra.mxu0 %v5092_v7  ;;  %3952 = vmatprep.mubr.msk.f32.mxu0 %vm5001_vm0, %v5000_v2 }
 0x459   :  { %3922 = vmatprep.subr.mxu0 %v5000_v2 }
 0x45a   :  { %3923 = vmatpush3.msra.mxu0 %v5101_v9 }
 0x45b   :  { %3924 = vmatprep.subr.mxu0 %v5000_v2 }
 0x45c   :  { %3925 = vmatpush3.msra.mxu0 %v5111_v11 }
 0x45d   :  { %3926 = vmatprep.subr.mxu0 %v5000_v2 }
 0x45e   :  { %3927 = vmatpush3.msra.mxu0 %v5121_v13 }
 0x45f   :  { %3928 = vmatprep.subr.mxu0 %v5000_v2 }
 0x460   :  { %3929 = vmatpush3.msra.mxu0 %v5131_v15 }
 0x461   :  { %3930 = vmatprep.subr.mxu0 %v5000_v2 }
 0x462   :  { %3931 = vmatpush3.msra.mxu0 %v5141_v17 }
 0x463   :  { %3932 = vmatprep.subr.mxu0 %v5000_v2 }
 0x464   :  { %3933 = vmatpush3.msra.mxu0 %v5151_v19 }
 0x465   :  { %3934 = vmatprep.subr.mxu0 %v5000_v2 }
 0x466   :  { %3935 = vmatpush3.msra.mxu0 %v5161_v21 }
 0x467   :  { %3936 = vmatprep.subr.mxu0 %v5000_v2 }
 0x468   :  { %3937 = vmatpush3.msra.mxu0 %v5171_v23 }
 0x469   :  { %3938 = vmatprep.subr.mxu0 %v5000_v2 }
 0x46a   :  { %3939 = vmatpush3.msra.mxu0 %v5181_v25 }
 0x46b   :  { %3940 = vmatprep.subr.mxu0 %v5000_v2 }
 0x46c   :  { %3941 = vmatpush3.msra.mxu0 %v5191_v27 }
 0x46d   :  { %3942 = vmatprep.subr.mxu0 %v5000_v2 }
 0x46e   :  { %3943 = vmatpush3.msra.mxu0 %v5201_v29 }
 0x46f   :  { %3944 = vmatprep.subr.mxu0 %v5000_v2 }
 0x470   :  { %3945 = vmatpush3.msra.mxu0 %v5211_v31 }
 0x471   :  { %3946 = vmatprep.subr.mxu0 %v5000_v2 }
 0x472   :  { %3947 = vmatpush3.msra.mxu0 %v5227_v34 }
 0x473   :  { %3948 = vmatprep.subr.mxu0 %v5000_v2 }
 0x474   :  { %3949 = vmatpush3.msra.mxu0 %v5244_v37 }
 0x475   :  { %3950 = vmatprep.subr.mxu0 %v5000_v2 }
 0x476   :  { %3951 = vmatpush3.msra.mxu0 %v5261_v40 }
 0x477   :  { %3990 = vmatprep.subr.mxu0 %v5000_v2 }
 0x517   :  { %v674_v56 = vpop.f32.mrf.mxu0 }
 0x518   :  { %v678_v57 = vadd.f32 %v674_v56, %v5360_v59  ;;  %v1412_v56 = vld [vmem:[%s7009_s5 + $0x58] sm:$0xff] }
 0x519   :  { %v3884_v58 = vpop.f32.mrf.mxu0 }
 0x51a   :  { %4869 = vtanh.f32 %v678_v57  ;;  %v1410_v57 = vld [vmem:[%s7009_s5 + $0x48] sm:$0xff]  ;;  %v1409_v58 = vld [vmem:[%s7009_s5 + $0x40] sm:$0xff] }
 0x527   :  { %v5574_v60 = vpop.eup %4869 }
 0x528   :  { %3918 = vmatmul.mubr.f32.vlgmr.msra.gmra.mxu1 %v5574_v60 }
 0x529   :  { %3956 = vmatpush3.msra.mxu1 %v5092_v7  ;;  %3987 = vmatprep.mubr.msk.f32.mxu1 %vm5001_vm0, %v5000_v2 }
 0x52a   :  { %3957 = vmatprep.subr.mxu1 %v5000_v2 }
 0x52b   :  { %3958 = vmatpush3.msra.mxu1 %v5101_v9 }
 0x52c   :  { %3959 = vmatprep.subr.mxu1 %v5000_v2 }
 0x52d   :  { %3960 = vmatpush3.msra.mxu1 %v5111_v11 }
 0x52e   :  { %3961 = vmatprep.subr.mxu1 %v5000_v2 }
 0x52f   :  { %3962 = vmatpush3.msra.mxu1 %v5121_v13 }
 0x530   :  { %3963 = vmatprep.subr.mxu1 %v5000_v2 }
 0x531   :  { %3964 = vmatpush3.msra.mxu1 %v5131_v15 }
 0x532   :  { %3965 = vmatprep.subr.mxu1 %v5000_v2 }
 0x533   :  { %3966 = vmatpush3.msra.mxu1 %v5141_v17 }
 0x534   :  { %3967 = vmatprep.subr.mxu1 %v5000_v2 }
 0x535   :  { %3968 = vmatpush3.msra.mxu1 %v5151_v19 }
 0x536   :  { %3969 = vmatprep.subr.mxu1 %v5000_v2 }
 0x537   :  { %3970 = vmatpush3.msra.mxu1 %v5161_v21 }
 0x538   :  { %3971 = vmatprep.subr.mxu1 %v5000_v2 }
 0x539   :  { %3972 = vmatpush3.msra.mxu1 %v5171_v23 }
 0x53a   :  { %3973 = vmatprep.subr.mxu1 %v5000_v2 }
 0x53b   :  { %3974 = vmatpush3.msra.mxu1 %v5181_v25 }
 0x53c   :  { %3975 = vmatprep.subr.mxu1 %v5000_v2 }
 0x53d   :  { %3976 = vmatpush3.msra.mxu1 %v5191_v27 }
 0x53e   :  { %3977 = vmatprep.subr.mxu1 %v5000_v2 }
 0x53f   :  { %3978 = vmatpush3.msra.mxu1 %v5201_v29 }
 0x540   :  { %3979 = vmatprep.subr.mxu1 %v5000_v2 }
 0x541   :  { %3980 = vmatpush3.msra.mxu1 %v5211_v31 }
 0x542   :  { %3981 = vmatprep.subr.mxu1 %v5000_v2 }
 0x543   :  { %3982 = vmatpush3.msra.mxu1 %v5227_v34 }
 0x544   :  { %3983 = vmatprep.subr.mxu1 %v5000_v2 }
 0x545   :  { %3984 = vmatpush3.msra.mxu1 %v5244_v37 }
 0x546   :  { %3985 = vmatprep.subr.mxu1 %v5000_v2 }
 0x547   :  { %3986 = vmatpush3.msra.mxu1 %v5261_v40 }
 0x548   :  { %4025 = vmatprep.subr.mxu1 %v5000_v2 }
 0x5e8   :  { %v746_v59 = vpop.f32.mrf.mxu1 }
 0x5e9   :  { %v750_v61 = vadd.f32 %v746_v59, %v5366_v1  ;;  %v1408_v59 = vld [vmem:[%s7009_s5 + $0x38] sm:$0xff] }
 0x5ea   :  { %v3919_v62 = vpop.f32.mrf.mxu1 }
 0x5eb   :  { %4871 = vtanh.f32 %v750_v61  ;;  %v1407_v61 = vld [vmem:[%s7009_s5 + $0x30] sm:$0xff]  ;;  %v1406_v62 = vld [vmem:[%s7009_s5 + $0x28] sm:$0xff] }
 0x5f8   :  { %v5612_v0 = vpop.eup %4871 }
 0x5f9   :  { %3953 = vmatmul.mubr.f32.vlgmr.msra.gmra.mxu0 %v5612_v0 }
 0x5fa   :  { %3991 = vmatpush3.msra.mxu0 %v5092_v7  ;;  %4022 = vmatprep.mubr.msk.f32.mxu0 %vm5001_vm0, %v5000_v2 }
 0x5fb   :  { %3992 = vmatprep.subr.mxu0 %v5000_v2 }
 0x5fc   :  { %3993 = vmatpush3.msra.mxu0 %v5101_v9 }
 0x5fd   :  { %3994 = vmatprep.subr.mxu0 %v5000_v2 }
 0x5fe   :  { %3995 = vmatpush3.msra.mxu0 %v5111_v11 }
 0x5ff   :  { %3996 = vmatprep.subr.mxu0 %v5000_v2 }
 0x600   :  { %3997 = vmatpush3.msra.mxu0 %v5121_v13 }
 0x601   :  { %3998 = vmatprep.subr.mxu0 %v5000_v2 }
 0x602   :  { %3999 = vmatpush3.msra.mxu0 %v5131_v15 }
 0x603   :  { %4000 = vmatprep.subr.mxu0 %v5000_v2 }
 0x604   :  { %4001 = vmatpush3.msra.mxu0 %v5141_v17 }
 0x605   :  { %4002 = vmatprep.subr.mxu0 %v5000_v2 }
 0x606   :  { %4003 = vmatpush3.msra.mxu0 %v5151_v19 }
 0x607   :  { %4004 = vmatprep.subr.mxu0 %v5000_v2 }
 0x608   :  { %4005 = vmatpush3.msra.mxu0 %v5161_v21 }
 0x609   :  { %4006 = vmatprep.subr.mxu0 %v5000_v2 }
 0x60a   :  { %4007 = vmatpush3.msra.mxu0 %v5171_v23 }
 0x60b   :  { %4008 = vmatprep.subr.mxu0 %v5000_v2 }
 0x60c   :  { %4009 = vmatpush3.msra.mxu0 %v5181_v25 }
 0x60d   :  { %4010 = vmatprep.subr.mxu0 %v5000_v2 }
 0x60e   :  { %4011 = vmatpush3.msra.mxu0 %v5191_v27 }
 0x60f   :  { %4012 = vmatprep.subr.mxu0 %v5000_v2 }
 0x610   :  { %4013 = vmatpush3.msra.mxu0 %v5201_v29 }
 0x611   :  { %4014 = vmatprep.subr.mxu0 %v5000_v2 }
 0x612   :  { %4015 = vmatpush3.msra.mxu0 %v5211_v31 }
 0x613   :  { %4016 = vmatprep.subr.mxu0 %v5000_v2 }
 0x614   :  { %4017 = vmatpush3.msra.mxu0 %v5227_v34 }
 0x615   :  { %4018 = vmatprep.subr.mxu0 %v5000_v2 }
 0x616   :  { %4019 = vmatpush3.msra.mxu0 %v5244_v37 }
 0x617   :  { %4020 = vmatprep.subr.mxu0 %v5000_v2 }
 0x618   :  { %4021 = vmatpush3.msra.mxu0 %v5261_v40 }
 0x619   :  { %4060 = vmatprep.subr.mxu0 %v5000_v2 }
 0x6b9   :  { %v818_v1 = vpop.f32.mrf.mxu0 }
 0x6ba   :  { %v822_v3 = vadd.f32 %v818_v1, %v5364_v63  ;;  %v5717_v63 = vld [vmem:[%s7007_s3 + $0x60] sm:$0xff] }
 0x6bb   :  { %v3954_v5 = vpop.f32.mrf.mxu0  ;;  %v1405_v1 = vld [vmem:[%s7009_s5 + $0x20] sm:$0xff] }
 0x6bc   :  { %4873 = vtanh.f32 %v822_v3  ;;  %v1404_v3 = vld [vmem:[%s7009_s5 + $0x18] sm:$0xff]  ;;  %v1403_v5 = vld [vmem:[%s7009_s5 + $0x10] sm:$0xff] }
 0x6c9   :  { %v5650_v8 = vpop.eup %4873 }
 0x6ca   :  { %3988 = vmatmul.mubr.f32.vlgmr.msra.gmra.mxu1 %v5650_v8 }
 0x6cb   :  { %4026 = vmatpush3.msra.mxu1 %v5092_v7  ;;  %4057 = vmatprep.mubr.msk.f32.mxu1 %vm5001_vm0, %v5000_v2 }
 0x6cc   :  { %4027 = vmatprep.subr.mxu1 %v5000_v2 }
 0x6cd   :  { %4028 = vmatpush3.msra.mxu1 %v5101_v9 }
 0x6ce   :  { %4029 = vmatprep.subr.mxu1 %v5000_v2 }
 0x6cf   :  { %4030 = vmatpush3.msra.mxu1 %v5111_v11 }
 0x6d0   :  { %4031 = vmatprep.subr.mxu1 %v5000_v2 }
 0x6d1   :  { %4032 = vmatpush3.msra.mxu1 %v5121_v13 }
 0x6d2   :  { %4033 = vmatprep.subr.mxu1 %v5000_v2 }
 0x6d3   :  { %4034 = vmatpush3.msra.mxu1 %v5131_v15  ;;  %v5694_v15 = vld [vmem:[%s7007_s3 + $0x78] sm:$0xff] }
 0x6d4   :  { %4035 = vmatprep.subr.mxu1 %v5000_v2 }
 0x6d5   :  { %4036 = vmatpush3.msra.mxu1 %v5141_v17  ;;  %v5703_v17 = vld [vmem:[%s7007_s3 + $0x70] sm:$0xff] }
 0x6d6   :  { %4037 = vmatprep.subr.mxu1 %v5000_v2 }
 0x6d7   :  { %4038 = vmatpush3.msra.mxu1 %v5151_v19  ;;  %v5710_v19 = vld [vmem:[%s7007_s3 + $0x68] sm:$0xff] }
 0x6d8   :  { %4039 = vmatprep.subr.mxu1 %v5000_v2 }
 0x6d9   :  { %4040 = vmatpush3.msra.mxu1 %v5161_v21 }
 0x6da   :  { %4041 = vmatprep.subr.mxu1 %v5000_v2 }
 0x6db   :  { %4042 = vmatpush3.msra.mxu1 %v5171_v23 }
 0x6dc   :  { %4043 = vmatprep.subr.mxu1 %v5000_v2 }
 0x6dd   :  { %4044 = vmatpush3.msra.mxu1 %v5181_v25 }
 0x6de   :  { %4045 = vmatprep.subr.mxu1 %v5000_v2 }
 0x6df   :  { %4046 = vmatpush3.msra.mxu1 %v5191_v27 }
 0x6e0   :  { %4047 = vmatprep.subr.mxu1 %v5000_v2 }
 0x6e1   :  { %4048 = vmatpush3.msra.mxu1 %v5201_v29 }
 0x6e2   :  { %4049 = vmatprep.subr.mxu1 %v5000_v2 }
 0x6e3   :  { %4050 = vmatpush3.msra.mxu1 %v5211_v31 }
 0x6e4   :  { %4051 = vmatprep.subr.mxu1 %v5000_v2 }
 0x6e5   :  { %4052 = vmatpush3.msra.mxu1 %v5227_v34 }
 0x6e6   :  { %4053 = vmatprep.subr.mxu1 %v5000_v2 }
 0x6e7   :  { %4054 = vmatpush3.msra.mxu1 %v5244_v37 }
 0x6e8   :  { %4055 = vmatprep.subr.mxu1 %v5000_v2 }
 0x6e9   :  { %4056 = vmatpush3.msra.mxu1 %v5261_v40 }
 0x6ea   :  { %4095 = vmatprep.subr.mxu1 %v5000_v2 }
 0x78a   :  { %v890_v7 = vpop.f32.mrf.mxu1 }
 0x78b   :  { %v894_v9 = vadd.f32 %v890_v7, %v5370_v6  ;;  %v5724_v6 = vld [vmem:[%s7007_s3 + $0x58] sm:$0xff]  ;;  %v1402_v7 = vld [vmem:[%s7009_s5 + $0x8] sm:$0xff] }
 0x78c   :  { %v3989_v11 = vpop.f32.mrf.mxu1 }
 0x78d   :  { %4875 = vtanh.f32 %v894_v9  ;;  %v1401_v9 = vld [vmem:[%s7009_s5] sm:$0xff] }
 0x78e   :  { %v6070_v11 = vld [vmem:[%s7010_s6 + $0x40] sm:$0xff] }
 0x79a   :  { %v5688_v13 = vpop.eup %4875 }
 0x79b   :  { %4023 = vmatmul.mubr.f32.vlgmr.msra.gmra.mxu0 %v5688_v13 }
 0x79c   :  { %4061 = vmatpush3.msra.mxu0 %v5694_v15  ;;  %4092 = vmatprep.mubr.msk.f32.mxu0 %vm5001_vm0, %v5000_v2 }
 0x79d   :  { %4062 = vmatprep.subr.mxu0 %v5000_v2 }
 0x79e   :  { %4063 = vmatpush3.msra.mxu0 %v5703_v17 }
 0x79f   :  { %4064 = vmatprep.subr.mxu0 %v5000_v2 }
 0x7a0   :  { %4065 = vmatpush3.msra.mxu0 %v5710_v19 }
 0x7a1   :  { %4066 = vmatprep.subr.mxu0 %v5000_v2 }
 0x7a2   :  { %4067 = vmatpush3.msra.mxu0 %v5717_v63 }
 0x7a3   :  { %4068 = vmatprep.subr.mxu0 %v5000_v2 }
 0x7a4   :  { %4069 = vmatpush3.msra.mxu0 %v5724_v6 }
 0x7a5   :  { %4070 = vmatprep.subr.mxu0 %v5000_v2 }
 0x7a6   :  { %4071 = vmatpush3.msra.mxu0 %v5731_v12 }
 0x7a7   :  { %4072 = vmatprep.subr.mxu0 %v5000_v2 }
 0x7a8   :  { %4073 = vmatpush3.msra.mxu0 %v5738_v16 }
 0x7a9   :  { %4074 = vmatprep.subr.mxu0 %v5000_v2 }
 0x7aa   :  { %4075 = vmatpush3.msra.mxu0 %v5161_v21 }
 0x7ab   :  { %4076 = vmatprep.subr.mxu0 %v5000_v2 }
 0x7ac   :  { %4077 = vmatpush3.msra.mxu0 %v5171_v23 }
 0x7ad   :  { %4078 = vmatprep.subr.mxu0 %v5000_v2 }
 0x7ae   :  { %4079 = vmatpush3.msra.mxu0 %v5181_v25 }
 0x7af   :  { %4080 = vmatprep.subr.mxu0 %v5000_v2 }
 0x7b0   :  { %4081 = vmatpush3.msra.mxu0 %v5191_v27 }
 0x7b1   :  { %4082 = vmatprep.subr.mxu0 %v5000_v2 }
 0x7b2   :  { %4083 = vmatpush3.msra.mxu0 %v5201_v29  ;;  %v5783_v29 = vld [vmem:[%s7007_s3 + $0x40] sm:$0xff] }
 0x7b3   :  { %4084 = vmatprep.subr.mxu0 %v5000_v2 }
 0x7b4   :  { %4085 = vmatpush3.msra.mxu0 %v5211_v31  ;;  %v5790_v31 = vld [vmem:[%s7007_s3 + $0x38] sm:$0xff] }
 0x7b5   :  { %4086 = vmatprep.subr.mxu0 %v5000_v2 }
 0x7b6   :  { %4087 = vmatpush3.msra.mxu0 %v5227_v34  ;;  %v5797_v34 = vld [vmem:[%s7007_s3 + $0x30] sm:$0xff] }
 0x7b7   :  { %4088 = vmatprep.subr.mxu0 %v5000_v2 }
 0x7b8   :  { %4089 = vmatpush3.msra.mxu0 %v5244_v37 }
 0x7b9   :  { %4090 = vmatprep.subr.mxu0 %v5000_v2 }
 0x7ba   :  { %4091 = vmatpush3.msra.mxu0 %v5261_v40 }
 0x7bb   :  { %4130 = vmatprep.subr.mxu0 %v5000_v2 }
 0x85b   :  { %v962_v21 = vpop.f32.mrf.mxu0 }
 0x85c   :  { %v966_v23 = vadd.f32 %v962_v21, %v5368_v4  ;;  %v5804_v4 = vld [vmem:[%s7007_s3 + $0x28] sm:$0xff] }
 0x85d   :  { %v4024_v25 = vpop.f32.mrf.mxu0 }
 0x85e   :  { %4877 = vtanh.f32 %v966_v23 }
 0x86b   :  { %v5761_v27 = vpop.eup %4877 }
 0x86c   :  { %4058 = vmatmul.mubr.f32.vlgmr.msra.gmra.mxu1 %v5761_v27 }
 0x86d   :  { %4096 = vmatpush3.msra.mxu1 %v5694_v15  ;;  %4127 = vmatprep.mubr.msk.f32.mxu1 %vm5001_vm0, %v5000_v2 }
 0x86e   :  { %4097 = vmatprep.subr.mxu1 %v5000_v2 }
 0x86f   :  { %4098 = vmatpush3.msra.mxu1 %v5703_v17 }
 0x870   :  { %4099 = vmatprep.subr.mxu1 %v5000_v2 }
 0x871   :  { %4100 = vmatpush3.msra.mxu1 %v5710_v19 }
 0x872   :  { %4101 = vmatprep.subr.mxu1 %v5000_v2 }
 0x873   :  { %4102 = vmatpush3.msra.mxu1 %v5717_v63 }
 0x874   :  { %4103 = vmatprep.subr.mxu1 %v5000_v2 }
 0x875   :  { %4104 = vmatpush3.msra.mxu1 %v5724_v6 }
 0x876   :  { %4105 = vmatprep.subr.mxu1 %v5000_v2 }
 0x877   :  { %4106 = vmatpush3.msra.mxu1 %v5731_v12 }
 0x878   :  { %4107 = vmatprep.subr.mxu1 %v5000_v2 }
 0x879   :  { %4108 = vmatpush3.msra.mxu1 %v5738_v16 }
 0x87a   :  { %4109 = vmatprep.subr.mxu1 %v5000_v2 }
 0x87b   :  { %4110 = vmatpush3.msra.mxu1 %v5783_v29 }
 0x87c   :  { %4111 = vmatprep.subr.mxu1 %v5000_v2 }
 0x87d   :  { %4112 = vmatpush3.msra.mxu1 %v5790_v31 }
 0x87e   :  { %4113 = vmatprep.subr.mxu1 %v5000_v2 }
 0x87f   :  { %4114 = vmatpush3.msra.mxu1 %v5797_v34 }
 0x880   :  { %4115 = vmatprep.subr.mxu1 %v5000_v2 }
 0x881   :  { %4116 = vmatpush3.msra.mxu1 %v5804_v4 }
 0x882   :  { %4117 = vmatprep.subr.mxu1 %v5000_v2 }
 0x883   :  { %4118 = vmatpush3.msra.mxu1 %v5811_v20 }
 0x884   :  { %4119 = vmatprep.subr.mxu1 %v5000_v2 }
 0x885   :  { %4120 = vmatpush3.msra.mxu1 %v5818_v24 }
 0x886   :  { %4121 = vmatprep.subr.mxu1 %v5000_v2 }
 0x887   :  { %4122 = vmatpush3.msra.mxu1 %v5825_v28 }
 0x888   :  { %4123 = vmatprep.subr.mxu1 %v5000_v2 }
 0x889   :  { %4124 = vmatpush3.msra.mxu1 %v5244_v37  ;;  %v5870_v37 = vld [vmem:[%s7007_s3 + $0x8] sm:$0xff] }
 0x88a   :  { %4125 = vmatprep.subr.mxu1 %v5000_v2 }
 0x88b   :  { %4126 = vmatpush3.msra.mxu1 %v5261_v40  ;;  %v5877_v40 = vld [vmem:[%s7007_s3] sm:$0xff] }
 0x88c   :  { %4165 = vmatprep.subr.mxu1 %v5000_v2 }
 0x92c   :  { %v1034_v30 = vpop.f32.mrf.mxu1 }
 0x92d   :  { %v1038_v33 = vadd.f32 %v1034_v30, %v5374_v14 }
 0x92e   :  { %v4059_v35 = vpop.f32.mrf.mxu1 }
 0x92f   :  { %4879 = vtanh.f32 %v1038_v33 }
 0x93c   :  { %v5834_v36 = vpop.eup %4879 }
 0x93d   :  { %4093 = vmatmul.mubr.f32.vlgmr.msra.gmra.mxu0 %v5834_v36 }
 0x93e   :  { %4131 = vmatpush3.msra.mxu0 %v5694_v15  ;;  %4162 = vmatprep.mubr.msk.f32.mxu0 %vm5001_vm0, %v5000_v2 }
 0x93f   :  { %4132 = vmatprep.subr.mxu0 %v5000_v2 }
 0x940   :  { %4133 = vmatpush3.msra.mxu0 %v5703_v17 }
 0x941   :  { %4134 = vmatprep.subr.mxu0 %v5000_v2 }
 0x942   :  { %4135 = vmatpush3.msra.mxu0 %v5710_v19 }
 0x943   :  { %4136 = vmatprep.subr.mxu0 %v5000_v2 }
 0x944   :  { %4137 = vmatpush3.msra.mxu0 %v5717_v63 }
 0x945   :  { %4138 = vmatprep.subr.mxu0 %v5000_v2 }
 0x946   :  { %4139 = vmatpush3.msra.mxu0 %v5724_v6 }
 0x947   :  { %4140 = vmatprep.subr.mxu0 %v5000_v2 }
 0x948   :  { %4141 = vmatpush3.msra.mxu0 %v5731_v12 }
 0x949   :  { %4142 = vmatprep.subr.mxu0 %v5000_v2 }
 0x94a   :  { %4143 = vmatpush3.msra.mxu0 %v5738_v16 }
 0x94b   :  { %4144 = vmatprep.subr.mxu0 %v5000_v2 }
 0x94c   :  { %4145 = vmatpush3.msra.mxu0 %v5783_v29 }
 0x94d   :  { %4146 = vmatprep.subr.mxu0 %v5000_v2 }
 0x94e   :  { %4147 = vmatpush3.msra.mxu0 %v5790_v31 }
 0x94f   :  { %4148 = vmatprep.subr.mxu0 %v5000_v2 }
 0x950   :  { %4149 = vmatpush3.msra.mxu0 %v5797_v34 }
 0x951   :  { %4150 = vmatprep.subr.mxu0 %v5000_v2 }
 0x952   :  { %4151 = vmatpush3.msra.mxu0 %v5804_v4 }
 0x953   :  { %4152 = vmatprep.subr.mxu0 %v5000_v2 }
 0x954   :  { %4153 = vmatpush3.msra.mxu0 %v5811_v20 }
 0x955   :  { %4154 = vmatprep.subr.mxu0 %v5000_v2 }
 0x956   :  { %4155 = vmatpush3.msra.mxu0 %v5818_v24 }
 0x957   :  { %4156 = vmatprep.subr.mxu0 %v5000_v2 }
 0x958   :  { %4157 = vmatpush3.msra.mxu0 %v5825_v28 }
 0x959   :  { %4158 = vmatprep.subr.mxu0 %v5000_v2 }
 0x95a   :  { %4159 = vmatpush3.msra.mxu0 %v5870_v37 }
 0x95b   :  { %4160 = vmatprep.subr.mxu0 %v5000_v2 }
 0x95c   :  { %4161 = vmatpush3.msra.mxu0 %v5877_v40 }
 0x95d   :  { %4200 = vmatprep.subr.mxu0 %v5000_v2 }
 0x9fd   :  { %v1106_v14 = vpop.f32.mrf.mxu0 }
 0x9fe   :  { %v1110_v39 = vadd.f32 %v1106_v14, %v5372_v10 }
 0x9ff   :  { %v4094_v41 = vpop.f32.mrf.mxu0 }
 0xa00   :  { %4881 = vtanh.f32 %v1110_v39 }
 0xa0d   :  { %v5882_v42 = vpop.eup %4881 }
 0xa0e   :  { %4128 = vmatmul.mubr.f32.vlgmr.msra.gmra.mxu1 %v5882_v42 }
 0xa0f   :  { %4166 = vmatpush3.msra.mxu1 %v5694_v15  ;;  %4197 = vmatprep.mubr.msk.f32.mxu1 %vm5001_vm0, %v5000_v2 }
 0xa10   :  { %4167 = vmatprep.subr.mxu1 %v5000_v2 }
 0xa11   :  { %4168 = vmatpush3.msra.mxu1 %v5703_v17 }
 0xa12   :  { %4169 = vmatprep.subr.mxu1 %v5000_v2 }
 0xa13   :  { %4170 = vmatpush3.msra.mxu1 %v5710_v19 }
 0xa14   :  { %4171 = vmatprep.subr.mxu1 %v5000_v2 }
 0xa15   :  { %4172 = vmatpush3.msra.mxu1 %v5717_v63 }
 0xa16   :  { %4173 = vmatprep.subr.mxu1 %v5000_v2 }
 0xa17   :  { %4174 = vmatpush3.msra.mxu1 %v5724_v6 }
 0xa18   :  { %4175 = vmatprep.subr.mxu1 %v5000_v2 }
 0xa19   :  { %4176 = vmatpush3.msra.mxu1 %v5731_v12 }
 0xa1a   :  { %4177 = vmatprep.subr.mxu1 %v5000_v2 }
 0xa1b   :  { %4178 = vmatpush3.msra.mxu1 %v5738_v16 }
 0xa1c   :  { %4179 = vmatprep.subr.mxu1 %v5000_v2 }
 0xa1d   :  { %4180 = vmatpush3.msra.mxu1 %v5783_v29 }
 0xa1e   :  { %4181 = vmatprep.subr.mxu1 %v5000_v2 }
 0xa1f   :  { %4182 = vmatpush3.msra.mxu1 %v5790_v31 }
 0xa20   :  { %4183 = vmatprep.subr.mxu1 %v5000_v2 }
 0xa21   :  { %4184 = vmatpush3.msra.mxu1 %v5797_v34 }
 0xa22   :  { %4185 = vmatprep.subr.mxu1 %v5000_v2 }
 0xa23   :  { %4186 = vmatpush3.msra.mxu1 %v5804_v4 }
 0xa24   :  { %4187 = vmatprep.subr.mxu1 %v5000_v2 }
 0xa25   :  { %4188 = vmatpush3.msra.mxu1 %v5811_v20 }
 0xa26   :  { %4189 = vmatprep.subr.mxu1 %v5000_v2 }
 0xa27   :  { %4190 = vmatpush3.msra.mxu1 %v5818_v24 }
 0xa28   :  { %4191 = vmatprep.subr.mxu1 %v5000_v2 }
 0xa29   :  { %4192 = vmatpush3.msra.mxu1 %v5825_v28 }
 0xa2a   :  { %4193 = vmatprep.subr.mxu1 %v5000_v2 }
 0xa2b   :  { %4194 = vmatpush3.msra.mxu1 %v5870_v37 }
 0xa2c   :  { %4195 = vmatprep.subr.mxu1 %v5000_v2 }
 0xa2d   :  { %4196 = vmatpush3.msra.mxu1 %v5877_v40 }
 0xace   :  { %v1178_v10 = vpop.f32.mrf.mxu1 }
 0xacf   :  { %v1182_v44 = vadd.f32 %v1178_v10, %v5378_v22  ;;  %v1416_v22 = vld [vmem:[%s7009_s5 + $0x78] sm:$0xff] }
 0xad0   :  { %v4129_v45 = vpop.f32.mrf.mxu1  ;;  %4235 = vmatprep.subr.mxu1 %v1416_v22 }
 0xad1   :  { %4883 = vtanh.f32 %v1182_v44 }
 0xade   :  { %v5919_v46 = vpop.eup %4883 }
 0xadf   :  { %4163 = vmatmul.mubr.f32.vlgmr.msra.gmra.mxu0 %v5919_v46 }
 0xae0   :  { %4201 = vmatpush3.msra.mxu0 %v5694_v15  ;;  %4232 = vmatprep.mubr.msk.f32.mxu0 %vm5001_vm0, %v5000_v2  ;;  %v6084_v15 = vld [vmem:[%s7010_s6 + $0x30] sm:$0xff] }
 0xae1   :  { %4202 = vmatprep.subr.mxu0 %v5000_v2 }
 0xae2   :  { %4203 = vmatpush3.msra.mxu0 %v5703_v17  ;;  %v6091_v17 = vld [vmem:[%s7010_s6 + $0x28] sm:$0xff] }
 0xae3   :  { %4204 = vmatprep.subr.mxu0 %v5000_v2 }
 0xae4   :  { %4205 = vmatpush3.msra.mxu0 %v5710_v19  ;;  %v6098_v19 = vld [vmem:[%s7010_s6 + $0x20] sm:$0xff] }
 0xae5   :  { %4206 = vmatprep.subr.mxu0 %v5000_v2 }
 0xae6   :  { %4207 = vmatpush3.msra.mxu0 %v5717_v63  ;;  %v6105_v63 = vld [vmem:[%s7010_s6 + $0x18] sm:$0xff] }
 0xae7   :  { %4208 = vmatprep.subr.mxu0 %v5000_v2 }
 0xae8   :  { %4209 = vmatpush3.msra.mxu0 %v5724_v6  ;;  %v6112_v6 = vld [vmem:[%s7010_s6 + $0x10] sm:$0xff] }
 0xae9   :  { %4210 = vmatprep.subr.mxu0 %v5000_v2 }
 0xaea   :  { %4211 = vmatpush3.msra.mxu0 %v5731_v12  ;;  %v6119_v12 = vld [vmem:[%s7010_s6 + $0x8] sm:$0xff] }
 0xaeb   :  { %4212 = vmatprep.subr.mxu0 %v5000_v2 }
 0xaec   :  { %4213 = vmatpush3.msra.mxu0 %v5738_v16  ;;  %v6126_v16 = vld [vmem:[%s7010_s6] sm:$0xff] }
 0xaed   :  { %4214 = vmatprep.subr.mxu0 %v5000_v2 }
 0xaee   :  { %4215 = vmatpush3.msra.mxu0 %v5783_v29 }
 0xaef   :  { %4216 = vmatprep.subr.mxu0 %v5000_v2 }
 0xaf0   :  { %4217 = vmatpush3.msra.mxu0 %v5790_v31 }
 0xaf1   :  { %4218 = vmatprep.subr.mxu0 %v5000_v2 }
 0xaf2   :  { %4219 = vmatpush3.msra.mxu0 %v5797_v34 }
 0xaf3   :  { %4220 = vmatprep.subr.mxu0 %v5000_v2 }
 0xaf4   :  { %4221 = vmatpush3.msra.mxu0 %v5804_v4 }
 0xaf5   :  { %4222 = vmatprep.subr.mxu0 %v5000_v2 }
 0xaf6   :  { %4223 = vmatpush3.msra.mxu0 %v5811_v20 }
 0xaf7   :  { %4224 = vmatprep.subr.mxu0 %v5000_v2 }
 0xaf8   :  { %4225 = vmatpush3.msra.mxu0 %v5818_v24 }
 0xaf9   :  { %4226 = vmatprep.subr.mxu0 %v5000_v2 }
 0xafa   :  { %4227 = vmatpush3.msra.mxu0 %v5825_v28  ;;  %v6209_v28 = vld [vmem:[%s7011_s7] ss:$0 sm:$0xff] }
 0xafb   :  { %4228 = vmatprep.subr.mxu0 %v5000_v2 }
 0xafc   :  { %4229 = vmatpush3.msra.mxu0 %v5870_v37 }
 0xafd   :  { %4230 = vmatprep.subr.mxu0 %v5000_v2 }
 0xafe   :  { %4231 = vmatpush3.msra.mxu0 %v5877_v40 }
 0xaff   :  { %4291 = vmatprep.subr.mxu0 %v5000_v2 }
 0xb9f   :  { %v1250_v48 = vpop.f32.mrf.mxu0 }
 0xba0   :  { %v1254_v49 = vadd.f32 %v1250_v48, %v5376_v18  ;;  %v1413_v18 = vld [vmem:[%s7009_s5 + $0x60] sm:$0xff] }
 0xba1   :  { %v4164_v50 = vpop.f32.mrf.mxu0 }
 0xba2   :  { %4885 = vtanh.f32 %v1254_v49 }
 0xbaf   :  { %v4886_v52 = vpop.eup %4885 }
 0xbb0   :  { %4198 = vmatmul.mubr.f32.vlgmr.msra.gmra.mxu1 %v4886_v52 }
 0xbb1   :  { %4236 = vmatpush3.msra.mxu1 %v1416_v22  ;;  %4267 = vmatprep.mubr.f32.mxu1 %v5384_v38  ;;  %v1411_v38 = vld [vmem:[%s7009_s5 + $0x50] sm:$0xff] }
 0xbb2   :  { %4237 = vmatprep.subr.mxu1 %v1415_v53 }
 0xbb3   :  { %4238 = vmatpush3.msra.mxu1 %v1415_v53 }
 0xbb4   :  { %4239 = vmatprep.subr.mxu1 %v1414_v54 }
 0xbb5   :  { %4240 = vmatpush3.msra.mxu1 %v1414_v54 }
 0xbb6   :  { %4241 = vmatprep.subr.mxu1 %v1413_v18 }
 0xbb7   :  { %4242 = vmatpush3.msra.mxu1 %v1413_v18 }
 0xbb8   :  { %4243 = vmatprep.subr.mxu1 %v1412_v56 }
 0xbb9   :  { %4244 = vmatpush3.msra.mxu1 %v1412_v56 }
 0xbba   :  { %4245 = vmatprep.subr.mxu1 %v1411_v38 }
 0xbbb   :  { %4246 = vmatpush3.msra.mxu1 %v1411_v38 }
 0xbbc   :  { %4247 = vmatprep.subr.mxu1 %v1410_v57 }
 0xbbd   :  { %4248 = vmatpush3.msra.mxu1 %v1410_v57 }
 0xbbe   :  { %4249 = vmatprep.subr.mxu1 %v1409_v58 }
 0xbbf   :  { %4250 = vmatpush3.msra.mxu1 %v1409_v58 }
 0xbc0   :  { %4251 = vmatprep.subr.mxu1 %v1408_v59 }
 0xbc1   :  { %4252 = vmatpush3.msra.mxu1 %v1408_v59 }
 0xbc2   :  { %4253 = vmatprep.subr.mxu1 %v1407_v61 }
 0xbc3   :  { %4254 = vmatpush3.msra.mxu1 %v1407_v61 }
 0xbc4   :  { %4255 = vmatprep.subr.mxu1 %v1406_v62 }
 0xbc5   :  { %4256 = vmatpush3.msra.mxu1 %v1406_v62 }
 0xbc6   :  { %4257 = vmatprep.subr.mxu1 %v1405_v1 }
 0xbc7   :  { %4258 = vmatpush3.msra.mxu1 %v1405_v1 }
 0xbc8   :  { %4259 = vmatprep.subr.mxu1 %v1404_v3 }
 0xbc9   :  { %4260 = vmatpush3.msra.mxu1 %v1404_v3 }
 0xbca   :  { %4261 = vmatprep.subr.mxu1 %v1403_v5 }
 0xbcb   :  { %4262 = vmatpush3.msra.mxu1 %v1403_v5 }
 0xbcc   :  { %4263 = vmatprep.subr.mxu1 %v1402_v7 }
 0xbcd   :  { %4264 = vmatpush3.msra.mxu1 %v1402_v7 }
 0xbce   :  { %4265 = vmatprep.subr.mxu1 %v1401_v9 }
 0xbcf   :  { %4266 = vmatpush3.msra.mxu1 %v1401_v9 }
 0xbd0   :  { %4268 = vmatmul.mubr.f32.vlgmr.msra.gmra.mxu1 %v5422_v43  ;;  %4326 = vmatprep.subr.mxu1 %v5000_v2  ;;  %v6022_v43 = vld [vmem:[%s7010_s6 + $0x78] sm:$0xff] }
 0xbd1   :  { %4270 = vmatprep.mubr.f32.mxu1 %v5460_v47  ;;  %4327 = vmatpush3.msra.mxu1 %v6022_v43  ;;  %v6028_v47 = vld [vmem:[%s7010_s6 + $0x70] sm:$0xff] }
 0xbd2   :  { %4328 = vmatprep.subr.mxu1 %v5000_v2 }
 0xbd3   :  { %4329 = vmatpush3.msra.mxu1 %v6028_v47 }
 0xbd4   :  { %4271 = vmatmul.mubr.f32.gmra.mxu1 %v5498_v51  ;;  %v6035_v51 = vld [vmem:[%s7010_s6 + $0x68] sm:$0xff]  ;;  %4330 = vmatprep.subr.mxu1 %v5000_v2 }
 0xbd5   :  { %4273 = vmatprep.mubr.f32.mxu1 %v5536_v55  ;;  %4331 = vmatpush3.msra.mxu1 %v6035_v51  ;;  %v6042_v55 = vld [vmem:[%s7010_s6 + $0x60] sm:$0xff] }
 0xbd6   :  { %4332 = vmatprep.subr.mxu1 %v5000_v2 }
 0xbd7   :  { %4333 = vmatpush3.msra.mxu1 %v6042_v55 }
 0xbd8   :  { %4274 = vmatmul.mubr.f32.gmra.mxu1 %v5574_v60  ;;  %v6049_v60 = vld [vmem:[%s7010_s6 + $0x58] sm:$0xff]  ;;  %4334 = vmatprep.subr.mxu1 %v5000_v2 }
 0xbd9   :  { %4276 = vmatprep.mubr.f32.mxu1 %v5612_v0  ;;  %4335 = vmatpush3.msra.mxu1 %v6049_v60  ;;  %v6056_v0 = vld [vmem:[%s7010_s6 + $0x50] sm:$0xff] }
 0xbda   :  { %4336 = vmatprep.subr.mxu1 %v5000_v2 }
 0xbdb   :  { %4337 = vmatpush3.msra.mxu1 %v6056_v0 }
 0xbdc   :  { %4277 = vmatmul.mubr.f32.gmra.mxu1 %v5650_v8  ;;  %v6063_v8 = vld [vmem:[%s7010_s6 + $0x48] sm:$0xff]  ;;  %4338 = vmatprep.subr.mxu1 %v5000_v2 }
 0xbdd   :  { %4279 = vmatprep.mubr.f32.mxu1 %v5688_v13  ;;  %4339 = vmatpush3.msra.mxu1 %v6063_v8  ;;  %v6077_v13 = vld [vmem:[%s7010_s6 + $0x38] sm:$0xff] }
 0xbde   :  { %4340 = vmatprep.subr.mxu1 %v5000_v2 }
 0xbdf   :  { %4341 = vmatpush3.msra.mxu1 %v6070_v11 }
 0xbe0   :  { %4280 = vmatmul.mubr.f32.gmra.mxu1 %v5761_v27  ;;  %4342 = vmatprep.subr.mxu1 %v5000_v2 }
 0xbe1   :  { %4282 = vmatprep.mubr.f32.mxu1 %v5834_v36  ;;  %4343 = vmatpush3.msra.mxu1 %v6077_v13 }
 0xbe2   :  { %4344 = vmatprep.subr.mxu1 %v5000_v2 }
 0xbe3   :  { %4345 = vmatpush3.msra.mxu1 %v6084_v15 }
 0xbe4   :  { %4283 = vmatmul.mubr.f32.gmra.mxu1 %v5882_v42  ;;  %4346 = vmatprep.subr.mxu1 %v5000_v2 }
 0xbe5   :  { %4285 = vmatprep.mubr.f32.mxu1 %v5919_v46  ;;  %4347 = vmatpush3.msra.mxu1 %v6091_v17 }
 0xbe6   :  { %4348 = vmatprep.subr.mxu1 %v5000_v2 }
 0xbe7   :  { %4349 = vmatpush3.msra.mxu1 %v6098_v19 }
 0xbe8   :  { %4286 = vmatmul.mubr.f32.gmra.mxu1 %v4886_v52  ;;  %4350 = vmatprep.subr.mxu1 %v5000_v2 }
 0xbe9   :  { %4351 = vmatpush3.msra.mxu1 %v6105_v63 }
 0xbea   :  { %4352 = vmatprep.subr.mxu1 %v5000_v2 }
 0xbeb   :  { %4353 = vmatpush3.msra.mxu1 %v6112_v6 }
 0xbec   :  { %4354 = vmatprep.subr.mxu1 %v5000_v2 }
 0xbed   :  { %4355 = vmatpush3.msra.mxu1 %v6119_v12 }
 0xbee   :  { %4356 = vmatprep.subr.mxu1 %v5000_v2 }
 0xbef   :  { %4357 = vmatpush3.msra.mxu1 %v6126_v16 }
 0xbf0   :  { %4396 = vmatprep.subr.mxu1 %v5000_v2 }
 0xc70   :  { %v1322_v21 = vpop.f32.mrf.mxu1 }
 0xc71   :  { %v1326_v23 = vadd.f32 %v1322_v21, %v5382_v32  ;;  %v44_v32 = vld [vmem:[%s7005_s1 + $0x8] sm:$0xff] }
 0xc72   :  { %v4199_v25 = vpop.f32.mrf.mxu1 }
 0xc73   :  { %4887 = vtanh.f32 %v1326_v23 }
 0xc80   :  { %v4888_v27 = vpop.eup %4887 }
 0xc81   :  { %4233 = vmatmul.mubr.f32.vlgmr.msra.gmra.mxu0 %v4888_v27  ;;  %4288 = vmatprep.mubr.f32.mxu1 %v4888_v27 }
 0xc82   :  { %4292 = vmatpush3.msra.mxu0 %v6022_v43  ;;  %4323 = vmatprep.mubr.msk.f32.mxu0 %vm5001_vm0, %v5000_v2 }
 0xc83   :  { %4293 = vmatprep.subr.mxu0 %v5000_v2 }
 0xc84   :  { %4294 = vmatpush3.msra.mxu0 %v6028_v47 }
 0xc85   :  { %4295 = vmatprep.subr.mxu0 %v5000_v2 }
 0xc86   :  { %4296 = vmatpush3.msra.mxu0 %v6035_v51 }
 0xc87   :  { %4297 = vmatprep.subr.mxu0 %v5000_v2 }
 0xc88   :  { %4298 = vmatpush3.msra.mxu0 %v6042_v55 }
 0xc89   :  { %4299 = vmatprep.subr.mxu0 %v5000_v2 }
 0xc8a   :  { %4300 = vmatpush3.msra.mxu0 %v6049_v60 }
 0xc8b   :  { %4301 = vmatprep.subr.mxu0 %v5000_v2 }
 0xc8c   :  { %4302 = vmatpush3.msra.mxu0 %v6056_v0 }
 0xc8d   :  { %4303 = vmatprep.subr.mxu0 %v5000_v2 }
 0xc8e   :  { %4304 = vmatpush3.msra.mxu0 %v6063_v8 }
 0xc8f   :  { %4305 = vmatprep.subr.mxu0 %v5000_v2 }
 0xc90   :  { %4306 = vmatpush3.msra.mxu0 %v6070_v11  ;;  %v4269_v20 = vpop.f32.mrf.mxu1 }
 0xc91   :  { %4307 = vmatprep.subr.mxu0 %v5000_v2  ;;  %v1512_v52 = vadd.f32 %v4269_v20, %v6209_v28 }
 0xc92   :  { %4308 = vmatpush3.msra.mxu0 %v6077_v13  ;;  %v1506_v24 = vpop.f32.mrf.mxu1 }
 0xc93   :  { %4309 = vmatprep.subr.mxu0 %v5000_v2  ;;  %v1507_v30 = vadd.f32 %v6209_v28, %v1506_v24 }
 0xc94   :  { %4310 = vmatpush3.msra.mxu0 %v6084_v15  ;;  %v6249_v37 = vpop.f32.mrf.mxu1 }
 0xc95   :  { %4311 = vmatprep.subr.mxu0 %v5000_v2  ;;  %v1522_v62 = vadd.f32 %v6249_v37, %v6209_v28 }
 0xc96   :  { %4312 = vmatpush3.msra.mxu0 %v6091_v17  ;;  %v1516_v40 = vpop.f32.mrf.mxu1 }
 0xc97   :  { %4313 = vmatprep.subr.mxu0 %v5000_v2  ;;  %v1517_v38 = vadd.f32 %v6209_v28, %v1516_v40 }
 0xc98   :  { %4314 = vmatpush3.msra.mxu0 %v6098_v19  ;;  %v6251_v14 = vpop.f32.mrf.mxu1 }
 0xc99   :  { %4315 = vmatprep.subr.mxu0 %v5000_v2 }
 0xc9a   :  { %4316 = vmatpush3.msra.mxu0 %v6105_v63  ;;  %v6253_v39 = vpop.f32.mrf.mxu1 }
 0xc9b   :  { %4317 = vmatprep.subr.mxu0 %v5000_v2  ;;  %v1527_v9 = vadd.f32 %v6209_v28, %v6253_v39 }
 0xc9c   :  { %4318 = vmatpush3.msra.mxu0 %v6112_v6  ;;  %v6255_v41 = vpop.f32.mrf.mxu1 }
 0xc9d   :  { %4319 = vmatprep.subr.mxu0 %v5000_v2 }
 0xc9e   :  { %4320 = vmatpush3.msra.mxu0 %v6119_v12  ;;  %v6257_v42 = vpop.f32.mrf.mxu1 }
 0xc9f   :  { %4321 = vmatprep.subr.mxu0 %v5000_v2  ;;  %v1537_v20 = vadd.f32 %v6209_v28, %v6257_v42 }
 0xca0   :  { %4322 = vmatpush3.msra.mxu0 %v6126_v16  ;;  %v6259_v10 = vpop.f32.mrf.mxu1 }
 0xca1   :  { %4324 = vmatmul.mubr.f32.vlgmr.msra.gmra.mxu0 %v44_v32  ;;  %4361 = vmatprep.subr.mxu0 %v5000_v2  ;;  %v1532_v32 = vadd.f32 %v6251_v14, %v6209_v28 }
 0xca2   :  { %4362 = vmatpush3.msra.mxu0 %v6022_v43  ;;  %4393 = vmatprep.mubr.msk.f32.mxu0 %vm5001_vm0, %v5000_v2  ;;  %v6261_v44 = vpop.f32.mrf.mxu1 }
 0xca3   :  { %4363 = vmatprep.subr.mxu0 %v5000_v2 }
 0xca4   :  { %4364 = vmatpush3.msra.mxu0 %v6028_v47  ;;  %v6263_v45 = vpop.f32.mrf.mxu1 }
 0xca5   :  { %4365 = vmatprep.subr.mxu0 %v5000_v2 }
 0xca6   :  { %4366 = vmatpush3.msra.mxu0 %v6035_v51  ;;  %v6265_v46 = vpop.f32.mrf.mxu1 }
 0xca7   :  { %4367 = vmatprep.subr.mxu0 %v5000_v2 }
 0xca8   :  { %4368 = vmatpush3.msra.mxu0 %v6042_v55  ;;  %v6267_v22 = vpop.f32.mrf.mxu1 }
 0xca9   :  { %4369 = vmatprep.subr.mxu0 %v5000_v2 }
 0xcaa   :  { %4370 = vmatpush3.msra.mxu0 %v6049_v60  ;;  %v6269_v48 = vpop.f32.mrf.mxu1 }
 0xcab   :  { %4371 = vmatprep.subr.mxu0 %v5000_v2 }
 0xcac   :  { %4372 = vmatpush3.msra.mxu0 %v6056_v0 }
 0xcad   :  { %4373 = vmatprep.subr.mxu0 %v5000_v2 }
 0xcae   :  { %4374 = vmatpush3.msra.mxu0 %v6063_v8 }
 0xcaf   :  { %4375 = vmatprep.subr.mxu0 %v5000_v2 }
 0xcb0   :  { %4376 = vmatpush3.msra.mxu0 %v6070_v11 }
 0xcb1   :  { %4377 = vmatprep.subr.mxu0 %v5000_v2 }
 0xcb2   :  { %4378 = vmatpush3.msra.mxu0 %v6077_v13 }
 0xcb3   :  { %4379 = vmatprep.subr.mxu0 %v5000_v2 }
 0xcb4   :  { %4380 = vmatpush3.msra.mxu0 %v6084_v15 }
 0xcb5   :  { %4381 = vmatprep.subr.mxu0 %v5000_v2 }
 0xcb6   :  { %4382 = vmatpush3.msra.mxu0 %v6091_v17 }
 0xcb7   :  { %4383 = vmatprep.subr.mxu0 %v5000_v2 }
 0xcb8   :  { %4384 = vmatpush3.msra.mxu0 %v6098_v19 }
 0xcb9   :  { %4385 = vmatprep.subr.mxu0 %v5000_v2 }
 0xcba   :  { %4386 = vmatpush3.msra.mxu0 %v6105_v63 }
 0xcbb   :  { %4387 = vmatprep.subr.mxu0 %v5000_v2 }
 0xcbc   :  { %4388 = vmatpush3.msra.mxu0 %v6112_v6 }
 0xcbd   :  { %4389 = vmatprep.subr.mxu0 %v5000_v2 }
 0xcbe   :  { %4390 = vmatpush3.msra.mxu0 %v6119_v12 }
 0xcbf   :  { %4391 = vmatprep.subr.mxu0 %v5000_v2 }
 0xcc0   :  { %4392 = vmatpush3.msra.mxu0 %v6126_v16 }
 0xcc1   :  { %4431 = vmatprep.subr.mxu0 %v5000_v2 }
 0xd41   :  { %v1394_v29 = vpop.f32.mrf.mxu0 }
 0xd42   :  { %v1398_v31 = vadd.f32 %v1394_v29, %v5380_v26 }
 0xd43   :  { %v4234_v34 = vpop.f32.mrf.mxu0 }
 0xd44   :  { %4889 = vtanh.f32 %v1398_v31 }
 0xd51   :  { %v4890_v4 = vpop.eup %4889 }
 0xd52   :  { %1400 = vst [vmem:[#allocation4] sm:$0xff] %v4890_v4  ;;  %4289 = vmatmul.mubr.f32.gmra.mxu1 %v4890_v4 }
 0xd53   :  { %4358 = vmatprep.mubr.msk.f32.mxu1 %vm5001_vm0, %v5000_v2 }
 0xd61   :  { %v1653_v33 = vpop.f32.mrf.mxu0 }
 0xd62   :  { %v1657_v35 = vadd.f32 %v1653_v33, %v1507_v30 }
 0xd63   :  { %v4325_v26 = vpop.f32.mrf.mxu0 }
 0xd64   :  { %4891 = vtanh.f32 %v1657_v35  ;;  %v1542_v26 = vadd.f32 %v6255_v41, %v6209_v28  ;;  %v1547_v41 = vadd.f32 %v6209_v28, %v6261_v44  ;;  %v6609_v44 = vld [vmem:[%s7010_s6 + $0x68] sm:$0xff] }
 0xd71   :  { %v6212_v36 = vpop.eup %4891 }
 0xd72   :  { %4359 = vmatmul.mubr.f32.vlgmr.msra.gmra.mxu1 %v6212_v36 }
 0xd73   :  { %4397 = vmatpush3.msra.mxu1 %v6022_v43  ;;  %4428 = vmatprep.mubr.msk.f32.mxu1 %vm5001_vm0, %v5000_v2 }
 0xd74   :  { %4398 = vmatprep.subr.mxu1 %v5000_v2 }
 0xd75   :  { %4399 = vmatpush3.msra.mxu1 %v6028_v47 }
 0xd76   :  { %4400 = vmatprep.subr.mxu1 %v5000_v2 }
 0xd77   :  { %4401 = vmatpush3.msra.mxu1 %v6035_v51 }
 0xd78   :  { %4402 = vmatprep.subr.mxu1 %v5000_v2 }
 0xd79   :  { %4403 = vmatpush3.msra.mxu1 %v6042_v55 }
 0xd7a   :  { %4404 = vmatprep.subr.mxu1 %v5000_v2 }
 0xd7b   :  { %4405 = vmatpush3.msra.mxu1 %v6049_v60 }
 0xd7c   :  { %4406 = vmatprep.subr.mxu1 %v5000_v2 }
 0xd7d   :  { %4407 = vmatpush3.msra.mxu1 %v6056_v0 }
 0xd7e   :  { %4408 = vmatprep.subr.mxu1 %v5000_v2 }
 0xd7f   :  { %4409 = vmatpush3.msra.mxu1 %v6063_v8 }
 0xd80   :  { %4410 = vmatprep.subr.mxu1 %v5000_v2 }
 0xd81   :  { %4411 = vmatpush3.msra.mxu1 %v6070_v11 }
 0xd82   :  { %4412 = vmatprep.subr.mxu1 %v5000_v2 }
 0xd83   :  { %4413 = vmatpush3.msra.mxu1 %v6077_v13 }
 0xd84   :  { %4414 = vmatprep.subr.mxu1 %v5000_v2 }
 0xd85   :  { %4415 = vmatpush3.msra.mxu1 %v6084_v15 }
 0xd86   :  { %4416 = vmatprep.subr.mxu1 %v5000_v2 }
 0xd87   :  { %4417 = vmatpush3.msra.mxu1 %v6091_v17 }
 0xd88   :  { %4418 = vmatprep.subr.mxu1 %v5000_v2 }
 0xd89   :  { %4419 = vmatpush3.msra.mxu1 %v6098_v19 }
 0xd8a   :  { %4420 = vmatprep.subr.mxu1 %v5000_v2 }
 0xd8b   :  { %4421 = vmatpush3.msra.mxu1 %v6105_v63 }
 0xd8c   :  { %4422 = vmatprep.subr.mxu1 %v5000_v2 }
 0xd8d   :  { %4423 = vmatpush3.msra.mxu1 %v6112_v6 }
 0xd8e   :  { %4424 = vmatprep.subr.mxu1 %v5000_v2 }
 0xd8f   :  { %4425 = vmatpush3.msra.mxu1 %v6119_v12 }
 0xd90   :  { %4426 = vmatprep.subr.mxu1 %v5000_v2 }
 0xd91   :  { %4427 = vmatpush3.msra.mxu1 %v6126_v16 }
 0xd92   :  { %4466 = vmatprep.subr.mxu1 %v5000_v2 }
 0xe12   :  { %v6271_v49 = vpop.f32.mrf.mxu1 }
 0xe14   :  { %v6273_v50 = vpop.f32.mrf.mxu1 }
 0xe32   :  { %v1725_v53 = vpop.f32.mrf.mxu1 }
 0xe33   :  { %v1729_v54 = vadd.f32 %v1725_v53, %v1512_v52 }
 0xe34   :  { %v4360_v18 = vpop.f32.mrf.mxu1 }
 0xe35   :  { %4893 = vtanh.f32 %v1729_v54  ;;  %v6616_v18 = vld [vmem:[%s7010_s6 + $0x60] sm:$0xff] }
 0xe42   :  { %v6276_v56 = vpop.eup %4893 }
 0xe43   :  { %4394 = vmatmul.mubr.f32.vlgmr.msra.gmra.mxu0 %v6276_v56 }
 0xe44   :  { %4432 = vmatpush3.msra.mxu0 %v6022_v43  ;;  %4463 = vmatprep.mubr.msk.f32.mxu0 %vm5001_vm0, %v5000_v2 }
 0xe45   :  { %4433 = vmatprep.subr.mxu0 %v5000_v2 }
 0xe46   :  { %4434 = vmatpush3.msra.mxu0 %v6028_v47 }
 0xe47   :  { %4435 = vmatprep.subr.mxu0 %v5000_v2 }
 0xe48   :  { %4436 = vmatpush3.msra.mxu0 %v6035_v51 }
 0xe49   :  { %4437 = vmatprep.subr.mxu0 %v5000_v2 }
 0xe4a   :  { %4438 = vmatpush3.msra.mxu0 %v6042_v55 }
 0xe4b   :  { %4439 = vmatprep.subr.mxu0 %v5000_v2 }
 0xe4c   :  { %4440 = vmatpush3.msra.mxu0 %v6049_v60 }
 0xe4d   :  { %4441 = vmatprep.subr.mxu0 %v5000_v2 }
 0xe4e   :  { %4442 = vmatpush3.msra.mxu0 %v6056_v0 }
 0xe4f   :  { %4443 = vmatprep.subr.mxu0 %v5000_v2 }
 0xe50   :  { %4444 = vmatpush3.msra.mxu0 %v6063_v8 }
 0xe51   :  { %4445 = vmatprep.subr.mxu0 %v5000_v2 }
 0xe52   :  { %4446 = vmatpush3.msra.mxu0 %v6070_v11 }
 0xe53   :  { %4447 = vmatprep.subr.mxu0 %v5000_v2 }
 0xe54   :  { %4448 = vmatpush3.msra.mxu0 %v6077_v13 }
 0xe55   :  { %4449 = vmatprep.subr.mxu0 %v5000_v2 }
 0xe56   :  { %4450 = vmatpush3.msra.mxu0 %v6084_v15 }
 0xe57   :  { %4451 = vmatprep.subr.mxu0 %v5000_v2 }
 0xe58   :  { %4452 = vmatpush3.msra.mxu0 %v6091_v17 }
 0xe59   :  { %4453 = vmatprep.subr.mxu0 %v5000_v2 }
 0xe5a   :  { %4454 = vmatpush3.msra.mxu0 %v6098_v19 }
 0xe5b   :  { %4455 = vmatprep.subr.mxu0 %v5000_v2 }
 0xe5c   :  { %4456 = vmatpush3.msra.mxu0 %v6105_v63 }
 0xe5d   :  { %4457 = vmatprep.subr.mxu0 %v5000_v2 }
 0xe5e   :  { %4458 = vmatpush3.msra.mxu0 %v6112_v6 }
 0xe5f   :  { %4459 = vmatprep.subr.mxu0 %v5000_v2 }
 0xe60   :  { %4460 = vmatpush3.msra.mxu0 %v6119_v12 }
 0xe61   :  { %4461 = vmatprep.subr.mxu0 %v5000_v2 }
 0xe62   :  { %4462 = vmatpush3.msra.mxu0 %v6126_v16 }
 0xe63   :  { %4501 = vmatprep.subr.mxu0 %v5000_v2 }
 0xf03   :  { %v1797_v57 = vpop.f32.mrf.mxu0 }
 0xf04   :  { %v1801_v58 = vadd.f32 %v1797_v57, %v1517_v38  ;;  %v6623_v38 = vld [vmem:[%s7010_s6 + $0x58] sm:$0xff]  ;;  %v6630_v57 = vld [vmem:[%s7010_s6 + $0x50] sm:$0xff] }
 0xf05   :  { %v4395_v59 = vpop.f32.mrf.mxu0 }
 0xf06   :  { %4895 = vtanh.f32 %v1801_v58  ;;  %v6718_v58 = vld [vmem:[%s7010_s6 + $0x18] sm:$0xff]  ;;  %v6725_v59 = vld [vmem:[%s7010_s6 + $0x10] sm:$0xff] }
 0xf13   :  { %v6314_v61 = vpop.eup %4895 }
 0xf14   :  { %4429 = vmatmul.mubr.f32.vlgmr.msra.gmra.mxu1 %v6314_v61 }
 0xf15   :  { %4467 = vmatpush3.msra.mxu1 %v6022_v43  ;;  %4498 = vmatprep.mubr.msk.f32.mxu1 %vm5001_vm0, %v5000_v2 }
 0xf16   :  { %4468 = vmatprep.subr.mxu1 %v5000_v2 }
 0xf17   :  { %4469 = vmatpush3.msra.mxu1 %v6028_v47 }
 0xf18   :  { %4470 = vmatprep.subr.mxu1 %v5000_v2 }
 0xf19   :  { %4471 = vmatpush3.msra.mxu1 %v6035_v51 }
 0xf1a   :  { %4472 = vmatprep.subr.mxu1 %v5000_v2 }
 0xf1b   :  { %4473 = vmatpush3.msra.mxu1 %v6042_v55 }
 0xf1c   :  { %4474 = vmatprep.subr.mxu1 %v5000_v2 }
 0xf1d   :  { %4475 = vmatpush3.msra.mxu1 %v6049_v60 }
 0xf1e   :  { %4476 = vmatprep.subr.mxu1 %v5000_v2 }
 0xf1f   :  { %4477 = vmatpush3.msra.mxu1 %v6056_v0 }
 0xf20   :  { %4478 = vmatprep.subr.mxu1 %v5000_v2 }
 0xf21   :  { %4479 = vmatpush3.msra.mxu1 %v6063_v8 }
 0xf22   :  { %4480 = vmatprep.subr.mxu1 %v5000_v2 }
 0xf23   :  { %4481 = vmatpush3.msra.mxu1 %v6070_v11 }
 0xf24   :  { %4482 = vmatprep.subr.mxu1 %v5000_v2 }
 0xf25   :  { %4483 = vmatpush3.msra.mxu1 %v6077_v13 }
 0xf26   :  { %4484 = vmatprep.subr.mxu1 %v5000_v2 }
 0xf27   :  { %4485 = vmatpush3.msra.mxu1 %v6084_v15 }
 0xf28   :  { %4486 = vmatprep.subr.mxu1 %v5000_v2 }
 0xf29   :  { %4487 = vmatpush3.msra.mxu1 %v6091_v17 }
 0xf2a   :  { %4488 = vmatprep.subr.mxu1 %v5000_v2 }
 0xf2b   :  { %4489 = vmatpush3.msra.mxu1 %v6098_v19 }
 0xf2c   :  { %4490 = vmatprep.subr.mxu1 %v5000_v2 }
 0xf2d   :  { %4491 = vmatpush3.msra.mxu1 %v6105_v63 }
 0xf2e   :  { %4492 = vmatprep.subr.mxu1 %v5000_v2 }
 0xf2f   :  { %4493 = vmatpush3.msra.mxu1 %v6112_v6 }
 0xf30   :  { %4494 = vmatprep.subr.mxu1 %v5000_v2 }
 0xf31   :  { %4495 = vmatpush3.msra.mxu1 %v6119_v12 }
 0xf32   :  { %4496 = vmatprep.subr.mxu1 %v5000_v2 }
 0xf33   :  { %4497 = vmatpush3.msra.mxu1 %v6126_v16 }
 0xf34   :  { %4536 = vmatprep.subr.mxu1 %v5000_v2 }
 0xfd4   :  { %v1869_v1 = vpop.f32.mrf.mxu1 }
 0xfd5   :  { %v1873_v3 = vadd.f32 %v1869_v1, %v1522_v62  ;;  %v6732_v62 = vld [vmem:[%s7010_s6 + $0x8] sm:$0xff]  ;;  %v6739_v1 = vld [vmem:[%s7010_s6] sm:$0xff] }
 0xfd6   :  { %v4430_v5 = vpop.f32.mrf.mxu1 }
 0xfd7   :  { %4897 = vtanh.f32 %v1873_v3  ;;  %v1562_v3 = vadd.f32 %v6263_v45, %v6209_v28  ;;  %v1567_v45 = vadd.f32 %v6209_v28, %v6269_v48  ;;  %v6825_v48 = vld [vmem:[%s7011_s7] ss:$0 sm:$0xff] }
 0xfe4   :  { %v6353_v7 = vpop.eup %4897 }
 0xfe5   :  { %4464 = vmatmul.mubr.f32.vlgmr.msra.gmra.mxu0 %v6353_v7 }
 0xfe6   :  { %4502 = vmatpush3.msra.mxu0 %v6022_v43  ;;  %4533 = vmatprep.mubr.msk.f32.mxu0 %vm5001_vm0, %v5000_v2 }
 0xfe7   :  { %4503 = vmatprep.subr.mxu0 %v5000_v2 }
 0xfe8   :  { %4504 = vmatpush3.msra.mxu0 %v6028_v47 }
 0xfe9   :  { %4505 = vmatprep.subr.mxu0 %v5000_v2 }
 0xfea   :  { %4506 = vmatpush3.msra.mxu0 %v6035_v51 }
 0xfeb   :  { %4507 = vmatprep.subr.mxu0 %v5000_v2 }
 0xfec   :  { %4508 = vmatpush3.msra.mxu0 %v6042_v55 }
 0xfed   :  { %4509 = vmatprep.subr.mxu0 %v5000_v2 }
 0xfee   :  { %4510 = vmatpush3.msra.mxu0 %v6049_v60 }
 0xfef   :  { %4511 = vmatprep.subr.mxu0 %v5000_v2 }
 0xff0   :  { %4512 = vmatpush3.msra.mxu0 %v6056_v0 }
 0xff1   :  { %4513 = vmatprep.subr.mxu0 %v5000_v2 }
 0xff2   :  { %4514 = vmatpush3.msra.mxu0 %v6063_v8 }
 0xff3   :  { %4515 = vmatprep.subr.mxu0 %v5000_v2 }
 0xff4   :  { %4516 = vmatpush3.msra.mxu0 %v6070_v11 }
 0xff5   :  { %4517 = vmatprep.subr.mxu0 %v5000_v2 }
 0xff6   :  { %4518 = vmatpush3.msra.mxu0 %v6077_v13 }
 0xff7   :  { %4519 = vmatprep.subr.mxu0 %v5000_v2 }
 0xff8   :  { %4520 = vmatpush3.msra.mxu0 %v6084_v15 }
 0xff9   :  { %4521 = vmatprep.subr.mxu0 %v5000_v2 }
 0xffa   :  { %4522 = vmatpush3.msra.mxu0 %v6091_v17 }
 0xffb   :  { %4523 = vmatprep.subr.mxu0 %v5000_v2 }
 0xffc   :  { %4524 = vmatpush3.msra.mxu0 %v6098_v19 }
 0xffd   :  { %4525 = vmatprep.subr.mxu0 %v5000_v2 }
 0xffe   :  { %4526 = vmatpush3.msra.mxu0 %v6105_v63 }
 0xfff   :  { %4527 = vmatprep.subr.mxu0 %v5000_v2 }
0x1000   :  { %4528 = vmatpush3.msra.mxu0 %v6112_v6 }
0x1001   :  { %4529 = vmatprep.subr.mxu0 %v5000_v2 }
0x1002   :  { %4530 = vmatpush3.msra.mxu0 %v6119_v12 }
0x1003   :  { %4531 = vmatprep.subr.mxu0 %v5000_v2 }
0x1004   :  { %4532 = vmatpush3.msra.mxu0 %v6126_v16 }
0x1005   :  { %4571 = vmatprep.subr.mxu0 %v5000_v2 }
0x10a5   :  { %v1941_v21 = vpop.f32.mrf.mxu0 }
0x10a6   :  { %v1945_v23 = vadd.f32 %v1941_v21, %v1527_v9 }
0x10a7   :  { %v4465_v25 = vpop.f32.mrf.mxu0 }
0x10a8   :  { %4899 = vtanh.f32 %v1945_v23 }
0x10b5   :  { %v6392_v27 = vpop.eup %4899 }
0x10b6   :  { %4499 = vmatmul.mubr.f32.vlgmr.msra.gmra.mxu1 %v6392_v27 }
0x10b7   :  { %4537 = vmatpush3.msra.mxu1 %v6022_v43  ;;  %4568 = vmatprep.mubr.msk.f32.mxu1 %vm5001_vm0, %v5000_v2 }
0x10b8   :  { %4538 = vmatprep.subr.mxu1 %v5000_v2 }
0x10b9   :  { %4539 = vmatpush3.msra.mxu1 %v6028_v47 }
0x10ba   :  { %4540 = vmatprep.subr.mxu1 %v5000_v2 }
0x10bb   :  { %4541 = vmatpush3.msra.mxu1 %v6035_v51 }
0x10bc   :  { %4542 = vmatprep.subr.mxu1 %v5000_v2 }
0x10bd   :  { %4543 = vmatpush3.msra.mxu1 %v6042_v55 }
0x10be   :  { %4544 = vmatprep.subr.mxu1 %v5000_v2 }
0x10bf   :  { %4545 = vmatpush3.msra.mxu1 %v6049_v60 }
0x10c0   :  { %4546 = vmatprep.subr.mxu1 %v5000_v2 }
0x10c1   :  { %4547 = vmatpush3.msra.mxu1 %v6056_v0 }
0x10c2   :  { %4548 = vmatprep.subr.mxu1 %v5000_v2 }
0x10c3   :  { %4549 = vmatpush3.msra.mxu1 %v6063_v8 }
0x10c4   :  { %4550 = vmatprep.subr.mxu1 %v5000_v2 }
0x10c5   :  { %4551 = vmatpush3.msra.mxu1 %v6070_v11 }
0x10c6   :  { %4552 = vmatprep.subr.mxu1 %v5000_v2 }
0x10c7   :  { %4553 = vmatpush3.msra.mxu1 %v6077_v13 }
0x10c8   :  { %4554 = vmatprep.subr.mxu1 %v5000_v2 }
0x10c9   :  { %4555 = vmatpush3.msra.mxu1 %v6084_v15 }
0x10ca   :  { %4556 = vmatprep.subr.mxu1 %v5000_v2 }
0x10cb   :  { %4557 = vmatpush3.msra.mxu1 %v6091_v17 }
0x10cc   :  { %4558 = vmatprep.subr.mxu1 %v5000_v2 }
0x10cd   :  { %4559 = vmatpush3.msra.mxu1 %v6098_v19 }
0x10ce   :  { %4560 = vmatprep.subr.mxu1 %v5000_v2 }
0x10cf   :  { %4561 = vmatpush3.msra.mxu1 %v6105_v63 }
0x10d0   :  { %4562 = vmatprep.subr.mxu1 %v5000_v2 }
0x10d1   :  { %4563 = vmatpush3.msra.mxu1 %v6112_v6 }
0x10d2   :  { %4564 = vmatprep.subr.mxu1 %v5000_v2 }
0x10d3   :  { %4565 = vmatpush3.msra.mxu1 %v6119_v12 }
0x10d4   :  { %4566 = vmatprep.subr.mxu1 %v5000_v2 }
0x10d5   :  { %4567 = vmatpush3.msra.mxu1 %v6126_v16 }
0x10d6   :  { %4606 = vmatprep.subr.mxu1 %v5000_v2 }
0x1176   :  { %v2013_v29 = vpop.f32.mrf.mxu1 }
0x1177   :  { %v2017_v31 = vadd.f32 %v2013_v29, %v1532_v32 }
0x1178   :  { %v4500_v34 = vpop.f32.mrf.mxu1 }
0x1179   :  { %4901 = vtanh.f32 %v2017_v31  ;;  %v1572_v34 = vadd.f32 %v6825_v48, %v6267_v22  ;;  %v2768_v22 = vld [vmem:[%s7012_s8 + $0xe0] sm:$0xff] }
0x1186   :  { %v6431_v4 = vpop.eup %4901 }
0x1187   :  { %4534 = vmatmul.mubr.f32.vlgmr.msra.gmra.mxu0 %v6431_v4 }
0x1188   :  { %4572 = vmatpush3.msra.mxu0 %v6022_v43  ;;  %4603 = vmatprep.mubr.msk.f32.mxu0 %vm5001_vm0, %v5000_v2 }
0x1189   :  { %4573 = vmatprep.subr.mxu0 %v5000_v2 }
0x118a   :  { %4574 = vmatpush3.msra.mxu0 %v6028_v47 }
0x118b   :  { %4575 = vmatprep.subr.mxu0 %v5000_v2 }
0x118c   :  { %4576 = vmatpush3.msra.mxu0 %v6035_v51 }
0x118d   :  { %4577 = vmatprep.subr.mxu0 %v5000_v2 }
0x118e   :  { %4578 = vmatpush3.msra.mxu0 %v6042_v55 }
0x118f   :  { %4579 = vmatprep.subr.mxu0 %v5000_v2 }
0x1190   :  { %4580 = vmatpush3.msra.mxu0 %v6049_v60 }
0x1191   :  { %4581 = vmatprep.subr.mxu0 %v5000_v2 }
0x1192   :  { %4582 = vmatpush3.msra.mxu0 %v6056_v0 }
0x1193   :  { %4583 = vmatprep.subr.mxu0 %v5000_v2 }
0x1194   :  { %4584 = vmatpush3.msra.mxu0 %v6063_v8 }
0x1195   :  { %4585 = vmatprep.subr.mxu0 %v5000_v2 }
0x1196   :  { %4586 = vmatpush3.msra.mxu0 %v6070_v11 }
0x1197   :  { %4587 = vmatprep.subr.mxu0 %v5000_v2 }
0x1198   :  { %4588 = vmatpush3.msra.mxu0 %v6077_v13 }
0x1199   :  { %4589 = vmatprep.subr.mxu0 %v5000_v2 }
0x119a   :  { %4590 = vmatpush3.msra.mxu0 %v6084_v15 }
0x119b   :  { %4591 = vmatprep.subr.mxu0 %v5000_v2 }
0x119c   :  { %4592 = vmatpush3.msra.mxu0 %v6091_v17 }
0x119d   :  { %4593 = vmatprep.subr.mxu0 %v5000_v2 }
0x119e   :  { %4594 = vmatpush3.msra.mxu0 %v6098_v19 }
0x119f   :  { %4595 = vmatprep.subr.mxu0 %v5000_v2 }
0x11a0   :  { %4596 = vmatpush3.msra.mxu0 %v6105_v63 }
0x11a1   :  { %4597 = vmatprep.subr.mxu0 %v5000_v2 }
0x11a2   :  { %4598 = vmatpush3.msra.mxu0 %v6112_v6 }
0x11a3   :  { %4599 = vmatprep.subr.mxu0 %v5000_v2 }
0x11a4   :  { %4600 = vmatpush3.msra.mxu0 %v6119_v12 }
0x11a5   :  { %4601 = vmatprep.subr.mxu0 %v5000_v2 }
0x11a6   :  { %4602 = vmatpush3.msra.mxu0 %v6126_v16 }
0x11a7   :  { %4641 = vmatprep.subr.mxu0 %v5000_v2 }
0x1247   :  { %v2085_v24 = vpop.f32.mrf.mxu0 }
0x1248   :  { %v2089_v30 = vadd.f32 %v2085_v24, %v1537_v20 }
0x1249   :  { %v4535_v33 = vpop.f32.mrf.mxu0 }
0x124a   :  { %4903 = vtanh.f32 %v2089_v30  ;;  %v2770_v33 = vld [vmem:[%s7012_s8 + $0xf0] sm:$0xff] }
0x1257   :  { %v6470_v35 = vpop.eup %4903 }
0x1258   :  { %4569 = vmatmul.mubr.f32.vlgmr.msra.gmra.mxu1 %v6470_v35 }
0x1259   :  { %4607 = vmatpush3.msra.mxu1 %v6022_v43  ;;  %4638 = vmatprep.mubr.msk.f32.mxu1 %vm5001_vm0, %v5000_v2 }
0x125a   :  { %4608 = vmatprep.subr.mxu1 %v5000_v2 }
0x125b   :  { %4609 = vmatpush3.msra.mxu1 %v6028_v47 }
0x125c   :  { %4610 = vmatprep.subr.mxu1 %v5000_v2 }
0x125d   :  { %4611 = vmatpush3.msra.mxu1 %v6035_v51 }
0x125e   :  { %4612 = vmatprep.subr.mxu1 %v5000_v2 }
0x125f   :  { %4613 = vmatpush3.msra.mxu1 %v6042_v55 }
0x1260   :  { %4614 = vmatprep.subr.mxu1 %v5000_v2 }
0x1261   :  { %4615 = vmatpush3.msra.mxu1 %v6049_v60 }
0x1262   :  { %4616 = vmatprep.subr.mxu1 %v5000_v2 }
0x1263   :  { %4617 = vmatpush3.msra.mxu1 %v6056_v0 }
0x1264   :  { %4618 = vmatprep.subr.mxu1 %v5000_v2 }
0x1265   :  { %4619 = vmatpush3.msra.mxu1 %v6063_v8 }
0x1266   :  { %4620 = vmatprep.subr.mxu1 %v5000_v2 }
0x1267   :  { %4621 = vmatpush3.msra.mxu1 %v6070_v11 }
0x1268   :  { %4622 = vmatprep.subr.mxu1 %v5000_v2 }
0x1269   :  { %4623 = vmatpush3.msra.mxu1 %v6077_v13 }
0x126a   :  { %4624 = vmatprep.subr.mxu1 %v5000_v2 }
0x126b   :  { %4625 = vmatpush3.msra.mxu1 %v6084_v15 }
0x126c   :  { %4626 = vmatprep.subr.mxu1 %v5000_v2 }
0x126d   :  { %4627 = vmatpush3.msra.mxu1 %v6091_v17 }
0x126e   :  { %4628 = vmatprep.subr.mxu1 %v5000_v2 }
0x126f   :  { %4629 = vmatpush3.msra.mxu1 %v6098_v19 }
0x1270   :  { %4630 = vmatprep.subr.mxu1 %v5000_v2 }
0x1271   :  { %4631 = vmatpush3.msra.mxu1 %v6105_v63 }
0x1272   :  { %4632 = vmatprep.subr.mxu1 %v5000_v2 }
0x1273   :  { %4633 = vmatpush3.msra.mxu1 %v6112_v6 }
0x1274   :  { %4634 = vmatprep.subr.mxu1 %v5000_v2 }
0x1275   :  { %4635 = vmatpush3.msra.mxu1 %v6119_v12 }
0x1276   :  { %4636 = vmatprep.subr.mxu1 %v5000_v2 }
0x1277   :  { %4637 = vmatpush3.msra.mxu1 %v6126_v16 }
0x1278   :  { %4676 = vmatprep.subr.mxu1 %v5000_v2 }
0x1318   :  { %v2157_v37 = vpop.f32.mrf.mxu1 }
0x1319   :  { %v2161_v40 = vadd.f32 %v2157_v37, %v1542_v26  ;;  %v2769_v37 = vld [vmem:[%s7012_s8 + $0xe8] sm:$0xff] }
0x131a   :  { %v4570_v14 = vpop.f32.mrf.mxu1 }
0x131b   :  { %4905 = vtanh.f32 %v2161_v40  ;;  %v2767_v40 = vld [vmem:[%s7012_s8 + $0xd8] sm:$0xff]  ;;  %v2766_v14 = vld [vmem:[%s7012_s8 + $0xd0] sm:$0xff] }
0x1328   :  { %v6509_v39 = vpop.eup %4905 }
0x1329   :  { %4604 = vmatmul.mubr.f32.vlgmr.msra.gmra.mxu0 %v6509_v39 }
0x132a   :  { %4642 = vmatpush3.msra.mxu0 %v6022_v43  ;;  %4673 = vmatprep.mubr.msk.f32.mxu0 %vm5001_vm0, %v5000_v2 }
0x132b   :  { %4643 = vmatprep.subr.mxu0 %v5000_v2 }
0x132c   :  { %4644 = vmatpush3.msra.mxu0 %v6028_v47 }
0x132d   :  { %4645 = vmatprep.subr.mxu0 %v5000_v2 }
0x132e   :  { %4646 = vmatpush3.msra.mxu0 %v6035_v51 }
0x132f   :  { %4647 = vmatprep.subr.mxu0 %v5000_v2 }
0x1330   :  { %4648 = vmatpush3.msra.mxu0 %v6042_v55 }
0x1331   :  { %4649 = vmatprep.subr.mxu0 %v5000_v2 }
0x1332   :  { %4650 = vmatpush3.msra.mxu0 %v6049_v60 }
0x1333   :  { %4651 = vmatprep.subr.mxu0 %v5000_v2 }
0x1334   :  { %4652 = vmatpush3.msra.mxu0 %v6056_v0 }
0x1335   :  { %4653 = vmatprep.subr.mxu0 %v5000_v2 }
0x1336   :  { %4654 = vmatpush3.msra.mxu0 %v6063_v8 }
0x1337   :  { %4655 = vmatprep.subr.mxu0 %v5000_v2 }
0x1338   :  { %4656 = vmatpush3.msra.mxu0 %v6070_v11 }
0x1339   :  { %4657 = vmatprep.subr.mxu0 %v5000_v2 }
0x133a   :  { %4658 = vmatpush3.msra.mxu0 %v6077_v13 }
0x133b   :  { %4659 = vmatprep.subr.mxu0 %v5000_v2 }
0x133c   :  { %4660 = vmatpush3.msra.mxu0 %v6084_v15 }
0x133d   :  { %4661 = vmatprep.subr.mxu0 %v5000_v2 }
0x133e   :  { %4662 = vmatpush3.msra.mxu0 %v6091_v17 }
0x133f   :  { %4663 = vmatprep.subr.mxu0 %v5000_v2 }
0x1340   :  { %4664 = vmatpush3.msra.mxu0 %v6098_v19 }
0x1341   :  { %4665 = vmatprep.subr.mxu0 %v5000_v2 }
0x1342   :  { %4666 = vmatpush3.msra.mxu0 %v6105_v63 }
0x1343   :  { %4667 = vmatprep.subr.mxu0 %v5000_v2 }
0x1344   :  { %4668 = vmatpush3.msra.mxu0 %v6112_v6 }
0x1345   :  { %4669 = vmatprep.subr.mxu0 %v5000_v2 }
0x1346   :  { %4670 = vmatpush3.msra.mxu0 %v6119_v12 }
0x1347   :  { %4671 = vmatprep.subr.mxu0 %v5000_v2 }
0x1348   :  { %4672 = vmatpush3.msra.mxu0 %v6126_v16 }
0x1349   :  { %4711 = vmatprep.subr.mxu0 %v5000_v2 }
0x13e9   :  { %v2229_v42 = vpop.f32.mrf.mxu0 }
0x13ea   :  { %v2233_v52 = vadd.f32 %v2229_v42, %v1547_v41  ;;  %v2765_v41 = vld [vmem:[%s7012_s8 + $0xc8] sm:$0xff]  ;;  %v2764_v42 = vld [vmem:[%s7012_s8 + $0xc0] sm:$0xff] }
0x13eb   :  { %v4605_v53 = vpop.f32.mrf.mxu0 }
0x13ec   :  { %4907 = vtanh.f32 %v2233_v52  ;;  %v2763_v52 = vld [vmem:[%s7012_s8 + $0xb8] sm:$0xff]  ;;  %v2762_v53 = vld [vmem:[%s7012_s8 + $0xb0] sm:$0xff] }
0x13f9   :  { %v6548_v54 = vpop.eup %4907 }
0x13fa   :  { %4639 = vmatmul.mubr.f32.vlgmr.msra.gmra.mxu1 %v6548_v54 }
0x13fb   :  { %4677 = vmatpush3.msra.mxu1 %v6022_v43  ;;  %4708 = vmatprep.mubr.msk.f32.mxu1 %vm5001_vm0, %v5000_v2  ;;  %v1552_v43 = vadd.f32 %v6259_v10, %v6209_v28  ;;  %v6602_v10 = vld [vmem:[%s7010_s6 + $0x70] sm:$0xff] }
0x13fc   :  { %4678 = vmatprep.subr.mxu1 %v5000_v2 }
0x13fd   :  { %4679 = vmatpush3.msra.mxu1 %v6028_v47 }
0x13fe   :  { %4680 = vmatprep.subr.mxu1 %v5000_v2 }
0x13ff   :  { %4681 = vmatpush3.msra.mxu1 %v6035_v51 }
0x1400   :  { %4682 = vmatprep.subr.mxu1 %v5000_v2 }
0x1401   :  { %4683 = vmatpush3.msra.mxu1 %v6042_v55 }
0x1402   :  { %4684 = vmatprep.subr.mxu1 %v5000_v2 }
0x1403   :  { %4685 = vmatpush3.msra.mxu1 %v6049_v60 }
0x1404   :  { %4686 = vmatprep.subr.mxu1 %v5000_v2 }
0x1405   :  { %4687 = vmatpush3.msra.mxu1 %v6056_v0  ;;  %v6593_v0 = vld [vmem:[%s7010_s6 + $0x78] sm:$0xff] }
0x1406   :  { %4688 = vmatprep.subr.mxu1 %v5000_v2 }
0x1407   :  { %4689 = vmatpush3.msra.mxu1 %v6063_v8 }
0x1408   :  { %4690 = vmatprep.subr.mxu1 %v5000_v2 }
0x1409   :  { %4691 = vmatpush3.msra.mxu1 %v6070_v11 }
0x140a   :  { %4692 = vmatprep.subr.mxu1 %v5000_v2 }
0x140b   :  { %4693 = vmatpush3.msra.mxu1 %v6077_v13 }
0x140c   :  { %4694 = vmatprep.subr.mxu1 %v5000_v2 }
0x140d   :  { %4695 = vmatpush3.msra.mxu1 %v6084_v15 }
0x140e   :  { %4696 = vmatprep.subr.mxu1 %v5000_v2 }
0x140f   :  { %4697 = vmatpush3.msra.mxu1 %v6091_v17 }
0x1410   :  { %4698 = vmatprep.subr.mxu1 %v5000_v2 }
0x1411   :  { %4699 = vmatpush3.msra.mxu1 %v6098_v19 }
0x1412   :  { %4700 = vmatprep.subr.mxu1 %v5000_v2 }
0x1413   :  { %4701 = vmatpush3.msra.mxu1 %v6105_v63 }
0x1414   :  { %4702 = vmatprep.subr.mxu1 %v5000_v2 }
0x1415   :  { %4703 = vmatpush3.msra.mxu1 %v6112_v6 }
0x1416   :  { %4704 = vmatprep.subr.mxu1 %v5000_v2 }
0x1417   :  { %4705 = vmatpush3.msra.mxu1 %v6119_v12 }
0x1418   :  { %4706 = vmatprep.subr.mxu1 %v5000_v2 }
0x1419   :  { %4707 = vmatpush3.msra.mxu1 %v6126_v16 }
0x141a   :  { %4746 = vmatprep.subr.mxu1 %v5000_v2 }
0x14ba   :  { %v2301_v47 = vpop.f32.mrf.mxu1 }
0x14bb   :  { %v2305_v51 = vadd.f32 %v2301_v47, %v1552_v43  ;;  %v2761_v43 = vld [vmem:[%s7012_s8 + $0xa8] sm:$0xff]  ;;  %v2760_v47 = vld [vmem:[%s7012_s8 + $0xa0] sm:$0xff] }
0x14bc   :  { %v4640_v55 = vpop.f32.mrf.mxu1 }
0x14bd   :  { %4909 = vtanh.f32 %v2305_v51  ;;  %v2759_v51 = vld [vmem:[%s7012_s8 + $0x98] sm:$0xff]  ;;  %v2758_v55 = vld [vmem:[%s7012_s8 + $0x90] sm:$0xff] }
0x14ca   :  { %v6587_v60 = vpop.eup %4909 }
0x14cb   :  { %4674 = vmatmul.mubr.f32.vlgmr.msra.gmra.mxu0 %v6587_v60 }
0x14cc   :  { %4712 = vmatpush3.msra.mxu0 %v6593_v0  ;;  %4743 = vmatprep.mubr.msk.f32.mxu0 %vm5001_vm0, %v5000_v2 }
0x14cd   :  { %4713 = vmatprep.subr.mxu0 %v5000_v2 }
0x14ce   :  { %4714 = vmatpush3.msra.mxu0 %v6602_v10 }
0x14cf   :  { %4715 = vmatprep.subr.mxu0 %v5000_v2 }
0x14d0   :  { %4716 = vmatpush3.msra.mxu0 %v6609_v44 }
0x14d1   :  { %4717 = vmatprep.subr.mxu0 %v5000_v2 }
0x14d2   :  { %4718 = vmatpush3.msra.mxu0 %v6616_v18 }
0x14d3   :  { %4719 = vmatprep.subr.mxu0 %v5000_v2 }
0x14d4   :  { %4720 = vmatpush3.msra.mxu0 %v6623_v38 }
0x14d5   :  { %4721 = vmatprep.subr.mxu0 %v5000_v2 }
0x14d6   :  { %4722 = vmatpush3.msra.mxu0 %v6630_v57 }
0x14d7   :  { %4723 = vmatprep.subr.mxu0 %v5000_v2 }
0x14d8   :  { %4724 = vmatpush3.msra.mxu0 %v6063_v8  ;;  %v1557_v8 = vadd.f32 %v6209_v28, %v6265_v46  ;;  %v6711_v46 = vld [vmem:[%s7010_s6 + $0x20] sm:$0xff]  ;;  %v2771_v28 = vld [vmem:[%s7012_s8 + $0xf8] sm:$0xff] }
0x14d9   :  { %4725 = vmatprep.subr.mxu0 %v5000_v2 }
0x14da   :  { %4726 = vmatpush3.msra.mxu0 %v6070_v11 }
0x14db   :  { %4727 = vmatprep.subr.mxu0 %v5000_v2 }
0x14dc   :  { %4728 = vmatpush3.msra.mxu0 %v6077_v13 }
0x14dd   :  { %4729 = vmatprep.subr.mxu0 %v5000_v2 }
0x14de   :  { %4730 = vmatpush3.msra.mxu0 %v6084_v15 }
0x14df   :  { %4731 = vmatprep.subr.mxu0 %v5000_v2 }
0x14e0   :  { %4732 = vmatpush3.msra.mxu0 %v6091_v17 }
0x14e1   :  { %4733 = vmatprep.subr.mxu0 %v5000_v2 }
0x14e2   :  { %4734 = vmatpush3.msra.mxu0 %v6098_v19  ;;  %v6676_v19 = vld [vmem:[%s7010_s6 + $0x48] sm:$0xff] }
0x14e3   :  { %4735 = vmatprep.subr.mxu0 %v5000_v2 }
0x14e4   :  { %4736 = vmatpush3.msra.mxu0 %v6105_v63  ;;  %v6683_v63 = vld [vmem:[%s7010_s6 + $0x40] sm:$0xff] }
0x14e5   :  { %4737 = vmatprep.subr.mxu0 %v5000_v2 }
0x14e6   :  { %4738 = vmatpush3.msra.mxu0 %v6112_v6  ;;  %v6690_v6 = vld [vmem:[%s7010_s6 + $0x38] sm:$0xff] }
0x14e7   :  { %4739 = vmatprep.subr.mxu0 %v5000_v2 }
0x14e8   :  { %4740 = vmatpush3.msra.mxu0 %v6119_v12  ;;  %v6697_v12 = vld [vmem:[%s7010_s6 + $0x30] sm:$0xff] }
0x14e9   :  { %4741 = vmatprep.subr.mxu0 %v5000_v2 }
0x14ea   :  { %4742 = vmatpush3.msra.mxu0 %v6126_v16  ;;  %v6704_v16 = vld [vmem:[%s7010_s6 + $0x28] sm:$0xff] }
0x14eb   :  { %4781 = vmatprep.subr.mxu0 %v5000_v2 }
0x158b   :  { %v2373_v11 = vpop.f32.mrf.mxu0 }
0x158c   :  { %v2377_v13 = vadd.f32 %v2373_v11, %v1557_v8  ;;  %v2751_v8 = vld [vmem:[%s7012_s8 + $0x58] sm:$0xff]  ;;  %v2750_v11 = vld [vmem:[%s7012_s8 + $0x50] sm:$0xff] }
0x158d   :  { %v4675_v15 = vpop.f32.mrf.mxu0 }
0x158e   :  { %4911 = vtanh.f32 %v2377_v13  ;;  %v2749_v13 = vld [vmem:[%s7012_s8 + $0x48] sm:$0xff]  ;;  %v2748_v15 = vld [vmem:[%s7012_s8 + $0x40] sm:$0xff] }
0x159b   :  { %v6656_v17 = vpop.eup %4911 }
0x159c   :  { %4709 = vmatmul.mubr.f32.vlgmr.msra.gmra.mxu1 %v6656_v17 }
0x159d   :  { %4747 = vmatpush3.msra.mxu1 %v6593_v0  ;;  %4778 = vmatprep.mubr.msk.f32.mxu1 %vm5001_vm0, %v5000_v2 }
0x159e   :  { %4748 = vmatprep.subr.mxu1 %v5000_v2 }
0x159f   :  { %4749 = vmatpush3.msra.mxu1 %v6602_v10 }
0x15a0   :  { %4750 = vmatprep.subr.mxu1 %v5000_v2 }
0x15a1   :  { %4751 = vmatpush3.msra.mxu1 %v6609_v44 }
0x15a2   :  { %4752 = vmatprep.subr.mxu1 %v5000_v2 }
0x15a3   :  { %4753 = vmatpush3.msra.mxu1 %v6616_v18 }
0x15a4   :  { %4754 = vmatprep.subr.mxu1 %v5000_v2 }
0x15a5   :  { %4755 = vmatpush3.msra.mxu1 %v6623_v38 }
0x15a6   :  { %4756 = vmatprep.subr.mxu1 %v5000_v2 }
0x15a7   :  { %4757 = vmatpush3.msra.mxu1 %v6630_v57 }
0x15a8   :  { %4758 = vmatprep.subr.mxu1 %v5000_v2 }
0x15a9   :  { %4759 = vmatpush3.msra.mxu1 %v6676_v19 }
0x15aa   :  { %4760 = vmatprep.subr.mxu1 %v5000_v2 }
0x15ab   :  { %4761 = vmatpush3.msra.mxu1 %v6683_v63 }
0x15ac   :  { %4762 = vmatprep.subr.mxu1 %v5000_v2 }
0x15ad   :  { %4763 = vmatpush3.msra.mxu1 %v6690_v6 }
0x15ae   :  { %4764 = vmatprep.subr.mxu1 %v5000_v2 }
0x15af   :  { %4765 = vmatpush3.msra.mxu1 %v6697_v12 }
0x15b0   :  { %4766 = vmatprep.subr.mxu1 %v5000_v2 }
0x15b1   :  { %4767 = vmatpush3.msra.mxu1 %v6704_v16 }
0x15b2   :  { %4768 = vmatprep.subr.mxu1 %v5000_v2 }
0x15b3   :  { %4769 = vmatpush3.msra.mxu1 %v6711_v46 }
0x15b4   :  { %4770 = vmatprep.subr.mxu1 %v5000_v2 }
0x15b5   :  { %4771 = vmatpush3.msra.mxu1 %v6718_v58 }
0x15b6   :  { %4772 = vmatprep.subr.mxu1 %v5000_v2 }
0x15b7   :  { %4773 = vmatpush3.msra.mxu1 %v6725_v59 }
0x15b8   :  { %4774 = vmatprep.subr.mxu1 %v5000_v2 }
0x15b9   :  { %4775 = vmatpush3.msra.mxu1 %v6732_v62 }
0x15ba   :  { %4776 = vmatprep.subr.mxu1 %v5000_v2 }
0x15bb   :  { %4777 = vmatpush3.msra.mxu1 %v6739_v1 }
0x15bc   :  { %4816 = vmatprep.subr.mxu1 %v5000_v2 }
0x165c   :  { %v2445_v5 = vpop.f32.mrf.mxu1 }
0x165d   :  { %v2449_v9 = vadd.f32 %v2445_v5, %v1562_v3 }
0x165e   :  { %v4710_v21 = vpop.f32.mrf.mxu1 }
0x165f   :  { %4913 = vtanh.f32 %v2449_v9 }
0x166c   :  { %v6745_v23 = vpop.eup %4913 }
0x166d   :  { %4744 = vmatmul.mubr.f32.vlgmr.msra.gmra.mxu0 %v6745_v23 }
0x166e   :  { %4782 = vmatpush3.msra.mxu0 %v6593_v0  ;;  %4813 = vmatprep.mubr.msk.f32.mxu0 %vm5001_vm0, %v5000_v2 }
0x166f   :  { %4783 = vmatprep.subr.mxu0 %v5000_v2 }
0x1670   :  { %4784 = vmatpush3.msra.mxu0 %v6602_v10 }
0x1671   :  { %4785 = vmatprep.subr.mxu0 %v5000_v2 }
0x1672   :  { %4786 = vmatpush3.msra.mxu0 %v6609_v44 }
0x1673   :  { %4787 = vmatprep.subr.mxu0 %v5000_v2 }
0x1674   :  { %4788 = vmatpush3.msra.mxu0 %v6616_v18 }
0x1675   :  { %4789 = vmatprep.subr.mxu0 %v5000_v2 }
0x1676   :  { %4790 = vmatpush3.msra.mxu0 %v6623_v38 }
0x1677   :  { %4791 = vmatprep.subr.mxu0 %v5000_v2 }
0x1678   :  { %4792 = vmatpush3.msra.mxu0 %v6630_v57 }
0x1679   :  { %4793 = vmatprep.subr.mxu0 %v5000_v2 }
0x167a   :  { %4794 = vmatpush3.msra.mxu0 %v6676_v19 }
0x167b   :  { %4795 = vmatprep.subr.mxu0 %v5000_v2 }
0x167c   :  { %4796 = vmatpush3.msra.mxu0 %v6683_v63 }
0x167d   :  { %4797 = vmatprep.subr.mxu0 %v5000_v2 }
0x167e   :  { %4798 = vmatpush3.msra.mxu0 %v6690_v6 }
0x167f   :  { %4799 = vmatprep.subr.mxu0 %v5000_v2 }
0x1680   :  { %4800 = vmatpush3.msra.mxu0 %v6697_v12 }
0x1681   :  { %4801 = vmatprep.subr.mxu0 %v5000_v2 }
0x1682   :  { %4802 = vmatpush3.msra.mxu0 %v6704_v16 }
0x1683   :  { %4803 = vmatprep.subr.mxu0 %v5000_v2 }
0x1684   :  { %4804 = vmatpush3.msra.mxu0 %v6711_v46 }
0x1685   :  { %4805 = vmatprep.subr.mxu0 %v5000_v2 }
0x1686   :  { %4806 = vmatpush3.msra.mxu0 %v6718_v58 }
0x1687   :  { %4807 = vmatprep.subr.mxu0 %v5000_v2 }
0x1688   :  { %4808 = vmatpush3.msra.mxu0 %v6725_v59 }
0x1689   :  { %4809 = vmatprep.subr.mxu0 %v5000_v2 }
0x168a   :  { %4810 = vmatpush3.msra.mxu0 %v6732_v62 }
0x168b   :  { %4811 = vmatprep.subr.mxu0 %v5000_v2 }
0x168c   :  { %4812 = vmatpush3.msra.mxu0 %v6739_v1 }
0x168d   :  { %2784 = vmatprep.subr.mxu0 %v2771_v28 }
0x172d   :  { %v2517_v25 = vpop.f32.mrf.mxu0 }
0x172e   :  { %v2521_v32 = vadd.f32 %v2517_v25, %v1567_v45 }
0x172f   :  { %v4745_v29 = vpop.f32.mrf.mxu0 }
0x1730   :  { %4915 = vtanh.f32 %v2521_v32 }
0x173d   :  { %v6783_v31 = vpop.eup %4915 }
0x173e   :  { %4779 = vmatmul.mubr.f32.vlgmr.msra.gmra.mxu1 %v6783_v31 }
0x173f   :  { %4817 = vmatpush3.msra.mxu1 %v6593_v0  ;;  %4848 = vmatprep.mubr.msk.f32.mxu1 %vm5001_vm0, %v5000_v2  ;;  %v2757_v0 = vld [vmem:[%s7012_s8 + $0x88] sm:$0xff] }
0x1740   :  { %4818 = vmatprep.subr.mxu1 %v5000_v2 }
0x1741   :  { %4819 = vmatpush3.msra.mxu1 %v6602_v10  ;;  %v2756_v10 = vld [vmem:[%s7012_s8 + $0x80] sm:$0xff] }
0x1742   :  { %4820 = vmatprep.subr.mxu1 %v5000_v2 }
0x1743   :  { %4821 = vmatpush3.msra.mxu1 %v6609_v44  ;;  %v2755_v44 = vld [vmem:[%s7012_s8 + $0x78] sm:$0xff] }
0x1744   :  { %4822 = vmatprep.subr.mxu1 %v5000_v2 }
0x1745   :  { %4823 = vmatpush3.msra.mxu1 %v6616_v18  ;;  %v2754_v18 = vld [vmem:[%s7012_s8 + $0x70] sm:$0xff] }
0x1746   :  { %4824 = vmatprep.subr.mxu1 %v5000_v2 }
0x1747   :  { %4825 = vmatpush3.msra.mxu1 %v6623_v38  ;;  %v2753_v38 = vld [vmem:[%s7012_s8 + $0x68] sm:$0xff] }
0x1748   :  { %4826 = vmatprep.subr.mxu1 %v5000_v2 }
0x1749   :  { %4827 = vmatpush3.msra.mxu1 %v6630_v57  ;;  %v2752_v57 = vld [vmem:[%s7012_s8 + $0x60] sm:$0xff] }
0x174a   :  { %4828 = vmatprep.subr.mxu1 %v5000_v2 }
0x174b   :  { %4829 = vmatpush3.msra.mxu1 %v6676_v19  ;;  %v2747_v19 = vld [vmem:[%s7012_s8 + $0x38] sm:$0xff] }
0x174c   :  { %4830 = vmatprep.subr.mxu1 %v5000_v2 }
0x174d   :  { %4831 = vmatpush3.msra.mxu1 %v6683_v63  ;;  %v2746_v63 = vld [vmem:[%s7012_s8 + $0x30] sm:$0xff] }
0x174e   :  { %4832 = vmatprep.subr.mxu1 %v5000_v2 }
0x174f   :  { %4833 = vmatpush3.msra.mxu1 %v6690_v6  ;;  %v2745_v6 = vld [vmem:[%s7012_s8 + $0x28] sm:$0xff] }
0x1750   :  { %4834 = vmatprep.subr.mxu1 %v5000_v2 }
0x1751   :  { %4835 = vmatpush3.msra.mxu1 %v6697_v12  ;;  %v2744_v12 = vld [vmem:[%s7012_s8 + $0x20] sm:$0xff] }
0x1752   :  { %4836 = vmatprep.subr.mxu1 %v5000_v2 }
0x1753   :  { %4837 = vmatpush3.msra.mxu1 %v6704_v16  ;;  %v2743_v16 = vld [vmem:[%s7012_s8 + $0x18] sm:$0xff] }
0x1754   :  { %4838 = vmatprep.subr.mxu1 %v5000_v2 }
0x1755   :  { %4839 = vmatpush3.msra.mxu1 %v6711_v46  ;;  %v2742_v46 = vld [vmem:[%s7012_s8 + $0x10] sm:$0xff] }
0x1756   :  { %4840 = vmatprep.subr.mxu1 %v5000_v2 }
0x1757   :  { %4841 = vmatpush3.msra.mxu1 %v6718_v58  ;;  %v2741_v58 = vld [vmem:[%s7012_s8 + $0x8] sm:$0xff] }
0x1758   :  { %4842 = vmatprep.subr.mxu1 %v5000_v2 }
0x1759   :  { %4843 = vmatpush3.msra.mxu1 %v6725_v59  ;;  %v2740_v59 = vld [vmem:[%s7012_s8] sm:$0xff] }
0x175a   :  { %4844 = vmatprep.subr.mxu1 %v5000_v2 }
0x175b   :  { %4845 = vmatpush3.msra.mxu1 %v6732_v62 }
0x175c   :  { %4846 = vmatprep.subr.mxu1 %v5000_v2 }
0x175d   :  { %4847 = vmatpush3.msra.mxu1 %v6739_v1 }
0x17fe   :  { %v2589_v20 = vpop.f32.mrf.mxu1 }
0x17ff   :  { %v2593_v24 = vadd.f32 %v2589_v20, %v1572_v34 }
0x1800   :  { %v4780_v30 = vpop.f32.mrf.mxu1 }
0x1801   :  { %4917 = vtanh.f32 %v2593_v24 }
0x180e   :  { %v6832_v26 = vpop.eup %4917 }
0x180f   :  { %4814 = vmatmul.mubr.f32.vlgmr.msra.gmra.mxu0 %v6832_v26 }
0x1810   :  { %2785 = vmatpush1.msra.mxu0 %v2770_v33  ;;  %2848 = vmatprep.mubr.f32.mxu0 %v5000_v2 }
0x1811   :  { %2786 = vmatprep.subr.mxu0 %v2769_v37 }
0x1812   :  { %2787 = vmatpush1.msra.mxu0 %v2768_v22 }
0x1813   :  { %2788 = vmatprep.subr.mxu0 %v2767_v40 }
0x1814   :  { %2789 = vmatpush1.msra.mxu0 %v2766_v14 }
0x1815   :  { %2790 = vmatprep.subr.mxu0 %v2765_v41 }
0x1816   :  { %2791 = vmatpush1.msra.mxu0 %v2764_v42 }
0x1817   :  { %2792 = vmatprep.subr.mxu0 %v2763_v52 }
0x1818   :  { %2793 = vmatpush1.msra.mxu0 %v2762_v53 }
0x1819   :  { %2794 = vmatprep.subr.mxu0 %v2761_v43 }
0x181a   :  { %2795 = vmatpush1.msra.mxu0 %v2760_v47 }
0x181b   :  { %2796 = vmatprep.subr.mxu0 %v2759_v51 }
0x181c   :  { %2797 = vmatpush1.msra.mxu0 %v2758_v55 }
0x181d   :  { %2798 = vmatprep.subr.mxu0 %v2757_v0 }
0x181e   :  { %2799 = vmatpush1.msra.mxu0 %v2756_v10 }
0x181f   :  { %2800 = vmatprep.subr.mxu0 %v2755_v44 }
0x1820   :  { %2801 = vmatpush1.msra.mxu0 %v2754_v18 }
0x1821   :  { %2802 = vmatprep.subr.mxu0 %v2753_v38 }
0x1822   :  { %2803 = vmatpush1.msra.mxu0 %v2752_v57 }
0x1823   :  { %2804 = vmatprep.subr.mxu0 %v2751_v8 }
0x1824   :  { %2805 = vmatpush1.msra.mxu0 %v2750_v11 }
0x1825   :  { %2806 = vmatprep.subr.mxu0 %v2749_v13 }
0x1826   :  { %2807 = vmatpush1.msra.mxu0 %v2748_v15 }
0x1827   :  { %2808 = vmatprep.subr.mxu0 %v2747_v19 }
0x1828   :  { %2809 = vmatpush1.msra.mxu0 %v2746_v63 }
0x1829   :  { %2810 = vmatprep.subr.mxu0 %v2745_v6 }
0x182a   :  { %2811 = vmatpush1.msra.mxu0 %v2744_v12 }
0x182b   :  { %2812 = vmatprep.subr.mxu0 %v2743_v16 }
0x182c   :  { %2813 = vmatpush1.msra.mxu0 %v2742_v46 }
0x182d   :  { %2814 = vmatprep.subr.mxu0 %v2741_v58 }
0x182e   :  { %2815 = vmatpush1.msra.mxu0 %v2740_v59 }
0x182f   :  { %2849 = vmatmul.mubr.f32.vlgmr.msra.gmra.mxu0 %v6212_v36  ;;  %v1577_v36 = vadd.f32 %v6825_v48, %v6273_v50 }
0x1830   :  { %2854 = vmatprep.mubr.f32.mxu0 %v5000_v2 }
0x1833   :  { %2855 = vmatmul.mubr.f32.gmra.mxu0 %v6276_v56 }
0x1834   :  { %2860 = vmatprep.mubr.f32.mxu0 %v5000_v2 }
0x1837   :  { %2861 = vmatmul.mubr.f32.gmra.mxu0 %v6314_v61 }
0x1838   :  { %2866 = vmatprep.mubr.f32.mxu0 %v5000_v2 }
0x183b   :  { %2867 = vmatmul.mubr.f32.gmra.mxu0 %v6353_v7 }
0x183c   :  { %2872 = vmatprep.mubr.f32.mxu0 %v5000_v2 }
0x183f   :  { %2873 = vmatmul.mubr.f32.gmra.mxu0 %v6392_v27 }
0x1840   :  { %2878 = vmatprep.mubr.f32.mxu0 %v5000_v2 }
0x1843   :  { %2879 = vmatmul.mubr.f32.gmra.mxu0 %v6431_v4  ;;  %v2774_v4 = vlaneseq }
0x1844   :  { %2884 = vmatprep.mubr.f32.mxu0 %v5000_v2 }
0x1847   :  { %2885 = vmatmul.mubr.f32.gmra.mxu0 %v6470_v35  ;;  %v2775_v35 = vshrl.u32 %v2774_v4, 7 }
0x1848   :  { %2890 = vmatprep.mubr.f32.mxu0 %v5000_v2 }
0x184b   :  { %2891 = vmatmul.mubr.f32.gmra.mxu0 %v6509_v39  ;;  %v2776_v39 = vsub.s32 0, %v2775_v35 }
0x184c   :  { %2896 = vmatprep.mubr.f32.mxu0 %v5000_v2 }
0x184f   :  { %2897 = vmatmul.mubr.f32.gmra.mxu0 %v6548_v54  ;;  %v2772_v54 = vld [vmem:[%s7013_s9] sm:$0x3]  ;;  %s5002_s9 = smov [#allocation4]  }
0x1850   :  { %2902 = vmatprep.mubr.f32.mxu0 %v5000_v2  ;;  %s2994_s4 = sshll.u32 %s5002_s9, 4  ;;  %s2995_s4 = int_to_ptr.vmem [resolvable:$true] %s2994_s4 }
0x1851   :  { %s4956_s19 = scalar_lea.vmem %s2995_s4, 256  ;;  %p4961_p1 = scmp.lt.s32.totalorder %s2995_s4, %s2995_s4 }
0x1852   :  { %p4957_p0 = scmp.ne.s32.totalorder %s2995_s4, %s4956_s19  ;;  %p4962_p2 = scmp.lt.s32.totalorder %s4956_s19, %s4956_s19 }
0x1853   :  { %2903 = vmatmul.mubr.f32.gmra.mxu0 %v6587_v60  ;;  %v2780_v60 = vsub.s32 1, %v2775_v35  ;;  %v1582_v35 = vadd.f32 %v6825_v48, %v6271_v49 }
0x1854   :  { %2908 = vmatprep.mubr.f32.mxu0 %v5000_v2  ;;  %p4963_p3 = por %p4962_p2, %p4961_p1 }
0x1855   :  { %v6962_v50 = vrot.slane %v2772_v54, %v2780_v60 }
0x1856   :  { %p4964_p4 = pnand %p4963_p3, %p4957_p0 }
0x1857   :  { %2909 = vmatmul.mubr.f32.gmra.mxu0 %v6656_v17  ;;  %v6960_v17 = vrot.slane %v2772_v54, %v2776_v39 }
0x1858   :  { %2914 = vmatprep.mubr.f32.mxu0 %v5000_v2 }
0x185b   :  { %2915 = vmatmul.mubr.f32.gmra.mxu0 %v6745_v23 }
0x185c   :  { %2920 = vmatprep.mubr.f32.mxu0 %v5000_v2 }
0x185f   :  { %2921 = vmatmul.mubr.f32.gmra.mxu0 %v6783_v31 }
0x1860   :  { %2926 = vmatprep.mubr.f32.mxu0 %v5000_v2 }
0x1863   :  { %2927 = vmatmul.mubr.f32.gmra.mxu0 %v6832_v26 }
0x1864   :  { %2932 = vmatprep.mubr.f32.mxu0 %v5000_v2 }
0x18cf   :  { %v2661_v56 = vpop.f32.mrf.mxu0 }
0x18d0   :  { %v2665_v61 = vadd.f32 %v2661_v56, %v1577_v36 }
0x18d1   :  { %v4815_v7 = vpop.f32.mrf.mxu0 }
0x18d2   :  { %4919 = vtanh.f32 %v2665_v61 }
0x18df   :  { %v4920_v27 = vpop.eup %4919 }
0x18e0   :  { %4849 = vmatmul.mubr.f32.vlgmr.msra.gmra.mxu1 %v4920_v27  ;;  %2933 = vmatmul.mubr.f32.gmra.mxu0 %v4920_v27 }
0x18e1   :  { %2938 = vmatprep.mubr.f32.mxu0 %v5000_v2 }
0x18ef   :  { %v2850_v62 = vpop.f32.mrf.mxu0 }
0x18f0   :  { %v2851_v1 = vadd.f32 %v2850_v62, %v6960_v17 }
0x18f1   :  { %v2852_v3 = vpop.f32.mrf.mxu0 }
0x18f2   :  { %2945 = vst [vmem:[#allocation2] sm:$0xff] %v2851_v1  ;;  %v2853_v5 = vadd.f32 %v2852_v3, %v6962_v50 }
0x18f3   :  { %v2856_v9 = vpop.f32.mrf.mxu0 }
0x18f4   :  { %2946 = vst [vmem:[#allocation2 + $0x8] sm:$0xff] %v2853_v5  ;;  %v2857_v2 = vadd.f32 %v2856_v9, %v6960_v17 }
0x18f5   :  { %v2858_v21 = vpop.f32.mrf.mxu0 }
0x18f6   :  { %2947 = vst [vmem:[#allocation2 + $0x10] sm:$0xff] %v2857_v2  ;;  %v2859_v23 = vadd.f32 %v2858_v21, %v6962_v50 }
0x18f7   :  { %v2862_v45 = vpop.f32.mrf.mxu0 }
0x18f8   :  { %2948 = vst [vmem:[#allocation2 + $0x18] sm:$0xff] %v2859_v23  ;;  %v2863_v25 = vadd.f32 %v2862_v45, %v6960_v17 }
0x18f9   :  { %v2864_v32 = vpop.f32.mrf.mxu0 }
0x18fa   :  { %2949 = vst [vmem:[#allocation2 + $0x20] sm:$0xff] %v2863_v25  ;;  %v2865_v29 = vadd.f32 %v2864_v32, %v6962_v50 }
0x18fb   :  { %v2868_v31 = vpop.f32.mrf.mxu0 }
0x18fc   :  { %2950 = vst [vmem:[#allocation2 + $0x28] sm:$0xff] %v2865_v29  ;;  %v2869_v28 = vadd.f32 %v2868_v31, %v6960_v17 }
0x18fd   :  { %v2870_v34 = vpop.f32.mrf.mxu0 }
0x18fe   :  { %2951 = vst [vmem:[#allocation2 + $0x30] sm:$0xff] %v2869_v28  ;;  %v2871_v20 = vadd.f32 %v2870_v34, %v6962_v50 }
0x18ff   :  { %v2874_v24 = vpop.f32.mrf.mxu0 }
0x1900   :  { %2952 = vst [vmem:[#allocation2 + $0x38] sm:$0xff] %v2871_v20  ;;  %v2875_v30 = vadd.f32 %v2874_v24, %v6960_v17 }
0x1901   :  { %v2876_v33 = vpop.f32.mrf.mxu0 }
0x1902   :  { %2953 = vst [vmem:[#allocation2 + $0x40] sm:$0xff] %v2875_v30  ;;  %v2877_v26 = vadd.f32 %v2876_v33, %v6962_v50 }
0x1903   :  { %v2880_v37 = vpop.f32.mrf.mxu0 }
0x1904   :  { %2954 = vst [vmem:[#allocation2 + $0x48] sm:$0xff] %v2877_v26  ;;  %v2881_v22 = vadd.f32 %v2880_v37, %v6960_v17 }
0x1905   :  { %v2882_v40 = vpop.f32.mrf.mxu0 }
0x1906   :  { %2955 = vst [vmem:[#allocation2 + $0x50] sm:$0xff] %v2881_v22  ;;  %v2883_v14 = vadd.f32 %v2882_v40, %v6962_v50 }
0x1907   :  { %v2886_v41 = vpop.f32.mrf.mxu0 }
0x1908   :  { %2956 = vst [vmem:[#allocation2 + $0x58] sm:$0xff] %v2883_v14  ;;  %v2887_v42 = vadd.f32 %v2886_v41, %v6960_v17 }
0x1909   :  { %v2888_v52 = vpop.f32.mrf.mxu0 }
0x190a   :  { %2957 = vst [vmem:[#allocation2 + $0x60] sm:$0xff] %v2887_v42  ;;  %v2889_v53 = vadd.f32 %v2888_v52, %v6962_v50 }
0x190b   :  { %v2892_v43 = vpop.f32.mrf.mxu0 }
0x190c   :  { %2958 = vst [vmem:[#allocation2 + $0x68] sm:$0xff] %v2889_v53  ;;  %v2893_v47 = vadd.f32 %v2892_v43, %v6960_v17 }
0x190d   :  { %v2894_v51 = vpop.f32.mrf.mxu0 }
0x190e   :  { %2959 = vst [vmem:[#allocation2 + $0x70] sm:$0xff] %v2893_v47  ;;  %v2895_v55 = vadd.f32 %v2894_v51, %v6962_v50 }
0x190f   :  { %v2898_v0 = vpop.f32.mrf.mxu0 }
0x1910   :  { %2960 = vst [vmem:[#allocation2 + $0x78] sm:$0xff] %v2895_v55  ;;  %v2899_v10 = vadd.f32 %v2898_v0, %v6960_v17 }
0x1911   :  { %v2900_v44 = vpop.f32.mrf.mxu0 }
0x1912   :  { %2961 = vst [vmem:[#allocation2 + $0x80] sm:$0xff] %v2899_v10  ;;  %v2901_v18 = vadd.f32 %v2900_v44, %v6962_v50 }
0x1913   :  { %v2904_v38 = vpop.f32.mrf.mxu0 }
0x1914   :  { %2962 = vst [vmem:[#allocation2 + $0x88] sm:$0xff] %v2901_v18  ;;  %v2905_v57 = vadd.f32 %v2904_v38, %v6960_v17 }
0x1915   :  { %v2906_v8 = vpop.f32.mrf.mxu0 }
0x1916   :  { %2963 = vst [vmem:[#allocation2 + $0x90] sm:$0xff] %v2905_v57  ;;  %v2907_v11 = vadd.f32 %v2906_v8, %v6962_v50 }
0x1917   :  { %v2910_v13 = vpop.f32.mrf.mxu0 }
0x1918   :  { %2964 = vst [vmem:[#allocation2 + $0x98] sm:$0xff] %v2907_v11  ;;  %v2911_v15 = vadd.f32 %v2910_v13, %v6960_v17 }
0x1919   :  { %v2912_v19 = vpop.f32.mrf.mxu0 }
0x191a   :  { %2965 = vst [vmem:[#allocation2 + $0xa0] sm:$0xff] %v2911_v15  ;;  %v2913_v63 = vadd.f32 %v2912_v19, %v6962_v50 }
0x191b   :  { %v2916_v6 = vpop.f32.mrf.mxu0 }
0x191c   :  { %2966 = vst [vmem:[#allocation2 + $0xa8] sm:$0xff] %v2913_v63  ;;  %v2917_v12 = vadd.f32 %v2916_v6, %v6960_v17 }
0x191d   :  { %v2918_v16 = vpop.f32.mrf.mxu0 }
0x191e   :  { %2967 = vst [vmem:[#allocation2 + $0xb0] sm:$0xff] %v2917_v12  ;;  %v2919_v46 = vadd.f32 %v2918_v16, %v6962_v50 }
0x191f   :  { %v2922_v58 = vpop.f32.mrf.mxu0 }
0x1920   :  { %2968 = vst [vmem:[#allocation2 + $0xb8] sm:$0xff] %v2919_v46  ;;  %v2923_v59 = vadd.f32 %v2922_v58, %v6960_v17 }
0x1921   :  { %v2924_v36 = vpop.f32.mrf.mxu0 }
0x1922   :  { %2969 = vst [vmem:[#allocation2 + $0xc0] sm:$0xff] %v2923_v59  ;;  %v2925_v56 = vadd.f32 %v2924_v36, %v6962_v50 }
0x1923   :  { %v2928_v61 = vpop.f32.mrf.mxu0 }
0x1924   :  { %2970 = vst [vmem:[#allocation2 + $0xc8] sm:$0xff] %v2925_v56  ;;  %v2929_v7 = vadd.f32 %v2928_v61, %v6960_v17 }
0x1925   :  { %v2930_v27 = vpop.f32.mrf.mxu0 }
0x1926   :  { %2971 = vst [vmem:[#allocation2 + $0xd0] sm:$0xff] %v2929_v7  ;;  %v2931_v4 = vadd.f32 %v2930_v27, %v6962_v50 }
0x1928   :  { %2972 = vst [vmem:[#allocation2 + $0xd8] sm:$0xff] %v2931_v4 }
0x19a0   :  { %v2733_v39 = vpop.f32.mrf.mxu1  ;;  %v2934_v54 = vpop.f32.mrf.mxu0 }
0x19a1   :  { %v2737_v60 = vadd.f32 %v2733_v39, %v1582_v35  ;;  %v2935_v62 = vadd.f32 %v2934_v54, %v6960_v17 }
0x19a2   :  { %v4850_v1 = vpop.f32.mrf.mxu1  ;;  %v2936_v3 = vpop.f32.mrf.mxu0 }
0x19a3   :  { %4921 = vtanh.f32 %v2737_v60  ;;  %2973 = vst [vmem:[#allocation2 + $0xe0] sm:$0xff] %v2935_v62  ;;  %v2937_v5 = vadd.f32 %v2936_v3, %v6962_v50 }
0x19a5   :  { %2974 = vst [vmem:[#allocation2 + $0xe8] sm:$0xff] %v2937_v5 }
0x19b0   :  { %v4922_v9 = vpop.eup %4921 }
0x19b1   :  { %2739 = vst [vmem:[#allocation4 + $0x8] sm:$0xff] %v4922_v9  ;;  %2939 = vmatmul.mubr.f32.gmra.mxu0 %v4922_v9 }
0x19b2   :  { %4967 = shalt.err (!%p4964_p4)
}
0x19b3   :  { %s5003_s20 = smov 128   ;;  %s5004_s21 = smov 8  }
0x19b4   :  { %3000 = dma.vmem_to_hbm [thread:$0]  %s2995_s4, 256, %s7015_s11, [#allocation5], %s5003_s20, %s5003_s20, %s5004_s21  }
0x19b5   :  { %s5005_s22 = smov [#allocation2]  }
0x19b6   :  { %s2982_s23 = sshll.u32 %s5005_s22, 4  ;;  %s2983_s23 = int_to_ptr.vmem [resolvable:$true] %s2982_s23 }
0x19b7   :  { %s4976_s24 = scalar_lea.vmem %s2983_s23, 4096  ;;  %p4981_p6 = scmp.lt.s32.totalorder %s2983_s23, %s2983_s23 }
0x19b8   :  { %p4977_p5 = scmp.ne.s32.totalorder %s2983_s23, %s4976_s24  ;;  %p4982_p7 = scmp.lt.s32.totalorder %s4976_s24, %s4976_s24 }
0x19ba   :  { %p4983_p8 = por %p4982_p7, %p4981_p6 }
0x19bc   :  { %p4984_p9 = pnand %p4983_p8, %p4977_p5 }
0x1a71   :  { %v2940_v49 = vpop.f32.mrf.mxu0 }
0x1a72   :  { %v2941_v48 = vadd.f32 %v2940_v49, %v6960_v17 }
0x1a73   :  { %v2942_v2 = vpop.f32.mrf.mxu0 }
0x1a74   :  { %2975 = vst [vmem:[#allocation2 + $0xf0] sm:$0xff] %v2941_v48  ;;  %v2943_v21 = vadd.f32 %v2942_v2, %v6962_v50 }
0x1a76   :  { %2976 = vst [vmem:[#allocation2 + $0xf8] sm:$0xff] %v2943_v21 }
0x1a77   :  { %4987 = shalt.err (!%p4984_p9)
}
0x1a78   :  { %s5006_s25 = smov 256   ;;  %s5007_s11 = smov 16  }
0x1a79   :  { %2988 = dma.vmem_to_hbm [thread:$0]  %s2983_s23, 4096, %s7014_s10, [#allocation3], %s5006_s25, %s5006_s25, %s5007_s11  }
0x1a7a   :  { %4996 = dma.done.wait [#allocation3], 4096  }
0x1a7b   :  { %4997 = vsyncadd [#allocation3], 4294963200 }
0x1a7c   :  { %4998 = dma.done.wait [#allocation5], 256  }
0x1a7d   :  { %4999 = vsyncadd [#allocation5], 4294967040 }
0x1a7e   :  { %3007 = vsyncpa [#allocation3], 1 }
0x1a7f   :  { %3008 = vsyncpa [#allocation5], 1 }

</bundles_post_ra>
